<compile_context>
chip_gen: v6e
topology: v6e:2x2x1
jax: 0.10.0
libtpu: 0.0.40
codegen_flags: <defaults>
</compile_context>

<pallas_src>
import functools

import jax
import jax.numpy as jnp
from jax.experimental import pallas as pl
from jax.experimental.pallas import tpu as pltpu


NUM_LAYERS = 3


def _sublane_round(n, m=8):
    return ((n + m - 1) // m) * m


# ----------------------------------------------------------------------------
# Fused Pallas kernel: 3 stacked LSTM layers (wavefront) + final Linear
# ----------------------------------------------------------------------------
def fused_lstm_fc_kernel(x_ref,
                         wih0_ref, whh0_ref, b0_ref,
                         w1cat_ref, b1_ref,
                         w2cat_ref, b2_ref,
                         h0_ref, c0_ref,
                         fcw_ref, fcb_ref,
                         out_ref, hn_ref, cn_ref,
                         g_sc,
                         *, seq_len):
    """x_ref is time-major, batch-flattened: (T*B, D_in); row = t*B + b."""
    T = seq_len
    _, B, H = h0_ref.shape  # B is the (padded) batch, 4H == 128 lanes

    # ---- Hoisted layer-0 input projection for ALL timesteps (one matmul).
    g_sc[...] = (jnp.dot(x_ref[...], wih0_ref[...],
                         preferred_element_type=jnp.float32)
                 + b0_ref[...])

    # Weights stay resident in vregs across the whole time loop.
    whh0 = whh0_ref[...]     # (H, 4H)
    w1c = w1cat_ref[...]     # (2H, 4H) = [W_ih1 ; W_hh1]
    w2c = w2cat_ref[...]     # (2H, 4H) = [W_ih2 ; W_hh2]
    b1 = b1_ref[...]         # (1, 4H)
    b2 = b2_ref[...]

    def lstm_cell(gates, c_prev):
        # Full-width activations: 2 EUP pushes over the whole (B, 4H) value,
        # then static lane slices (instead of 4 quarter-width pushes).
        sig = jax.nn.sigmoid(gates)
        tg = jnp.tanh(gates)
        i_g = sig[:, 0 * H:1 * H]
        f_g = sig[:, 1 * H:2 * H]
        o_g = sig[:, 3 * H:4 * H]
        g_g = tg[:, 2 * H:3 * H]
        c_new = f_g * c_prev + i_g * g_g
        h_new = o_g * jnp.tanh(c_new)
        return h_new, c_new

    def step(s, carry):
        h0, c0, h1, c1, h2, c2, x1, x2 = carry

        act0 = s < T                                   # layer 0 does time s
        act1 = jnp.logical_and(s >= 1, s <= T)         # layer 1 does time s-1
        act2 = jnp.logical_and(s >= 2, s <= T + 1)     # layer 2 does time s-2

        # ---- layer 0 (time t = s): hoisted pre-gates + recurrent matmul.
        t0 = jnp.minimum(s, T - 1)        # clamp avoids OOB in wavefront tail
        r = pl.multiple_of(t0 * B, 8)     # sublane-aligned dynamic slice
        gates0 = g_sc[pl.ds(r, B), :] + jnp.dot(
            h0, whh0, preferred_element_type=jnp.float32)
        h0n, c0n = lstm_cell(gates0, c0)

        # ---- layer 1 (time t = s-1): fused [x_t ; h_prev] @ [W_ih ; W_hh].
        gates1 = jnp.dot(jnp.concatenate([x1, h1], axis=1), w1c,
                         preferred_element_type=jnp.float32) + b1
        h1n, c1n = lstm_cell(gates1, c1)

        # ---- layer 2 (time t = s-2).
        gates2 = jnp.dot(jnp.concatenate([x2, h2], axis=1), w2c,
                         preferred_element_type=jnp.float32) + b2
        h2n, c2n = lstm_cell(gates2, c2)

        # Gate state updates on wavefront activity (stale x1/x2 are never
        # consumed by an active layer, so no extra gating needed for them).
        h0 = jnp.where(act0, h0n, h0); c0 = jnp.where(act0, c0n, c0)
        h1 = jnp.where(act1, h1n, h1); c1 = jnp.where(act1, c1n, c1)
        h2 = jnp.where(act2, h2n, h2); c2 = jnp.where(act2, c2n, c2)

        # Next step's layer-1/2 inputs are this step's layer-0/1 outputs.
        return h0, c0, h1, c1, h2, c2, h0, h1

    zeros = jnp.zeros((B, H), jnp.float32)
    steps = T + NUM_LAYERS - 1
    unroll = True if steps <= 32 else 8   # avoid imem/compile blowup at big T
    carry0 = (h0_ref[0], c0_ref[0],
              h0_ref[1], c0_ref[1],
              h0_ref[2], c0_ref[2],
              zeros, zeros)
    h0, c0, h1, c1, h2, c2, _, _ = jax.lax.fori_loop(
        0, steps, step, carry0, unroll=unroll)

    hn_ref[0] = h0
    hn_ref[1] = h1
    hn_ref[2] = h2
    cn_ref[0] = c0
    cn_ref[1] = c1
    cn_ref[2] = c2

    # Final Linear on the last timestep of the last layer (out[:, -1, :] @ fc).
    out_ref[...] = (jnp.dot(h2, fcw_ref[...],
                            preferred_element_type=jnp.float32)
                    + fcb_ref[...]).astype(out_ref.dtype)


# ----------------------------------------------------------------------------
# Wrapper (mirrors NeuralNetwork.forward)
# ----------------------------------------------------------------------------
def neural_network_forward(params, x, h0=None, c0=None):
    """x: (B, T, input_dim) f32 (batch_first).  Returns (out, hn, cn)."""
    B, T, D = x.shape
    L = NUM_LAYERS
    H = params["hidden_dim"]
    O = params["fc_w_t"].shape[-1]

    if h0 is None or c0 is None:
        h0 = jnp.zeros((L, B, H), jnp.float32)
        c0 = jnp.zeros((L, B, H), jnp.float32)

    # Pad batch up to a full 8-sublane tile (padded rows carry zeros -> finite,
    # unused results that are sliced away below).
    Bp = _sublane_round(B)
    pad = Bp - B
    x_p = jnp.pad(x, ((0, pad), (0, 0), (0, 0))) if pad else x
    h0_p = jnp.pad(h0, ((0, 0), (0, pad), (0, 0))) if pad else h0
    c0_p = jnp.pad(c0, ((0, 0), (0, pad), (0, 0))) if pad else c0

    # Cheap host-side layout prep: time-major, batch-flattened (T*Bp, D) so the
    # hoisted layer-0 input projection is a single 2-D matmul inside the kernel.
    x_flat = jnp.transpose(x_p, (1, 0, 2)).reshape(T * Bp, D)

    (w0, u0, b0), (w1, u1, b1), (w2, u2, b2) = params["lstm"]
    # Fused [W_ih ; W_hh] for layers 1 & 2 (wavefront per-step matmul, K = 2H).
    w1cat = jnp.concatenate([w1, u1], axis=0)   # (2H, 4H)
    w2cat = jnp.concatenate([w2, u2], axis=0)   # (2H, 4H)

    def full2(shape):
        return pl.BlockSpec(shape, lambda i: (0, 0))

    def full3(shape):
        return pl.BlockSpec(shape, lambda i: (0, 0, 0))

    kernel = functools.partial(fused_lstm_fc_kernel, seq_len=T)

    out_p, hn_p, cn_p = pl.pallas_call(
        kernel,
        out_shape=(jax.ShapeDtypeStruct((Bp, O), jnp.float32),
                   jax.ShapeDtypeStruct((L, Bp, H), jnp.float32),
                   jax.ShapeDtypeStruct((L, Bp, H), jnp.float32)),
        grid=(1,),
        in_specs=[full2((T * Bp, D)),
                  full2((D, 4 * H)), full2((H, 4 * H)), full2((1, 4 * H)),
                  full2((2 * H, 4 * H)), full2((1, 4 * H)),
                  full2((2 * H, 4 * H)), full2((1, 4 * H)),
                  full3((L, Bp, H)), full3((L, Bp, H)),
                  full2((H, O)), full2((1, O))],
        out_specs=(full2((Bp, O)),
                   full3((L, Bp, H)),
                   full3((L, Bp, H))),
        scratch_shapes=[pltpu.VMEM((T * Bp, 4 * H), jnp.float32)],  # pre-gates
        compiler_params=pltpu.CompilerParams(
            dimension_semantics=("arbitrary",),
            vmem_limit_bytes=32 * 1024 * 1024),
    )(x_flat, w0, u0, b0, w1cat, b1, w2cat, b2, h0_p, c0_p,
      params["fc_w_t"], params["fc_b"])

    return out_p[:B], hn_p[:, :B], cn_p[:, :B]


# ----------------------------------------------------------------------------
# Deterministic parameter init (PyTorch-style uniform(-1/sqrt(H), 1/sqrt(H)))
# ----------------------------------------------------------------------------
def init_params(key, input_dim, hidden_dim, output_dim, num_layers=NUM_LAYERS):
    H = hidden_dim
    bound = 1.0 / jnp.sqrt(jnp.float32(H))
    params = {"hidden_dim": H, "lstm": []}

    def u(k, shape):
        return jax.random.uniform(k, shape, jnp.float32, -bound, bound)

    keys = jax.random.split(key, num_layers * 4 + 4)
    ki = 0
    for l in range(num_layers):
        d_in = input_dim if l == 0 else H
        w_ih = u(keys[ki], (4 * H, d_in)); ki += 1   # PyTorch weight_ih_l{l}
        w_hh = u(keys[ki], (4 * H, H));   ki += 1    # PyTorch weight_hh_l{l}
        b_ih = u(keys[ki], (4 * H,));     ki += 1
        b_hh = u(keys[ki], (4 * H,));     ki += 1
        # pre-transpose weights, fold the two biases together
        params["lstm"].append((w_ih.T, w_hh.T, (b_ih + b_hh)[None, :]))

    # TODO(synk): self.attention = nn.Linear(hidden_dim, 1) is declared in
    # __init__ but never used in forward(); params are initialized for parity
    # but no kernel is emitted for it.
    params["attn_w_t"] = u(keys[ki], (1, H)).T; ki += 1
    params["attn_b"] = u(keys[ki], (1,))[None, :]; ki += 1

    fc_w = u(keys[ki], (output_dim, H)); ki += 1     # PyTorch fc.weight
    fc_b = u(keys[ki], (output_dim,));   ki += 1
    params["fc_w_t"] = fc_w.T
    params["fc_b"] = fc_b[None, :]
    return params


if __name__ == "__main__":
    input_dim, hidden_dim, output_dim = 16, 32, 4
    batch, seq = 2, 8

    key = jax.random.PRNGKey(0)
    k_param, k_x = jax.random.split(key)
    params = init_params(k_param, input_dim, hidden_dim, output_dim)

    x = jax.random.normal(k_x, (batch, seq, input_dim), jnp.float32)

    out, hn, cn = neural_network_forward(params, x)
    jax.block_until_ready((out, hn, cn))

    assert out.shape == (batch, output_dim)
    assert hn.shape == (NUM_LAYERS, batch, hidden_dim)
    assert cn.shape == (NUM_LAYERS, batch, hidden_dim)
    assert bool(jnp.all(jnp.isfinite(out)))
    assert bool(jnp.all(jnp.isfinite(hn))) and bool(jnp.all(jnp.isfinite(cn)))
    print("KERNEL_OK")
</pallas_src>

<mosaic_0001>
module attributes {stable_mosaic.version = 11 : i64} {
  func.func @fused_lstm_fc_kernel(%arg0: i32, %arg1: memref<64x16xf32, #tpu.memory_space<vmem>>, %arg2: memref<16x128xf32, #tpu.memory_space<vmem>>, %arg3: memref<32x128xf32, #tpu.memory_space<vmem>>, %arg4: memref<1x128xf32, #tpu.memory_space<vmem>>, %arg5: memref<64x128xf32, #tpu.memory_space<vmem>>, %arg6: memref<1x128xf32, #tpu.memory_space<vmem>>, %arg7: memref<64x128xf32, #tpu.memory_space<vmem>>, %arg8: memref<1x128xf32, #tpu.memory_space<vmem>>, %arg9: memref<3x8x32xf32, #tpu.memory_space<vmem>>, %arg10: memref<3x8x32xf32, #tpu.memory_space<vmem>>, %arg11: memref<32x4xf32, #tpu.memory_space<vmem>>, %arg12: memref<1x4xf32, #tpu.memory_space<vmem>>, %arg13: memref<8x4xf32, #tpu.memory_space<vmem>>, %arg14: memref<3x8x32xf32, #tpu.memory_space<vmem>>, %arg15: memref<3x8x32xf32, #tpu.memory_space<vmem>>, %arg16: memref<64x128xf32, #tpu.memory_space<vmem>>) attributes {dimension_semantics = [#tpu.dimension_semantics<arbitrary>], iteration_bounds = array<i64: 1>, scalar_prefetch = 0 : i64, scratch_operands = 1 : i64, tpu.core_type = #tpu.core_type<tc>, window_params = [{pipeline_mode = #tpu.pipeline_mode<synchronous>, transform_indices = @transform_0, window_bounds = array<i64: 64, 16>}, {pipeline_mode = #tpu.pipeline_mode<synchronous>, transform_indices = @transform_1, window_bounds = array<i64: 16, 128>}, {pipeline_mode = #tpu.pipeline_mode<synchronous>, transform_indices = @transform_2, window_bounds = array<i64: 32, 128>}, {pipeline_mode = #tpu.pipeline_mode<synchronous>, transform_indices = @transform_3, window_bounds = array<i64: 1, 128>}, {pipeline_mode = #tpu.pipeline_mode<synchronous>, transform_indices = @transform_4, window_bounds = array<i64: 64, 128>}, {pipeline_mode = #tpu.pipeline_mode<synchronous>, transform_indices = @transform_5, window_bounds = array<i64: 1, 128>}, {pipeline_mode = #tpu.pipeline_mode<synchronous>, transform_indices = @transform_6, window_bounds = array<i64: 64, 128>}, {pipeline_mode = #tpu.pipeline_mode<synchronous>, transform_indices = @transform_7, window_bounds = array<i64: 1, 128>}, {pipeline_mode = #tpu.pipeline_mode<synchronous>, transform_indices = @transform_8, window_bounds = array<i64: 3, 8, 32>}, {pipeline_mode = #tpu.pipeline_mode<synchronous>, transform_indices = @transform_9, window_bounds = array<i64: 3, 8, 32>}, {pipeline_mode = #tpu.pipeline_mode<synchronous>, transform_indices = @transform_10, window_bounds = array<i64: 32, 4>}, {pipeline_mode = #tpu.pipeline_mode<synchronous>, transform_indices = @transform_11, window_bounds = array<i64: 1, 4>}, {pipeline_mode = #tpu.pipeline_mode<synchronous>, transform_indices = @transform_12, window_bounds = array<i64: 8, 4>}, {pipeline_mode = #tpu.pipeline_mode<synchronous>, transform_indices = @transform_13, window_bounds = array<i64: 3, 8, 32>}, {pipeline_mode = #tpu.pipeline_mode<synchronous>, transform_indices = @transform_14, window_bounds = array<i64: 3, 8, 32>}]} {
    %c0 = arith.constant 0 : index
    %c0_0 = arith.constant 0 : index
    %0 = vector.load %arg1[%c0, %c0_0] : memref<64x16xf32, #tpu.memory_space<vmem>>, vector<64x16xf32>
    %c0_1 = arith.constant 0 : index
    %c0_2 = arith.constant 0 : index
    %1 = vector.load %arg2[%c0_1, %c0_2] : memref<16x128xf32, #tpu.memory_space<vmem>>, vector<16x128xf32>
    %cst = arith.constant dense<0.000000e+00> : vector<64x128xf32>
    %2 = tpu.matmul %0, %1, %cst {dimension_numbers = #tpu.dot_dimension_numbers<[1], [0], [0], [1], [0, 0, 1, 1], [], []>} : vector<64x16xf32>, vector<16x128xf32>, vector<64x128xf32> -> vector<64x128xf32>
    %c0_3 = arith.constant 0 : index
    %c0_4 = arith.constant 0 : index
    %3 = vector.load %arg4[%c0_3, %c0_4] : memref<1x128xf32, #tpu.memory_space<vmem>>, vector<1x128xf32>
    %4 = vector.broadcast %3 : vector<1x128xf32> to vector<64x128xf32>
    %5 = arith.addf %2, %4 : vector<64x128xf32>
    %c0_5 = arith.constant 0 : index
    %c0_6 = arith.constant 0 : index
    %6 = vector.load %arg16[%c0_5, %c0_6] : memref<64x128xf32, #tpu.memory_space<vmem>>, vector<64x128xf32>
    tpu.vector_store %arg16[%c0_5, %c0_6], %5 {strides = array<i32>} : memref<64x128xf32, #tpu.memory_space<vmem>>, vector<64x128xf32>,
    %c0_7 = arith.constant 0 : index
    %c0_8 = arith.constant 0 : index
    %7 = vector.load %arg3[%c0_7, %c0_8] : memref<32x128xf32, #tpu.memory_space<vmem>>, vector<32x128xf32>
    %c0_9 = arith.constant 0 : index
    %c0_10 = arith.constant 0 : index
    %8 = vector.load %arg5[%c0_9, %c0_10] : memref<64x128xf32, #tpu.memory_space<vmem>>, vector<64x128xf32>
    %c0_11 = arith.constant 0 : index
    %c0_12 = arith.constant 0 : index
    %9 = vector.load %arg7[%c0_11, %c0_12] : memref<64x128xf32, #tpu.memory_space<vmem>>, vector<64x128xf32>
    %c0_13 = arith.constant 0 : index
    %c0_14 = arith.constant 0 : index
    %10 = vector.load %arg6[%c0_13, %c0_14] : memref<1x128xf32, #tpu.memory_space<vmem>>, vector<1x128xf32>
    %c0_15 = arith.constant 0 : index
    %c0_16 = arith.constant 0 : index
    %11 = vector.load %arg8[%c0_15, %c0_16] : memref<1x128xf32, #tpu.memory_space<vmem>>, vector<1x128xf32>
    %cst_17 = arith.constant 0.000000e+00 : f32
    %12 = vector.broadcast %cst_17 : f32 to vector<8x32xf32>
    %c0_18 = arith.constant 0 : index
    %c0_19 = arith.constant 0 : index
    %c0_20 = arith.constant 0 : index
    %13 = vector.load %arg9[%c0_18, %c0_19, %c0_20] : memref<3x8x32xf32, #tpu.memory_space<vmem>>, vector<1x8x32xf32>
    %14 = vector.shape_cast %13 : vector<1x8x32xf32> to vector<8x32xf32>
    %c0_21 = arith.constant 0 : index
    %c0_22 = arith.constant 0 : index
    %c0_23 = arith.constant 0 : index
    %15 = vector.load %arg10[%c0_21, %c0_22, %c0_23] : memref<3x8x32xf32, #tpu.memory_space<vmem>>, vector<1x8x32xf32>
    %16 = vector.shape_cast %15 : vector<1x8x32xf32> to vector<8x32xf32>
    %c1 = arith.constant 1 : index
    %c0_24 = arith.constant 0 : index
    %c0_25 = arith.constant 0 : index
    %17 = vector.load %arg9[%c1, %c0_24, %c0_25] : memref<3x8x32xf32, #tpu.memory_space<vmem>>, vector<1x8x32xf32>
    %18 = vector.shape_cast %17 : vector<1x8x32xf32> to vector<8x32xf32>
    %c1_26 = arith.constant 1 : index
    %c0_27 = arith.constant 0 : index
    %c0_28 = arith.constant 0 : index
    %19 = vector.load %arg10[%c1_26, %c0_27, %c0_28] : memref<3x8x32xf32, #tpu.memory_space<vmem>>, vector<1x8x32xf32>
    %20 = vector.shape_cast %19 : vector<1x8x32xf32> to vector<8x32xf32>
    %c2 = arith.constant 2 : index
    %c0_29 = arith.constant 0 : index
    %c0_30 = arith.constant 0 : index
    %21 = vector.load %arg9[%c2, %c0_29, %c0_30] : memref<3x8x32xf32, #tpu.memory_space<vmem>>, vector<1x8x32xf32>
    %22 = vector.shape_cast %21 : vector<1x8x32xf32> to vector<8x32xf32>
    %c2_31 = arith.constant 2 : index
    %c0_32 = arith.constant 0 : index
    %c0_33 = arith.constant 0 : index
    %23 = vector.load %arg10[%c2_31, %c0_32, %c0_33] : memref<3x8x32xf32, #tpu.memory_space<vmem>>, vector<1x8x32xf32>
    %24 = vector.shape_cast %23 : vector<1x8x32xf32> to vector<8x32xf32>
    %c0_i32 = arith.constant 0 : i32
    %c8_i32 = arith.constant 8 : i32
    %25 = arith.cmpi slt, %c0_i32, %c8_i32 : i32
    %c1_i32 = arith.constant 1 : i32
    %26 = arith.cmpi sge, %c0_i32, %c1_i32 : i32
    %c8_i32_34 = arith.constant 8 : i32
    %27 = arith.cmpi sle, %c0_i32, %c8_i32_34 : i32
    %28 = arith.andi %26, %27 : i1
    %c2_i32 = arith.constant 2 : i32
    %29 = arith.cmpi sge, %c0_i32, %c2_i32 : i32
    %c9_i32 = arith.constant 9 : i32
    %30 = arith.cmpi sle, %c0_i32, %c9_i32 : i32
    %31 = arith.andi %29, %30 : i1
    %c7_i32 = arith.constant 7 : i32
    %32 = arith.minsi %c0_i32, %c7_i32 : i32
    %c8_i32_35 = arith.constant 8 : i32
    %33 = arith.muli %32, %c8_i32_35 : i32
    %34 = tpu.assume_multiple %33, 8 : i32
    %35 = arith.index_cast %34 : i32 to index
    %c0_36 = arith.constant 0 : index
    %36 = vector.load %arg16[%35, %c0_36] : memref<64x128xf32, #tpu.memory_space<vmem>>, vector<8x128xf32>
    %cst_37 = arith.constant dense<0.000000e+00> : vector<8x128xf32>
    %37 = tpu.matmul %14, %7, %cst_37 {dimension_numbers = #tpu.dot_dimension_numbers<[1], [0], [0], [1], [0, 0, 1, 1], [], []>} : vector<8x32xf32>, vector<32x128xf32>, vector<8x128xf32> -> vector<8x128xf32>
    %38 = arith.addf %36, %37 : vector<8x128xf32>
    %39 = arith.negf %38 : vector<8x128xf32>
    %40 = math.exp %39 : vector<8x128xf32>
    %cst_38 = arith.constant 1.000000e+00 : f32
    %41 = vector.broadcast %cst_38 : f32 to vector<8x128xf32>
    %42 = arith.addf %41, %40 : vector<8x128xf32>
    %43 = arith.divf %41, %42 : vector<8x128xf32>
    %44 = math.tanh %38 : vector<8x128xf32>
    %45 = vector.extract_strided_slice %43 {offsets = [0, 0], sizes = [8, 32], strides = [1, 1]} : vector<8x128xf32> to vector<8x32xf32>
    %46 = vector.extract_strided_slice %43 {offsets = [0, 32], sizes = [8, 32], strides = [1, 1]} : vector<8x128xf32> to vector<8x32xf32>
    %47 = vector.extract_strided_slice %43 {offsets = [0, 96], sizes = [8, 32], strides = [1, 1]} : vector<8x128xf32> to vector<8x32xf32>
    %48 = vector.extract_strided_slice %44 {offsets = [0, 64], sizes = [8, 32], strides = [1, 1]} : vector<8x128xf32> to vector<8x32xf32>
    %49 = arith.mulf %46, %16 : vector<8x32xf32>
    %50 = arith.mulf %45, %48 : vector<8x32xf32>
    %51 = arith.addf %49, %50 : vector<8x32xf32>
    %52 = math.tanh %51 : vector<8x32xf32>
    %53 = arith.mulf %47, %52 : vector<8x32xf32>
    %54 = tpu.concatenate %12, %18 in 1 : vector<8x32xf32>, vector<8x32xf32> -> vector<8x64xf32>
    %cst_39 = arith.constant dense<0.000000e+00> : vector<8x128xf32>
    %55 = tpu.matmul %54, %8, %cst_39 {dimension_numbers = #tpu.dot_dimension_numbers<[1], [0], [0], [1], [0, 0, 1, 1], [], []>} : vector<8x64xf32>, vector<64x128xf32>, vector<8x128xf32> -> vector<8x128xf32>
    %56 = vector.broadcast %10 : vector<1x128xf32> to vector<8x128xf32>
    %57 = arith.addf %55, %56 : vector<8x128xf32>
    %58 = arith.negf %57 : vector<8x128xf32>
    %59 = math.exp %58 : vector<8x128xf32>
    %cst_40 = arith.constant 1.000000e+00 : f32
    %60 = vector.broadcast %cst_40 : f32 to vector<8x128xf32>
    %61 = arith.addf %60, %59 : vector<8x128xf32>
    %62 = arith.divf %60, %61 : vector<8x128xf32>
    %63 = math.tanh %57 : vector<8x128xf32>
    %64 = vector.extract_strided_slice %62 {offsets = [0, 0], sizes = [8, 32], strides = [1, 1]} : vector<8x128xf32> to vector<8x32xf32>
    %65 = vector.extract_strided_slice %62 {offsets = [0, 32], sizes = [8, 32], strides = [1, 1]} : vector<8x128xf32> to vector<8x32xf32>
    %66 = vector.extract_strided_slice %62 {offsets = [0, 96], sizes = [8, 32], strides = [1, 1]} : vector<8x128xf32> to vector<8x32xf32>
    %67 = vector.extract_strided_slice %63 {offsets = [0, 64], sizes = [8, 32], strides = [1, 1]} : vector<8x128xf32> to vector<8x32xf32>
    %68 = arith.mulf %65, %20 : vector<8x32xf32>
    %69 = arith.mulf %64, %67 : vector<8x32xf32>
    %70 = arith.addf %68, %69 : vector<8x32xf32>
    %71 = math.tanh %70 : vector<8x32xf32>
    %72 = arith.mulf %66, %71 : vector<8x32xf32>
    %73 = tpu.concatenate %12, %22 in 1 : vector<8x32xf32>, vector<8x32xf32> -> vector<8x64xf32>
    %cst_41 = arith.constant dense<0.000000e+00> : vector<8x128xf32>
    %74 = tpu.matmul %73, %9, %cst_41 {dimension_numbers = #tpu.dot_dimension_numbers<[1], [0], [0], [1], [0, 0, 1, 1], [], []>} : vector<8x64xf32>, vector<64x128xf32>, vector<8x128xf32> -> vector<8x128xf32>
    %75 = vector.broadcast %11 : vector<1x128xf32> to vector<8x128xf32>
    %76 = arith.addf %74, %75 : vector<8x128xf32>
    %77 = arith.negf %76 : vector<8x128xf32>
    %78 = math.exp %77 : vector<8x128xf32>
    %cst_42 = arith.constant 1.000000e+00 : f32
    %79 = vector.broadcast %cst_42 : f32 to vector<8x128xf32>
    %80 = arith.addf %79, %78 : vector<8x128xf32>
    %81 = arith.divf %79, %80 : vector<8x128xf32>
    %82 = math.tanh %76 : vector<8x128xf32>
    %83 = vector.extract_strided_slice %81 {offsets = [0, 0], sizes = [8, 32], strides = [1, 1]} : vector<8x128xf32> to vector<8x32xf32>
    %84 = vector.extract_strided_slice %81 {offsets = [0, 32], sizes = [8, 32], strides = [1, 1]} : vector<8x128xf32> to vector<8x32xf32>
    %85 = vector.extract_strided_slice %81 {offsets = [0, 96], sizes = [8, 32], strides = [1, 1]} : vector<8x128xf32> to vector<8x32xf32>
    %86 = vector.extract_strided_slice %82 {offsets = [0, 64], sizes = [8, 32], strides = [1, 1]} : vector<8x128xf32> to vector<8x32xf32>
    %87 = arith.mulf %84, %24 : vector<8x32xf32>
    %88 = arith.mulf %83, %86 : vector<8x32xf32>
    %89 = arith.addf %87, %88 : vector<8x32xf32>
    %90 = math.tanh %89 : vector<8x32xf32>
    %91 = arith.mulf %85, %90 : vector<8x32xf32>
    %92 = arith.select %25, %53, %14 : vector<8x32xf32>
    %93 = arith.select %25, %51, %16 : vector<8x32xf32>
    %94 = arith.select %28, %72, %18 : vector<8x32xf32>
    %95 = arith.select %28, %70, %20 : vector<8x32xf32>
    %96 = arith.select %31, %91, %22 : vector<8x32xf32>
    %97 = arith.select %31, %89, %24 : vector<8x32xf32>
    %c1_i32_43 = arith.constant 1 : i32
    %c8_i32_44 = arith.constant 8 : i32
    %98 = arith.cmpi slt, %c1_i32_43, %c8_i32_44 : i32
    %c1_i32_45 = arith.constant 1 : i32
    %99 = arith.cmpi sge, %c1_i32_43, %c1_i32_45 : i32
    %c8_i32_46 = arith.constant 8 : i32
    %100 = arith.cmpi sle, %c1_i32_43, %c8_i32_46 : i32
    %101 = arith.andi %99, %100 : i1
    %c2_i32_47 = arith.constant 2 : i32
    %102 = arith.cmpi sge, %c1_i32_43, %c2_i32_47 : i32
    %c9_i32_48 = arith.constant 9 : i32
    %103 = arith.cmpi sle, %c1_i32_43, %c9_i32_48 : i32
    %104 = arith.andi %102, %103 : i1
    %c7_i32_49 = arith.constant 7 : i32
    %105 = arith.minsi %c1_i32_43, %c7_i32_49 : i32
    %c8_i32_50 = arith.constant 8 : i32
    %106 = arith.muli %105, %c8_i32_50 : i32
    %107 = tpu.assume_multiple %106, 8 : i32
    %108 = arith.index_cast %107 : i32 to index
    %c0_51 = arith.constant 0 : index
    %109 = vector.load %arg16[%108, %c0_51] : memref<64x128xf32, #tpu.memory_space<vmem>>, vector<8x128xf32>
    %cst_52 = arith.constant dense<0.000000e+00> : vector<8x128xf32>
    %110 = tpu.matmul %92, %7, %cst_52 {dimension_numbers = #tpu.dot_dimension_numbers<[1], [0], [0], [1], [0, 0, 1, 1], [], []>} : vector<8x32xf32>, vector<32x128xf32>, vector<8x128xf32> -> vector<8x128xf32>
    %111 = arith.addf %109, %110 : vector<8x128xf32>
    %112 = arith.negf %111 : vector<8x128xf32>
    %113 = math.exp %112 : vector<8x128xf32>
    %cst_53 = arith.constant 1.000000e+00 : f32
    %114 = vector.broadcast %cst_53 : f32 to vector<8x128xf32>
    %115 = arith.addf %114, %113 : vector<8x128xf32>
    %116 = arith.divf %114, %115 : vector<8x128xf32>
    %117 = math.tanh %111 : vector<8x128xf32>
    %118 = vector.extract_strided_slice %116 {offsets = [0, 0], sizes = [8, 32], strides = [1, 1]} : vector<8x128xf32> to vector<8x32xf32>
    %119 = vector.extract_strided_slice %116 {offsets = [0, 32], sizes = [8, 32], strides = [1, 1]} : vector<8x128xf32> to vector<8x32xf32>
    %120 = vector.extract_strided_slice %116 {offsets = [0, 96], sizes = [8, 32], strides = [1, 1]} : vector<8x128xf32> to vector<8x32xf32>
    %121 = vector.extract_strided_slice %117 {offsets = [0, 64], sizes = [8, 32], strides = [1, 1]} : vector<8x128xf32> to vector<8x32xf32>
    %122 = arith.mulf %119, %93 : vector<8x32xf32>
    %123 = arith.mulf %118, %121 : vector<8x32xf32>
    %124 = arith.addf %122, %123 : vector<8x32xf32>
    %125 = math.tanh %124 : vector<8x32xf32>
    %126 = arith.mulf %120, %125 : vector<8x32xf32>
    %127 = tpu.concatenate %92, %94 in 1 : vector<8x32xf32>, vector<8x32xf32> -> vector<8x64xf32>
    %cst_54 = arith.constant dense<0.000000e+00> : vector<8x128xf32>
    %128 = tpu.matmul %127, %8, %cst_54 {dimension_numbers = #tpu.dot_dimension_numbers<[1], [0], [0], [1], [0, 0, 1, 1], [], []>} : vector<8x64xf32>, vector<64x128xf32>, vector<8x128xf32> -> vector<8x128xf32>
    %129 = vector.broadcast %10 : vector<1x128xf32> to vector<8x128xf32>
    %130 = arith.addf %128, %129 : vector<8x128xf32>
    %131 = arith.negf %130 : vector<8x128xf32>
    %132 = math.exp %131 : vector<8x128xf32>
    %cst_55 = arith.constant 1.000000e+00 : f32
    %133 = vector.broadcast %cst_55 : f32 to vector<8x128xf32>
    %134 = arith.addf %133, %132 : vector<8x128xf32>
    %135 = arith.divf %133, %134 : vector<8x128xf32>
    %136 = math.tanh %130 : vector<8x128xf32>
    %137 = vector.extract_strided_slice %135 {offsets = [0, 0], sizes = [8, 32], strides = [1, 1]} : vector<8x128xf32> to vector<8x32xf32>
    %138 = vector.extract_strided_slice %135 {offsets = [0, 32], sizes = [8, 32], strides = [1, 1]} : vector<8x128xf32> to vector<8x32xf32>
    %139 = vector.extract_strided_slice %135 {offsets = [0, 96], sizes = [8, 32], strides = [1, 1]} : vector<8x128xf32> to vector<8x32xf32>
    %140 = vector.extract_strided_slice %136 {offsets = [0, 64], sizes = [8, 32], strides = [1, 1]} : vector<8x128xf32> to vector<8x32xf32>
    %141 = arith.mulf %138, %95 : vector<8x32xf32>
    %142 = arith.mulf %137, %140 : vector<8x32xf32>
    %143 = arith.addf %141, %142 : vector<8x32xf32>
    %144 = math.tanh %143 : vector<8x32xf32>
    %145 = arith.mulf %139, %144 : vector<8x32xf32>
    %146 = tpu.concatenate %94, %96 in 1 : vector<8x32xf32>, vector<8x32xf32> -> vector<8x64xf32>
    %cst_56 = arith.constant dense<0.000000e+00> : vector<8x128xf32>
    %147 = tpu.matmul %146, %9, %cst_56 {dimension_numbers = #tpu.dot_dimension_numbers<[1], [0], [0], [1], [0, 0, 1, 1], [], []>} : vector<8x64xf32>, vector<64x128xf32>, vector<8x128xf32> -> vector<8x128xf32>
    %148 = vector.broadcast %11 : vector<1x128xf32> to vector<8x128xf32>
    %149 = arith.addf %147, %148 : vector<8x128xf32>
    %150 = arith.negf %149 : vector<8x128xf32>
    %151 = math.exp %150 : vector<8x128xf32>
    %cst_57 = arith.constant 1.000000e+00 : f32
    %152 = vector.broadcast %cst_57 : f32 to vector<8x128xf32>
    %153 = arith.addf %152, %151 : vector<8x128xf32>
    %154 = arith.divf %152, %153 : vector<8x128xf32>
    %155 = math.tanh %149 : vector<8x128xf32>
    %156 = vector.extract_strided_slice %154 {offsets = [0, 0], sizes = [8, 32], strides = [1, 1]} : vector<8x128xf32> to vector<8x32xf32>
    %157 = vector.extract_strided_slice %154 {offsets = [0, 32], sizes = [8, 32], strides = [1, 1]} : vector<8x128xf32> to vector<8x32xf32>
    %158 = vector.extract_strided_slice %154 {offsets = [0, 96], sizes = [8, 32], strides = [1, 1]} : vector<8x128xf32> to vector<8x32xf32>
    %159 = vector.extract_strided_slice %155 {offsets = [0, 64], sizes = [8, 32], strides = [1, 1]} : vector<8x128xf32> to vector<8x32xf32>
    %160 = arith.mulf %157, %97 : vector<8x32xf32>
    %161 = arith.mulf %156, %159 : vector<8x32xf32>
    %162 = arith.addf %160, %161 : vector<8x32xf32>
    %163 = math.tanh %162 : vector<8x32xf32>
    %164 = arith.mulf %158, %163 : vector<8x32xf32>
    %165 = arith.select %98, %126, %92 : vector<8x32xf32>
    %166 = arith.select %98, %124, %93 : vector<8x32xf32>
    %167 = arith.select %101, %145, %94 : vector<8x32xf32>
    %168 = arith.select %101, %143, %95 : vector<8x32xf32>
    %169 = arith.select %104, %164, %96 : vector<8x32xf32>
    %170 = arith.select %104, %162, %97 : vector<8x32xf32>
    %c2_i32_58 = arith.constant 2 : i32
    %c8_i32_59 = arith.constant 8 : i32
    %171 = arith.cmpi slt, %c2_i32_58, %c8_i32_59 : i32
    %c1_i32_60 = arith.constant 1 : i32
    %172 = arith.cmpi sge, %c2_i32_58, %c1_i32_60 : i32
    %c8_i32_61 = arith.constant 8 : i32
    %173 = arith.cmpi sle, %c2_i32_58, %c8_i32_61 : i32
    %174 = arith.andi %172, %173 : i1
    %c2_i32_62 = arith.constant 2 : i32
    %175 = arith.cmpi sge, %c2_i32_58, %c2_i32_62 : i32
    %c9_i32_63 = arith.constant 9 : i32
    %176 = arith.cmpi sle, %c2_i32_58, %c9_i32_63 : i32
    %177 = arith.andi %175, %176 : i1
    %c7_i32_64 = arith.constant 7 : i32
    %178 = arith.minsi %c2_i32_58, %c7_i32_64 : i32
    %c8_i32_65 = arith.constant 8 : i32
    %179 = arith.muli %178, %c8_i32_65 : i32
    %180 = tpu.assume_multiple %179, 8 : i32
    %181 = arith.index_cast %180 : i32 to index
    %c0_66 = arith.constant 0 : index
    %182 = vector.load %arg16[%181, %c0_66] : memref<64x128xf32, #tpu.memory_space<vmem>>, vector<8x128xf32>
    %cst_67 = arith.constant dense<0.000000e+00> : vector<8x128xf32>
    %183 = tpu.matmul %165, %7, %cst_67 {dimension_numbers = #tpu.dot_dimension_numbers<[1], [0], [0], [1], [0, 0, 1, 1], [], []>} : vector<8x32xf32>, vector<32x128xf32>, vector<8x128xf32> -> vector<8x128xf32>
    %184 = arith.addf %182, %183 : vector<8x128xf32>
    %185 = arith.negf %184 : vector<8x128xf32>
    %186 = math.exp %185 : vector<8x128xf32>
    %cst_68 = arith.constant 1.000000e+00 : f32
    %187 = vector.broadcast %cst_68 : f32 to vector<8x128xf32>
    %188 = arith.addf %187, %186 : vector<8x128xf32>
    %189 = arith.divf %187, %188 : vector<8x128xf32>
    %190 = math.tanh %184 : vector<8x128xf32>
    %191 = vector.extract_strided_slice %189 {offsets = [0, 0], sizes = [8, 32], strides = [1, 1]} : vector<8x128xf32> to vector<8x32xf32>
    %192 = vector.extract_strided_slice %189 {offsets = [0, 32], sizes = [8, 32], strides = [1, 1]} : vector<8x128xf32> to vector<8x32xf32>
    %193 = vector.extract_strided_slice %189 {offsets = [0, 96], sizes = [8, 32], strides = [1, 1]} : vector<8x128xf32> to vector<8x32xf32>
    %194 = vector.extract_strided_slice %190 {offsets = [0, 64], sizes = [8, 32], strides = [1, 1]} : vector<8x128xf32> to vector<8x32xf32>
    %195 = arith.mulf %192, %166 : vector<8x32xf32>
    %196 = arith.mulf %191, %194 : vector<8x32xf32>
    %197 = arith.addf %195, %196 : vector<8x32xf32>
    %198 = math.tanh %197 : vector<8x32xf32>
    %199 = arith.mulf %193, %198 : vector<8x32xf32>
    %200 = tpu.concatenate %165, %167 in 1 : vector<8x32xf32>, vector<8x32xf32> -> vector<8x64xf32>
    %cst_69 = arith.constant dense<0.000000e+00> : vector<8x128xf32>
    %201 = tpu.matmul %200, %8, %cst_69 {dimension_numbers = #tpu.dot_dimension_numbers<[1], [0], [0], [1], [0, 0, 1, 1], [], []>} : vector<8x64xf32>, vector<64x128xf32>, vector<8x128xf32> -> vector<8x128xf32>
    %202 = vector.broadcast %10 : vector<1x128xf32> to vector<8x128xf32>
    %203 = arith.addf %201, %202 : vector<8x128xf32>
    %204 = arith.negf %203 : vector<8x128xf32>
    %205 = math.exp %204 : vector<8x128xf32>
    %cst_70 = arith.constant 1.000000e+00 : f32
    %206 = vector.broadcast %cst_70 : f32 to vector<8x128xf32>
    %207 = arith.addf %206, %205 : vector<8x128xf32>
    %208 = arith.divf %206, %207 : vector<8x128xf32>
    %209 = math.tanh %203 : vector<8x128xf32>
    %210 = vector.extract_strided_slice %208 {offsets = [0, 0], sizes = [8, 32], strides = [1, 1]} : vector<8x128xf32> to vector<8x32xf32>
    %211 = vector.extract_strided_slice %208 {offsets = [0, 32], sizes = [8, 32], strides = [1, 1]} : vector<8x128xf32> to vector<8x32xf32>
    %212 = vector.extract_strided_slice %208 {offsets = [0, 96], sizes = [8, 32], strides = [1, 1]} : vector<8x128xf32> to vector<8x32xf32>
    %213 = vector.extract_strided_slice %209 {offsets = [0, 64], sizes = [8, 32], strides = [1, 1]} : vector<8x128xf32> to vector<8x32xf32>
    %214 = arith.mulf %211, %168 : vector<8x32xf32>
    %215 = arith.mulf %210, %213 : vector<8x32xf32>
    %216 = arith.addf %214, %215 : vector<8x32xf32>
    %217 = math.tanh %216 : vector<8x32xf32>
    %218 = arith.mulf %212, %217 : vector<8x32xf32>
    %219 = tpu.concatenate %167, %169 in 1 : vector<8x32xf32>, vector<8x32xf32> -> vector<8x64xf32>
    %cst_71 = arith.constant dense<0.000000e+00> : vector<8x128xf32>
    %220 = tpu.matmul %219, %9, %cst_71 {dimension_numbers = #tpu.dot_dimension_numbers<[1], [0], [0], [1], [0, 0, 1, 1], [], []>} : vector<8x64xf32>, vector<64x128xf32>, vector<8x128xf32> -> vector<8x128xf32>
    %221 = vector.broadcast %11 : vector<1x128xf32> to vector<8x128xf32>
    %222 = arith.addf %220, %221 : vector<8x128xf32>
    %223 = arith.negf %222 : vector<8x128xf32>
    %224 = math.exp %223 : vector<8x128xf32>
    %cst_72 = arith.constant 1.000000e+00 : f32
    %225 = vector.broadcast %cst_72 : f32 to vector<8x128xf32>
    %226 = arith.addf %225, %224 : vector<8x128xf32>
    %227 = arith.divf %225, %226 : vector<8x128xf32>
    %228 = math.tanh %222 : vector<8x128xf32>
    %229 = vector.extract_strided_slice %227 {offsets = [0, 0], sizes = [8, 32], strides = [1, 1]} : vector<8x128xf32> to vector<8x32xf32>
    %230 = vector.extract_strided_slice %227 {offsets = [0, 32], sizes = [8, 32], strides = [1, 1]} : vector<8x128xf32> to vector<8x32xf32>
    %231 = vector.extract_strided_slice %227 {offsets = [0, 96], sizes = [8, 32], strides = [1, 1]} : vector<8x128xf32> to vector<8x32xf32>
    %232 = vector.extract_strided_slice %228 {offsets = [0, 64], sizes = [8, 32], strides = [1, 1]} : vector<8x128xf32> to vector<8x32xf32>
    %233 = arith.mulf %230, %170 : vector<8x32xf32>
    %234 = arith.mulf %229, %232 : vector<8x32xf32>
    %235 = arith.addf %233, %234 : vector<8x32xf32>
    %236 = math.tanh %235 : vector<8x32xf32>
    %237 = arith.mulf %231, %236 : vector<8x32xf32>
    %238 = arith.select %171, %199, %165 : vector<8x32xf32>
    %239 = arith.select %171, %197, %166 : vector<8x32xf32>
    %240 = arith.select %174, %218, %167 : vector<8x32xf32>
    %241 = arith.select %174, %216, %168 : vector<8x32xf32>
    %242 = arith.select %177, %237, %169 : vector<8x32xf32>
    %243 = arith.select %177, %235, %170 : vector<8x32xf32>
    %c3_i32 = arith.constant 3 : i32
    %c8_i32_73 = arith.constant 8 : i32
    %244 = arith.cmpi slt, %c3_i32, %c8_i32_73 : i32
    %c1_i32_74 = arith.constant 1 : i32
    %245 = arith.cmpi sge, %c3_i32, %c1_i32_74 : i32
    %c8_i32_75 = arith.constant 8 : i32
    %246 = arith.cmpi sle, %c3_i32, %c8_i32_75 : i32
    %247 = arith.andi %245, %246 : i1
    %c2_i32_76 = arith.constant 2 : i32
    %248 = arith.cmpi sge, %c3_i32, %c2_i32_76 : i32
    %c9_i32_77 = arith.constant 9 : i32
    %249 = arith.cmpi sle, %c3_i32, %c9_i32_77 : i32
    %250 = arith.andi %248, %249 : i1
    %c7_i32_78 = arith.constant 7 : i32
    %251 = arith.minsi %c3_i32, %c7_i32_78 : i32
    %c8_i32_79 = arith.constant 8 : i32
    %252 = arith.muli %251, %c8_i32_79 : i32
    %253 = tpu.assume_multiple %252, 8 : i32
    %254 = arith.index_cast %253 : i32 to index
    %c0_80 = arith.constant 0 : index
    %255 = vector.load %arg16[%254, %c0_80] : memref<64x128xf32, #tpu.memory_space<vmem>>, vector<8x128xf32>
    %cst_81 = arith.constant dense<0.000000e+00> : vector<8x128xf32>
    %256 = tpu.matmul %238, %7, %cst_81 {dimension_numbers = #tpu.dot_dimension_numbers<[1], [0], [0], [1], [0, 0, 1, 1], [], []>} : vector<8x32xf32>, vector<32x128xf32>, vector<8x128xf32> -> vector<8x128xf32>
    %257 = arith.addf %255, %256 : vector<8x128xf32>
    %258 = arith.negf %257 : vector<8x128xf32>
    %259 = math.exp %258 : vector<8x128xf32>
    %cst_82 = arith.constant 1.000000e+00 : f32
    %260 = vector.broadcast %cst_82 : f32 to vector<8x128xf32>
    %261 = arith.addf %260, %259 : vector<8x128xf32>
    %262 = arith.divf %260, %261 : vector<8x128xf32>
    %263 = math.tanh %257 : vector<8x128xf32>
    %264 = vector.extract_strided_slice %262 {offsets = [0, 0], sizes = [8, 32], strides = [1, 1]} : vector<8x128xf32> to vector<8x32xf32>
    %265 = vector.extract_strided_slice %262 {offsets = [0, 32], sizes = [8, 32], strides = [1, 1]} : vector<8x128xf32> to vector<8x32xf32>
    %266 = vector.extract_strided_slice %262 {offsets = [0, 96], sizes = [8, 32], strides = [1, 1]} : vector<8x128xf32> to vector<8x32xf32>
    %267 = vector.extract_strided_slice %263 {offsets = [0, 64], sizes = [8, 32], strides = [1, 1]} : vector<8x128xf32> to vector<8x32xf32>
    %268 = arith.mulf %265, %239 : vector<8x32xf32>
    %269 = arith.mulf %264, %267 : vector<8x32xf32>
    %270 = arith.addf %268, %269 : vector<8x32xf32>
    %271 = math.tanh %270 : vector<8x32xf32>
    %272 = arith.mulf %266, %271 : vector<8x32xf32>
    %273 = tpu.concatenate %238, %240 in 1 : vector<8x32xf32>, vector<8x32xf32> -> vector<8x64xf32>
    %cst_83 = arith.constant dense<0.000000e+00> : vector<8x128xf32>
    %274 = tpu.matmul %273, %8, %cst_83 {dimension_numbers = #tpu.dot_dimension_numbers<[1], [0], [0], [1], [0, 0, 1, 1], [], []>} : vector<8x64xf32>, vector<64x128xf32>, vector<8x128xf32> -> vector<8x128xf32>
    %275 = vector.broadcast %10 : vector<1x128xf32> to vector<8x128xf32>
    %276 = arith.addf %274, %275 : vector<8x128xf32>
    %277 = arith.negf %276 : vector<8x128xf32>
    %278 = math.exp %277 : vector<8x128xf32>
    %cst_84 = arith.constant 1.000000e+00 : f32
    %279 = vector.broadcast %cst_84 : f32 to vector<8x128xf32>
    %280 = arith.addf %279, %278 : vector<8x128xf32>
    %281 = arith.divf %279, %280 : vector<8x128xf32>
    %282 = math.tanh %276 : vector<8x128xf32>
    %283 = vector.extract_strided_slice %281 {offsets = [0, 0], sizes = [8, 32], strides = [1, 1]} : vector<8x128xf32> to vector<8x32xf32>
    %284 = vector.extract_strided_slice %281 {offsets = [0, 32], sizes = [8, 32], strides = [1, 1]} : vector<8x128xf32> to vector<8x32xf32>
    %285 = vector.extract_strided_slice %281 {offsets = [0, 96], sizes = [8, 32], strides = [1, 1]} : vector<8x128xf32> to vector<8x32xf32>
    %286 = vector.extract_strided_slice %282 {offsets = [0, 64], sizes = [8, 32], strides = [1, 1]} : vector<8x128xf32> to vector<8x32xf32>
    %287 = arith.mulf %284, %241 : vector<8x32xf32>
    %288 = arith.mulf %283, %286 : vector<8x32xf32>
    %289 = arith.addf %287, %288 : vector<8x32xf32>
    %290 = math.tanh %289 : vector<8x32xf32>
    %291 = arith.mulf %285, %290 : vector<8x32xf32>
    %292 = tpu.concatenate %240, %242 in 1 : vector<8x32xf32>, vector<8x32xf32> -> vector<8x64xf32>
    %cst_85 = arith.constant dense<0.000000e+00> : vector<8x128xf32>
    %293 = tpu.matmul %292, %9, %cst_85 {dimension_numbers = #tpu.dot_dimension_numbers<[1], [0], [0], [1], [0, 0, 1, 1], [], []>} : vector<8x64xf32>, vector<64x128xf32>, vector<8x128xf32> -> vector<8x128xf32>
    %294 = vector.broadcast %11 : vector<1x128xf32> to vector<8x128xf32>
    %295 = arith.addf %293, %294 : vector<8x128xf32>
    %296 = arith.negf %295 : vector<8x128xf32>
    %297 = math.exp %296 : vector<8x128xf32>
    %cst_86 = arith.constant 1.000000e+00 : f32
    %298 = vector.broadcast %cst_86 : f32 to vector<8x128xf32>
    %299 = arith.addf %298, %297 : vector<8x128xf32>
    %300 = arith.divf %298, %299 : vector<8x128xf32>
    %301 = math.tanh %295 : vector<8x128xf32>
    %302 = vector.extract_strided_slice %300 {offsets = [0, 0], sizes = [8, 32], strides = [1, 1]} : vector<8x128xf32> to vector<8x32xf32>
    %303 = vector.extract_strided_slice %300 {offsets = [0, 32], sizes = [8, 32], strides = [1, 1]} : vector<8x128xf32> to vector<8x32xf32>
    %304 = vector.extract_strided_slice %300 {offsets = [0, 96], sizes = [8, 32], strides = [1, 1]} : vector<8x128xf32> to vector<8x32xf32>
    %305 = vector.extract_strided_slice %301 {offsets = [0, 64], sizes = [8, 32], strides = [1, 1]} : vector<8x128xf32> to vector<8x32xf32>
    %306 = arith.mulf %303, %243 : vector<8x32xf32>
    %307 = arith.mulf %302, %305 : vector<8x32xf32>
    %308 = arith.addf %306, %307 : vector<8x32xf32>
    %309 = math.tanh %308 : vector<8x32xf32>
    %310 = arith.mulf %304, %309 : vector<8x32xf32>
    %311 = arith.select %244, %272, %238 : vector<8x32xf32>
    %312 = arith.select %244, %270, %239 : vector<8x32xf32>
    %313 = arith.select %247, %291, %240 : vector<8x32xf32>
    %314 = arith.select %247, %289, %241 : vector<8x32xf32>
    %315 = arith.select %250, %310, %242 : vector<8x32xf32>
    %316 = arith.select %250, %308, %243 : vector<8x32xf32>
    %c4_i32 = arith.constant 4 : i32
    %c8_i32_87 = arith.constant 8 : i32
    %317 = arith.cmpi slt, %c4_i32, %c8_i32_87 : i32
    %c1_i32_88 = arith.constant 1 : i32
    %318 = arith.cmpi sge, %c4_i32, %c1_i32_88 : i32
    %c8_i32_89 = arith.constant 8 : i32
    %319 = arith.cmpi sle, %c4_i32, %c8_i32_89 : i32
    %320 = arith.andi %318, %319 : i1
    %c2_i32_90 = arith.constant 2 : i32
    %321 = arith.cmpi sge, %c4_i32, %c2_i32_90 : i32
    %c9_i32_91 = arith.constant 9 : i32
    %322 = arith.cmpi sle, %c4_i32, %c9_i32_91 : i32
    %323 = arith.andi %321, %322 : i1
    %c7_i32_92 = arith.constant 7 : i32
    %324 = arith.minsi %c4_i32, %c7_i32_92 : i32
    %c8_i32_93 = arith.constant 8 : i32
    %325 = arith.muli %324, %c8_i32_93 : i32
    %326 = tpu.assume_multiple %325, 8 : i32
    %327 = arith.index_cast %326 : i32 to index
    %c0_94 = arith.constant 0 : index
    %328 = vector.load %arg16[%327, %c0_94] : memref<64x128xf32, #tpu.memory_space<vmem>>, vector<8x128xf32>
    %cst_95 = arith.constant dense<0.000000e+00> : vector<8x128xf32>
    %329 = tpu.matmul %311, %7, %cst_95 {dimension_numbers = #tpu.dot_dimension_numbers<[1], [0], [0], [1], [0, 0, 1, 1], [], []>} : vector<8x32xf32>, vector<32x128xf32>, vector<8x128xf32> -> vector<8x128xf32>
    %330 = arith.addf %328, %329 : vector<8x128xf32>
    %331 = arith.negf %330 : vector<8x128xf32>
    %332 = math.exp %331 : vector<8x128xf32>
    %cst_96 = arith.constant 1.000000e+00 : f32
    %333 = vector.broadcast %cst_96 : f32 to vector<8x128xf32>
    %334 = arith.addf %333, %332 : vector<8x128xf32>
    %335 = arith.divf %333, %334 : vector<8x128xf32>
    %336 = math.tanh %330 : vector<8x128xf32>
    %337 = vector.extract_strided_slice %335 {offsets = [0, 0], sizes = [8, 32], strides = [1, 1]} : vector<8x128xf32> to vector<8x32xf32>
    %338 = vector.extract_strided_slice %335 {offsets = [0, 32], sizes = [8, 32], strides = [1, 1]} : vector<8x128xf32> to vector<8x32xf32>
    %339 = vector.extract_strided_slice %335 {offsets = [0, 96], sizes = [8, 32], strides = [1, 1]} : vector<8x128xf32> to vector<8x32xf32>
    %340 = vector.extract_strided_slice %336 {offsets = [0, 64], sizes = [8, 32], strides = [1, 1]} : vector<8x128xf32> to vector<8x32xf32>
    %341 = arith.mulf %338, %312 : vector<8x32xf32>
    %342 = arith.mulf %337, %340 : vector<8x32xf32>
    %343 = arith.addf %341, %342 : vector<8x32xf32>
    %344 = math.tanh %343 : vector<8x32xf32>
    %345 = arith.mulf %339, %344 : vector<8x32xf32>
    %346 = tpu.concatenate %311, %313 in 1 : vector<8x32xf32>, vector<8x32xf32> -> vector<8x64xf32>
    %cst_97 = arith.constant dense<0.000000e+00> : vector<8x128xf32>
    %347 = tpu.matmul %346, %8, %cst_97 {dimension_numbers = #tpu.dot_dimension_numbers<[1], [0], [0], [1], [0, 0, 1, 1], [], []>} : vector<8x64xf32>, vector<64x128xf32>, vector<8x128xf32> -> vector<8x128xf32>
    %348 = vector.broadcast %10 : vector<1x128xf32> to vector<8x128xf32>
    %349 = arith.addf %347, %348 : vector<8x128xf32>
    %350 = arith.negf %349 : vector<8x128xf32>
    %351 = math.exp %350 : vector<8x128xf32>
    %cst_98 = arith.constant 1.000000e+00 : f32
    %352 = vector.broadcast %cst_98 : f32 to vector<8x128xf32>
    %353 = arith.addf %352, %351 : vector<8x128xf32>
    %354 = arith.divf %352, %353 : vector<8x128xf32>
    %355 = math.tanh %349 : vector<8x128xf32>
    %356 = vector.extract_strided_slice %354 {offsets = [0, 0], sizes = [8, 32], strides = [1, 1]} : vector<8x128xf32> to vector<8x32xf32>
    %357 = vector.extract_strided_slice %354 {offsets = [0, 32], sizes = [8, 32], strides = [1, 1]} : vector<8x128xf32> to vector<8x32xf32>
    %358 = vector.extract_strided_slice %354 {offsets = [0, 96], sizes = [8, 32], strides = [1, 1]} : vector<8x128xf32> to vector<8x32xf32>
    %359 = vector.extract_strided_slice %355 {offsets = [0, 64], sizes = [8, 32], strides = [1, 1]} : vector<8x128xf32> to vector<8x32xf32>
    %360 = arith.mulf %357, %314 : vector<8x32xf32>
    %361 = arith.mulf %356, %359 : vector<8x32xf32>
    %362 = arith.addf %360, %361 : vector<8x32xf32>
    %363 = math.tanh %362 : vector<8x32xf32>
    %364 = arith.mulf %358, %363 : vector<8x32xf32>
    %365 = tpu.concatenate %313, %315 in 1 : vector<8x32xf32>, vector<8x32xf32> -> vector<8x64xf32>
    %cst_99 = arith.constant dense<0.000000e+00> : vector<8x128xf32>
    %366 = tpu.matmul %365, %9, %cst_99 {dimension_numbers = #tpu.dot_dimension_numbers<[1], [0], [0], [1], [0, 0, 1, 1], [], []>} : vector<8x64xf32>, vector<64x128xf32>, vector<8x128xf32> -> vector<8x128xf32>
    %367 = vector.broadcast %11 : vector<1x128xf32> to vector<8x128xf32>
    %368 = arith.addf %366, %367 : vector<8x128xf32>
    %369 = arith.negf %368 : vector<8x128xf32>
    %370 = math.exp %369 : vector<8x128xf32>
    %cst_100 = arith.constant 1.000000e+00 : f32
    %371 = vector.broadcast %cst_100 : f32 to vector<8x128xf32>
    %372 = arith.addf %371, %370 : vector<8x128xf32>
    %373 = arith.divf %371, %372 : vector<8x128xf32>
    %374 = math.tanh %368 : vector<8x128xf32>
    %375 = vector.extract_strided_slice %373 {offsets = [0, 0], sizes = [8, 32], strides = [1, 1]} : vector<8x128xf32> to vector<8x32xf32>
    %376 = vector.extract_strided_slice %373 {offsets = [0, 32], sizes = [8, 32], strides = [1, 1]} : vector<8x128xf32> to vector<8x32xf32>
    %377 = vector.extract_strided_slice %373 {offsets = [0, 96], sizes = [8, 32], strides = [1, 1]} : vector<8x128xf32> to vector<8x32xf32>
    %378 = vector.extract_strided_slice %374 {offsets = [0, 64], sizes = [8, 32], strides = [1, 1]} : vector<8x128xf32> to vector<8x32xf32>
    %379 = arith.mulf %376, %316 : vector<8x32xf32>
    %380 = arith.mulf %375, %378 : vector<8x32xf32>
    %381 = arith.addf %379, %380 : vector<8x32xf32>
    %382 = math.tanh %381 : vector<8x32xf32>
    %383 = arith.mulf %377, %382 : vector<8x32xf32>
    %384 = arith.select %317, %345, %311 : vector<8x32xf32>
    %385 = arith.select %317, %343, %312 : vector<8x32xf32>
    %386 = arith.select %320, %364, %313 : vector<8x32xf32>
    %387 = arith.select %320, %362, %314 : vector<8x32xf32>
    %388 = arith.select %323, %383, %315 : vector<8x32xf32>
    %389 = arith.select %323, %381, %316 : vector<8x32xf32>
    %c5_i32 = arith.constant 5 : i32
    %c8_i32_101 = arith.constant 8 : i32
    %390 = arith.cmpi slt, %c5_i32, %c8_i32_101 : i32
    %c1_i32_102 = arith.constant 1 : i32
    %391 = arith.cmpi sge, %c5_i32, %c1_i32_102 : i32
    %c8_i32_103 = arith.constant 8 : i32
    %392 = arith.cmpi sle, %c5_i32, %c8_i32_103 : i32
    %393 = arith.andi %391, %392 : i1
    %c2_i32_104 = arith.constant 2 : i32
    %394 = arith.cmpi sge, %c5_i32, %c2_i32_104 : i32
    %c9_i32_105 = arith.constant 9 : i32
    %395 = arith.cmpi sle, %c5_i32, %c9_i32_105 : i32
    %396 = arith.andi %394, %395 : i1
    %c7_i32_106 = arith.constant 7 : i32
    %397 = arith.minsi %c5_i32, %c7_i32_106 : i32
    %c8_i32_107 = arith.constant 8 : i32
    %398 = arith.muli %397, %c8_i32_107 : i32
    %399 = tpu.assume_multiple %398, 8 : i32
    %400 = arith.index_cast %399 : i32 to index
    %c0_108 = arith.constant 0 : index
    %401 = vector.load %arg16[%400, %c0_108] : memref<64x128xf32, #tpu.memory_space<vmem>>, vector<8x128xf32>
    %cst_109 = arith.constant dense<0.000000e+00> : vector<8x128xf32>
    %402 = tpu.matmul %384, %7, %cst_109 {dimension_numbers = #tpu.dot_dimension_numbers<[1], [0], [0], [1], [0, 0, 1, 1], [], []>} : vector<8x32xf32>, vector<32x128xf32>, vector<8x128xf32> -> vector<8x128xf32>
    %403 = arith.addf %401, %402 : vector<8x128xf32>
    %404 = arith.negf %403 : vector<8x128xf32>
    %405 = math.exp %404 : vector<8x128xf32>
    %cst_110 = arith.constant 1.000000e+00 : f32
    %406 = vector.broadcast %cst_110 : f32 to vector<8x128xf32>
    %407 = arith.addf %406, %405 : vector<8x128xf32>
    %408 = arith.divf %406, %407 : vector<8x128xf32>
    %409 = math.tanh %403 : vector<8x128xf32>
    %410 = vector.extract_strided_slice %408 {offsets = [0, 0], sizes = [8, 32], strides = [1, 1]} : vector<8x128xf32> to vector<8x32xf32>
    %411 = vector.extract_strided_slice %408 {offsets = [0, 32], sizes = [8, 32], strides = [1, 1]} : vector<8x128xf32> to vector<8x32xf32>
    %412 = vector.extract_strided_slice %408 {offsets = [0, 96], sizes = [8, 32], strides = [1, 1]} : vector<8x128xf32> to vector<8x32xf32>
    %413 = vector.extract_strided_slice %409 {offsets = [0, 64], sizes = [8, 32], strides = [1, 1]} : vector<8x128xf32> to vector<8x32xf32>
    %414 = arith.mulf %411, %385 : vector<8x32xf32>
    %415 = arith.mulf %410, %413 : vector<8x32xf32>
    %416 = arith.addf %414, %415 : vector<8x32xf32>
    %417 = math.tanh %416 : vector<8x32xf32>
    %418 = arith.mulf %412, %417 : vector<8x32xf32>
    %419 = tpu.concatenate %384, %386 in 1 : vector<8x32xf32>, vector<8x32xf32> -> vector<8x64xf32>
    %cst_111 = arith.constant dense<0.000000e+00> : vector<8x128xf32>
    %420 = tpu.matmul %419, %8, %cst_111 {dimension_numbers = #tpu.dot_dimension_numbers<[1], [0], [0], [1], [0, 0, 1, 1], [], []>} : vector<8x64xf32>, vector<64x128xf32>, vector<8x128xf32> -> vector<8x128xf32>
    %421 = vector.broadcast %10 : vector<1x128xf32> to vector<8x128xf32>
    %422 = arith.addf %420, %421 : vector<8x128xf32>
    %423 = arith.negf %422 : vector<8x128xf32>
    %424 = math.exp %423 : vector<8x128xf32>
    %cst_112 = arith.constant 1.000000e+00 : f32
    %425 = vector.broadcast %cst_112 : f32 to vector<8x128xf32>
    %426 = arith.addf %425, %424 : vector<8x128xf32>
    %427 = arith.divf %425, %426 : vector<8x128xf32>
    %428 = math.tanh %422 : vector<8x128xf32>
    %429 = vector.extract_strided_slice %427 {offsets = [0, 0], sizes = [8, 32], strides = [1, 1]} : vector<8x128xf32> to vector<8x32xf32>
    %430 = vector.extract_strided_slice %427 {offsets = [0, 32], sizes = [8, 32], strides = [1, 1]} : vector<8x128xf32> to vector<8x32xf32>
    %431 = vector.extract_strided_slice %427 {offsets = [0, 96], sizes = [8, 32], strides = [1, 1]} : vector<8x128xf32> to vector<8x32xf32>
    %432 = vector.extract_strided_slice %428 {offsets = [0, 64], sizes = [8, 32], strides = [1, 1]} : vector<8x128xf32> to vector<8x32xf32>
    %433 = arith.mulf %430, %387 : vector<8x32xf32>
    %434 = arith.mulf %429, %432 : vector<8x32xf32>
    %435 = arith.addf %433, %434 : vector<8x32xf32>
    %436 = math.tanh %435 : vector<8x32xf32>
    %437 = arith.mulf %431, %436 : vector<8x32xf32>
    %438 = tpu.concatenate %386, %388 in 1 : vector<8x32xf32>, vector<8x32xf32> -> vector<8x64xf32>
    %cst_113 = arith.constant dense<0.000000e+00> : vector<8x128xf32>
    %439 = tpu.matmul %438, %9, %cst_113 {dimension_numbers = #tpu.dot_dimension_numbers<[1], [0], [0], [1], [0, 0, 1, 1], [], []>} : vector<8x64xf32>, vector<64x128xf32>, vector<8x128xf32> -> vector<8x128xf32>
    %440 = vector.broadcast %11 : vector<1x128xf32> to vector<8x128xf32>
    %441 = arith.addf %439, %440 : vector<8x128xf32>
    %442 = arith.negf %441 : vector<8x128xf32>
    %443 = math.exp %442 : vector<8x128xf32>
    %cst_114 = arith.constant 1.000000e+00 : f32
    %444 = vector.broadcast %cst_114 : f32 to vector<8x128xf32>
    %445 = arith.addf %444, %443 : vector<8x128xf32>
    %446 = arith.divf %444, %445 : vector<8x128xf32>
    %447 = math.tanh %441 : vector<8x128xf32>
    %448 = vector.extract_strided_slice %446 {offsets = [0, 0], sizes = [8, 32], strides = [1, 1]} : vector<8x128xf32> to vector<8x32xf32>
    %449 = vector.extract_strided_slice %446 {offsets = [0, 32], sizes = [8, 32], strides = [1, 1]} : vector<8x128xf32> to vector<8x32xf32>
    %450 = vector.extract_strided_slice %446 {offsets = [0, 96], sizes = [8, 32], strides = [1, 1]} : vector<8x128xf32> to vector<8x32xf32>
    %451 = vector.extract_strided_slice %447 {offsets = [0, 64], sizes = [8, 32], strides = [1, 1]} : vector<8x128xf32> to vector<8x32xf32>
    %452 = arith.mulf %449, %389 : vector<8x32xf32>
    %453 = arith.mulf %448, %451 : vector<8x32xf32>
    %454 = arith.addf %452, %453 : vector<8x32xf32>
    %455 = math.tanh %454 : vector<8x32xf32>
    %456 = arith.mulf %450, %455 : vector<8x32xf32>
    %457 = arith.select %390, %418, %384 : vector<8x32xf32>
    %458 = arith.select %390, %416, %385 : vector<8x32xf32>
    %459 = arith.select %393, %437, %386 : vector<8x32xf32>
    %460 = arith.select %393, %435, %387 : vector<8x32xf32>
    %461 = arith.select %396, %456, %388 : vector<8x32xf32>
    %462 = arith.select %396, %454, %389 : vector<8x32xf32>
    %c6_i32 = arith.constant 6 : i32
    %c8_i32_115 = arith.constant 8 : i32
    %463 = arith.cmpi slt, %c6_i32, %c8_i32_115 : i32
    %c1_i32_116 = arith.constant 1 : i32
    %464 = arith.cmpi sge, %c6_i32, %c1_i32_116 : i32
    %c8_i32_117 = arith.constant 8 : i32
    %465 = arith.cmpi sle, %c6_i32, %c8_i32_117 : i32
    %466 = arith.andi %464, %465 : i1
    %c2_i32_118 = arith.constant 2 : i32
    %467 = arith.cmpi sge, %c6_i32, %c2_i32_118 : i32
    %c9_i32_119 = arith.constant 9 : i32
    %468 = arith.cmpi sle, %c6_i32, %c9_i32_119 : i32
    %469 = arith.andi %467, %468 : i1
    %c7_i32_120 = arith.constant 7 : i32
    %470 = arith.minsi %c6_i32, %c7_i32_120 : i32
    %c8_i32_121 = arith.constant 8 : i32
    %471 = arith.muli %470, %c8_i32_121 : i32
    %472 = tpu.assume_multiple %471, 8 : i32
    %473 = arith.index_cast %472 : i32 to index
    %c0_122 = arith.constant 0 : index
    %474 = vector.load %arg16[%473, %c0_122] : memref<64x128xf32, #tpu.memory_space<vmem>>, vector<8x128xf32>
    %cst_123 = arith.constant dense<0.000000e+00> : vector<8x128xf32>
    %475 = tpu.matmul %457, %7, %cst_123 {dimension_numbers = #tpu.dot_dimension_numbers<[1], [0], [0], [1], [0, 0, 1, 1], [], []>} : vector<8x32xf32>, vector<32x128xf32>, vector<8x128xf32> -> vector<8x128xf32>
    %476 = arith.addf %474, %475 : vector<8x128xf32>
    %477 = arith.negf %476 : vector<8x128xf32>
    %478 = math.exp %477 : vector<8x128xf32>
    %cst_124 = arith.constant 1.000000e+00 : f32
    %479 = vector.broadcast %cst_124 : f32 to vector<8x128xf32>
    %480 = arith.addf %479, %478 : vector<8x128xf32>
    %481 = arith.divf %479, %480 : vector<8x128xf32>
    %482 = math.tanh %476 : vector<8x128xf32>
    %483 = vector.extract_strided_slice %481 {offsets = [0, 0], sizes = [8, 32], strides = [1, 1]} : vector<8x128xf32> to vector<8x32xf32>
    %484 = vector.extract_strided_slice %481 {offsets = [0, 32], sizes = [8, 32], strides = [1, 1]} : vector<8x128xf32> to vector<8x32xf32>
    %485 = vector.extract_strided_slice %481 {offsets = [0, 96], sizes = [8, 32], strides = [1, 1]} : vector<8x128xf32> to vector<8x32xf32>
    %486 = vector.extract_strided_slice %482 {offsets = [0, 64], sizes = [8, 32], strides = [1, 1]} : vector<8x128xf32> to vector<8x32xf32>
    %487 = arith.mulf %484, %458 : vector<8x32xf32>
    %488 = arith.mulf %483, %486 : vector<8x32xf32>
    %489 = arith.addf %487, %488 : vector<8x32xf32>
    %490 = math.tanh %489 : vector<8x32xf32>
    %491 = arith.mulf %485, %490 : vector<8x32xf32>
    %492 = tpu.concatenate %457, %459 in 1 : vector<8x32xf32>, vector<8x32xf32> -> vector<8x64xf32>
    %cst_125 = arith.constant dense<0.000000e+00> : vector<8x128xf32>
    %493 = tpu.matmul %492, %8, %cst_125 {dimension_numbers = #tpu.dot_dimension_numbers<[1], [0], [0], [1], [0, 0, 1, 1], [], []>} : vector<8x64xf32>, vector<64x128xf32>, vector<8x128xf32> -> vector<8x128xf32>
    %494 = vector.broadcast %10 : vector<1x128xf32> to vector<8x128xf32>
    %495 = arith.addf %493, %494 : vector<8x128xf32>
    %496 = arith.negf %495 : vector<8x128xf32>
    %497 = math.exp %496 : vector<8x128xf32>
    %cst_126 = arith.constant 1.000000e+00 : f32
    %498 = vector.broadcast %cst_126 : f32 to vector<8x128xf32>
    %499 = arith.addf %498, %497 : vector<8x128xf32>
    %500 = arith.divf %498, %499 : vector<8x128xf32>
    %501 = math.tanh %495 : vector<8x128xf32>
    %502 = vector.extract_strided_slice %500 {offsets = [0, 0], sizes = [8, 32], strides = [1, 1]} : vector<8x128xf32> to vector<8x32xf32>
    %503 = vector.extract_strided_slice %500 {offsets = [0, 32], sizes = [8, 32], strides = [1, 1]} : vector<8x128xf32> to vector<8x32xf32>
    %504 = vector.extract_strided_slice %500 {offsets = [0, 96], sizes = [8, 32], strides = [1, 1]} : vector<8x128xf32> to vector<8x32xf32>
    %505 = vector.extract_strided_slice %501 {offsets = [0, 64], sizes = [8, 32], strides = [1, 1]} : vector<8x128xf32> to vector<8x32xf32>
    %506 = arith.mulf %503, %460 : vector<8x32xf32>
    %507 = arith.mulf %502, %505 : vector<8x32xf32>
    %508 = arith.addf %506, %507 : vector<8x32xf32>
    %509 = math.tanh %508 : vector<8x32xf32>
    %510 = arith.mulf %504, %509 : vector<8x32xf32>
    %511 = tpu.concatenate %459, %461 in 1 : vector<8x32xf32>, vector<8x32xf32> -> vector<8x64xf32>
    %cst_127 = arith.constant dense<0.000000e+00> : vector<8x128xf32>
    %512 = tpu.matmul %511, %9, %cst_127 {dimension_numbers = #tpu.dot_dimension_numbers<[1], [0], [0], [1], [0, 0, 1, 1], [], []>} : vector<8x64xf32>, vector<64x128xf32>, vector<8x128xf32> -> vector<8x128xf32>
    %513 = vector.broadcast %11 : vector<1x128xf32> to vector<8x128xf32>
    %514 = arith.addf %512, %513 : vector<8x128xf32>
    %515 = arith.negf %514 : vector<8x128xf32>
    %516 = math.exp %515 : vector<8x128xf32>
    %cst_128 = arith.constant 1.000000e+00 : f32
    %517 = vector.broadcast %cst_128 : f32 to vector<8x128xf32>
    %518 = arith.addf %517, %516 : vector<8x128xf32>
    %519 = arith.divf %517, %518 : vector<8x128xf32>
    %520 = math.tanh %514 : vector<8x128xf32>
    %521 = vector.extract_strided_slice %519 {offsets = [0, 0], sizes = [8, 32], strides = [1, 1]} : vector<8x128xf32> to vector<8x32xf32>
    %522 = vector.extract_strided_slice %519 {offsets = [0, 32], sizes = [8, 32], strides = [1, 1]} : vector<8x128xf32> to vector<8x32xf32>
    %523 = vector.extract_strided_slice %519 {offsets = [0, 96], sizes = [8, 32], strides = [1, 1]} : vector<8x128xf32> to vector<8x32xf32>
    %524 = vector.extract_strided_slice %520 {offsets = [0, 64], sizes = [8, 32], strides = [1, 1]} : vector<8x128xf32> to vector<8x32xf32>
    %525 = arith.mulf %522, %462 : vector<8x32xf32>
    %526 = arith.mulf %521, %524 : vector<8x32xf32>
    %527 = arith.addf %525, %526 : vector<8x32xf32>
    %528 = math.tanh %527 : vector<8x32xf32>
    %529 = arith.mulf %523, %528 : vector<8x32xf32>
    %530 = arith.select %463, %491, %457 : vector<8x32xf32>
    %531 = arith.select %463, %489, %458 : vector<8x32xf32>
    %532 = arith.select %466, %510, %459 : vector<8x32xf32>
    %533 = arith.select %466, %508, %460 : vector<8x32xf32>
    %534 = arith.select %469, %529, %461 : vector<8x32xf32>
    %535 = arith.select %469, %527, %462 : vector<8x32xf32>
    %c7_i32_129 = arith.constant 7 : i32
    %c8_i32_130 = arith.constant 8 : i32
    %536 = arith.cmpi slt, %c7_i32_129, %c8_i32_130 : i32
    %c1_i32_131 = arith.constant 1 : i32
    %537 = arith.cmpi sge, %c7_i32_129, %c1_i32_131 : i32
    %c8_i32_132 = arith.constant 8 : i32
    %538 = arith.cmpi sle, %c7_i32_129, %c8_i32_132 : i32
    %539 = arith.andi %537, %538 : i1
    %c2_i32_133 = arith.constant 2 : i32
    %540 = arith.cmpi sge, %c7_i32_129, %c2_i32_133 : i32
    %c9_i32_134 = arith.constant 9 : i32
    %541 = arith.cmpi sle, %c7_i32_129, %c9_i32_134 : i32
    %542 = arith.andi %540, %541 : i1
    %c7_i32_135 = arith.constant 7 : i32
    %543 = arith.minsi %c7_i32_129, %c7_i32_135 : i32
    %c8_i32_136 = arith.constant 8 : i32
    %544 = arith.muli %543, %c8_i32_136 : i32
    %545 = tpu.assume_multiple %544, 8 : i32
    %546 = arith.index_cast %545 : i32 to index
    %c0_137 = arith.constant 0 : index
    %547 = vector.load %arg16[%546, %c0_137] : memref<64x128xf32, #tpu.memory_space<vmem>>, vector<8x128xf32>
    %cst_138 = arith.constant dense<0.000000e+00> : vector<8x128xf32>
    %548 = tpu.matmul %530, %7, %cst_138 {dimension_numbers = #tpu.dot_dimension_numbers<[1], [0], [0], [1], [0, 0, 1, 1], [], []>} : vector<8x32xf32>, vector<32x128xf32>, vector<8x128xf32> -> vector<8x128xf32>
    %549 = arith.addf %547, %548 : vector<8x128xf32>
    %550 = arith.negf %549 : vector<8x128xf32>
    %551 = math.exp %550 : vector<8x128xf32>
    %cst_139 = arith.constant 1.000000e+00 : f32
    %552 = vector.broadcast %cst_139 : f32 to vector<8x128xf32>
    %553 = arith.addf %552, %551 : vector<8x128xf32>
    %554 = arith.divf %552, %553 : vector<8x128xf32>
    %555 = math.tanh %549 : vector<8x128xf32>
    %556 = vector.extract_strided_slice %554 {offsets = [0, 0], sizes = [8, 32], strides = [1, 1]} : vector<8x128xf32> to vector<8x32xf32>
    %557 = vector.extract_strided_slice %554 {offsets = [0, 32], sizes = [8, 32], strides = [1, 1]} : vector<8x128xf32> to vector<8x32xf32>
    %558 = vector.extract_strided_slice %554 {offsets = [0, 96], sizes = [8, 32], strides = [1, 1]} : vector<8x128xf32> to vector<8x32xf32>
    %559 = vector.extract_strided_slice %555 {offsets = [0, 64], sizes = [8, 32], strides = [1, 1]} : vector<8x128xf32> to vector<8x32xf32>
    %560 = arith.mulf %557, %531 : vector<8x32xf32>
    %561 = arith.mulf %556, %559 : vector<8x32xf32>
    %562 = arith.addf %560, %561 : vector<8x32xf32>
    %563 = math.tanh %562 : vector<8x32xf32>
    %564 = arith.mulf %558, %563 : vector<8x32xf32>
    %565 = tpu.concatenate %530, %532 in 1 : vector<8x32xf32>, vector<8x32xf32> -> vector<8x64xf32>
    %cst_140 = arith.constant dense<0.000000e+00> : vector<8x128xf32>
    %566 = tpu.matmul %565, %8, %cst_140 {dimension_numbers = #tpu.dot_dimension_numbers<[1], [0], [0], [1], [0, 0, 1, 1], [], []>} : vector<8x64xf32>, vector<64x128xf32>, vector<8x128xf32> -> vector<8x128xf32>
    %567 = vector.broadcast %10 : vector<1x128xf32> to vector<8x128xf32>
    %568 = arith.addf %566, %567 : vector<8x128xf32>
    %569 = arith.negf %568 : vector<8x128xf32>
    %570 = math.exp %569 : vector<8x128xf32>
    %cst_141 = arith.constant 1.000000e+00 : f32
    %571 = vector.broadcast %cst_141 : f32 to vector<8x128xf32>
    %572 = arith.addf %571, %570 : vector<8x128xf32>
    %573 = arith.divf %571, %572 : vector<8x128xf32>
    %574 = math.tanh %568 : vector<8x128xf32>
    %575 = vector.extract_strided_slice %573 {offsets = [0, 0], sizes = [8, 32], strides = [1, 1]} : vector<8x128xf32> to vector<8x32xf32>
    %576 = vector.extract_strided_slice %573 {offsets = [0, 32], sizes = [8, 32], strides = [1, 1]} : vector<8x128xf32> to vector<8x32xf32>
    %577 = vector.extract_strided_slice %573 {offsets = [0, 96], sizes = [8, 32], strides = [1, 1]} : vector<8x128xf32> to vector<8x32xf32>
    %578 = vector.extract_strided_slice %574 {offsets = [0, 64], sizes = [8, 32], strides = [1, 1]} : vector<8x128xf32> to vector<8x32xf32>
    %579 = arith.mulf %576, %533 : vector<8x32xf32>
    %580 = arith.mulf %575, %578 : vector<8x32xf32>
    %581 = arith.addf %579, %580 : vector<8x32xf32>
    %582 = math.tanh %581 : vector<8x32xf32>
    %583 = arith.mulf %577, %582 : vector<8x32xf32>
    %584 = tpu.concatenate %532, %534 in 1 : vector<8x32xf32>, vector<8x32xf32> -> vector<8x64xf32>
    %cst_142 = arith.constant dense<0.000000e+00> : vector<8x128xf32>
    %585 = tpu.matmul %584, %9, %cst_142 {dimension_numbers = #tpu.dot_dimension_numbers<[1], [0], [0], [1], [0, 0, 1, 1], [], []>} : vector<8x64xf32>, vector<64x128xf32>, vector<8x128xf32> -> vector<8x128xf32>
    %586 = vector.broadcast %11 : vector<1x128xf32> to vector<8x128xf32>
    %587 = arith.addf %585, %586 : vector<8x128xf32>
    %588 = arith.negf %587 : vector<8x128xf32>
    %589 = math.exp %588 : vector<8x128xf32>
    %cst_143 = arith.constant 1.000000e+00 : f32
    %590 = vector.broadcast %cst_143 : f32 to vector<8x128xf32>
    %591 = arith.addf %590, %589 : vector<8x128xf32>
    %592 = arith.divf %590, %591 : vector<8x128xf32>
    %593 = math.tanh %587 : vector<8x128xf32>
    %594 = vector.extract_strided_slice %592 {offsets = [0, 0], sizes = [8, 32], strides = [1, 1]} : vector<8x128xf32> to vector<8x32xf32>
    %595 = vector.extract_strided_slice %592 {offsets = [0, 32], sizes = [8, 32], strides = [1, 1]} : vector<8x128xf32> to vector<8x32xf32>
    %596 = vector.extract_strided_slice %592 {offsets = [0, 96], sizes = [8, 32], strides = [1, 1]} : vector<8x128xf32> to vector<8x32xf32>
    %597 = vector.extract_strided_slice %593 {offsets = [0, 64], sizes = [8, 32], strides = [1, 1]} : vector<8x128xf32> to vector<8x32xf32>
    %598 = arith.mulf %595, %535 : vector<8x32xf32>
    %599 = arith.mulf %594, %597 : vector<8x32xf32>
    %600 = arith.addf %598, %599 : vector<8x32xf32>
    %601 = math.tanh %600 : vector<8x32xf32>
    %602 = arith.mulf %596, %601 : vector<8x32xf32>
    %603 = arith.select %536, %564, %530 : vector<8x32xf32>
    %604 = arith.select %536, %562, %531 : vector<8x32xf32>
    %605 = arith.select %539, %583, %532 : vector<8x32xf32>
    %606 = arith.select %539, %581, %533 : vector<8x32xf32>
    %607 = arith.select %542, %602, %534 : vector<8x32xf32>
    %608 = arith.select %542, %600, %535 : vector<8x32xf32>
    %c8_i32_144 = arith.constant 8 : i32
    %c8_i32_145 = arith.constant 8 : i32
    %609 = arith.cmpi slt, %c8_i32_144, %c8_i32_145 : i32
    %c1_i32_146 = arith.constant 1 : i32
    %610 = arith.cmpi sge, %c8_i32_144, %c1_i32_146 : i32
    %c8_i32_147 = arith.constant 8 : i32
    %611 = arith.cmpi sle, %c8_i32_144, %c8_i32_147 : i32
    %612 = arith.andi %610, %611 : i1
    %c2_i32_148 = arith.constant 2 : i32
    %613 = arith.cmpi sge, %c8_i32_144, %c2_i32_148 : i32
    %c9_i32_149 = arith.constant 9 : i32
    %614 = arith.cmpi sle, %c8_i32_144, %c9_i32_149 : i32
    %615 = arith.andi %613, %614 : i1
    %c7_i32_150 = arith.constant 7 : i32
    %616 = arith.minsi %c8_i32_144, %c7_i32_150 : i32
    %c8_i32_151 = arith.constant 8 : i32
    %617 = arith.muli %616, %c8_i32_151 : i32
    %618 = tpu.assume_multiple %617, 8 : i32
    %619 = arith.index_cast %618 : i32 to index
    %c0_152 = arith.constant 0 : index
    %620 = vector.load %arg16[%619, %c0_152] : memref<64x128xf32, #tpu.memory_space<vmem>>, vector<8x128xf32>
    %cst_153 = arith.constant dense<0.000000e+00> : vector<8x128xf32>
    %621 = tpu.matmul %603, %7, %cst_153 {dimension_numbers = #tpu.dot_dimension_numbers<[1], [0], [0], [1], [0, 0, 1, 1], [], []>} : vector<8x32xf32>, vector<32x128xf32>, vector<8x128xf32> -> vector<8x128xf32>
    %622 = arith.addf %620, %621 : vector<8x128xf32>
    %623 = arith.negf %622 : vector<8x128xf32>
    %624 = math.exp %623 : vector<8x128xf32>
    %cst_154 = arith.constant 1.000000e+00 : f32
    %625 = vector.broadcast %cst_154 : f32 to vector<8x128xf32>
    %626 = arith.addf %625, %624 : vector<8x128xf32>
    %627 = arith.divf %625, %626 : vector<8x128xf32>
    %628 = math.tanh %622 : vector<8x128xf32>
    %629 = vector.extract_strided_slice %627 {offsets = [0, 0], sizes = [8, 32], strides = [1, 1]} : vector<8x128xf32> to vector<8x32xf32>
    %630 = vector.extract_strided_slice %627 {offsets = [0, 32], sizes = [8, 32], strides = [1, 1]} : vector<8x128xf32> to vector<8x32xf32>
    %631 = vector.extract_strided_slice %627 {offsets = [0, 96], sizes = [8, 32], strides = [1, 1]} : vector<8x128xf32> to vector<8x32xf32>
    %632 = vector.extract_strided_slice %628 {offsets = [0, 64], sizes = [8, 32], strides = [1, 1]} : vector<8x128xf32> to vector<8x32xf32>
    %633 = arith.mulf %630, %604 : vector<8x32xf32>
    %634 = arith.mulf %629, %632 : vector<8x32xf32>
    %635 = arith.addf %633, %634 : vector<8x32xf32>
    %636 = math.tanh %635 : vector<8x32xf32>
    %637 = arith.mulf %631, %636 : vector<8x32xf32>
    %638 = tpu.concatenate %603, %605 in 1 : vector<8x32xf32>, vector<8x32xf32> -> vector<8x64xf32>
    %cst_155 = arith.constant dense<0.000000e+00> : vector<8x128xf32>
    %639 = tpu.matmul %638, %8, %cst_155 {dimension_numbers = #tpu.dot_dimension_numbers<[1], [0], [0], [1], [0, 0, 1, 1], [], []>} : vector<8x64xf32>, vector<64x128xf32>, vector<8x128xf32> -> vector<8x128xf32>
    %640 = vector.broadcast %10 : vector<1x128xf32> to vector<8x128xf32>
    %641 = arith.addf %639, %640 : vector<8x128xf32>
    %642 = arith.negf %641 : vector<8x128xf32>
    %643 = math.exp %642 : vector<8x128xf32>
    %cst_156 = arith.constant 1.000000e+00 : f32
    %644 = vector.broadcast %cst_156 : f32 to vector<8x128xf32>
    %645 = arith.addf %644, %643 : vector<8x128xf32>
    %646 = arith.divf %644, %645 : vector<8x128xf32>
    %647 = math.tanh %641 : vector<8x128xf32>
    %648 = vector.extract_strided_slice %646 {offsets = [0, 0], sizes = [8, 32], strides = [1, 1]} : vector<8x128xf32> to vector<8x32xf32>
    %649 = vector.extract_strided_slice %646 {offsets = [0, 32], sizes = [8, 32], strides = [1, 1]} : vector<8x128xf32> to vector<8x32xf32>
    %650 = vector.extract_strided_slice %646 {offsets = [0, 96], sizes = [8, 32], strides = [1, 1]} : vector<8x128xf32> to vector<8x32xf32>
    %651 = vector.extract_strided_slice %647 {offsets = [0, 64], sizes = [8, 32], strides = [1, 1]} : vector<8x128xf32> to vector<8x32xf32>
    %652 = arith.mulf %649, %606 : vector<8x32xf32>
    %653 = arith.mulf %648, %651 : vector<8x32xf32>
    %654 = arith.addf %652, %653 : vector<8x32xf32>
    %655 = math.tanh %654 : vector<8x32xf32>
    %656 = arith.mulf %650, %655 : vector<8x32xf32>
    %657 = tpu.concatenate %605, %607 in 1 : vector<8x32xf32>, vector<8x32xf32> -> vector<8x64xf32>
    %cst_157 = arith.constant dense<0.000000e+00> : vector<8x128xf32>
    %658 = tpu.matmul %657, %9, %cst_157 {dimension_numbers = #tpu.dot_dimension_numbers<[1], [0], [0], [1], [0, 0, 1, 1], [], []>} : vector<8x64xf32>, vector<64x128xf32>, vector<8x128xf32> -> vector<8x128xf32>
    %659 = vector.broadcast %11 : vector<1x128xf32> to vector<8x128xf32>
    %660 = arith.addf %658, %659 : vector<8x128xf32>
    %661 = arith.negf %660 : vector<8x128xf32>
    %662 = math.exp %661 : vector<8x128xf32>
    %cst_158 = arith.constant 1.000000e+00 : f32
    %663 = vector.broadcast %cst_158 : f32 to vector<8x128xf32>
    %664 = arith.addf %663, %662 : vector<8x128xf32>
    %665 = arith.divf %663, %664 : vector<8x128xf32>
    %666 = math.tanh %660 : vector<8x128xf32>
    %667 = vector.extract_strided_slice %665 {offsets = [0, 0], sizes = [8, 32], strides = [1, 1]} : vector<8x128xf32> to vector<8x32xf32>
    %668 = vector.extract_strided_slice %665 {offsets = [0, 32], sizes = [8, 32], strides = [1, 1]} : vector<8x128xf32> to vector<8x32xf32>
    %669 = vector.extract_strided_slice %665 {offsets = [0, 96], sizes = [8, 32], strides = [1, 1]} : vector<8x128xf32> to vector<8x32xf32>
    %670 = vector.extract_strided_slice %666 {offsets = [0, 64], sizes = [8, 32], strides = [1, 1]} : vector<8x128xf32> to vector<8x32xf32>
    %671 = arith.mulf %668, %608 : vector<8x32xf32>
    %672 = arith.mulf %667, %670 : vector<8x32xf32>
    %673 = arith.addf %671, %672 : vector<8x32xf32>
    %674 = math.tanh %673 : vector<8x32xf32>
    %675 = arith.mulf %669, %674 : vector<8x32xf32>
    %676 = arith.select %609, %637, %603 : vector<8x32xf32>
    %677 = arith.select %609, %635, %604 : vector<8x32xf32>
    %678 = arith.select %612, %656, %605 : vector<8x32xf32>
    %679 = arith.select %612, %654, %606 : vector<8x32xf32>
    %680 = arith.select %615, %675, %607 : vector<8x32xf32>
    %681 = arith.select %615, %673, %608 : vector<8x32xf32>
    %c9_i32_159 = arith.constant 9 : i32
    %c8_i32_160 = arith.constant 8 : i32
    %682 = arith.cmpi slt, %c9_i32_159, %c8_i32_160 : i32
    %c1_i32_161 = arith.constant 1 : i32
    %683 = arith.cmpi sge, %c9_i32_159, %c1_i32_161 : i32
    %c8_i32_162 = arith.constant 8 : i32
    %684 = arith.cmpi sle, %c9_i32_159, %c8_i32_162 : i32
    %685 = arith.andi %683, %684 : i1
    %c2_i32_163 = arith.constant 2 : i32
    %686 = arith.cmpi sge, %c9_i32_159, %c2_i32_163 : i32
    %c9_i32_164 = arith.constant 9 : i32
    %687 = arith.cmpi sle, %c9_i32_159, %c9_i32_164 : i32
    %688 = arith.andi %686, %687 : i1
    %c7_i32_165 = arith.constant 7 : i32
    %689 = arith.minsi %c9_i32_159, %c7_i32_165 : i32
    %c8_i32_166 = arith.constant 8 : i32
    %690 = arith.muli %689, %c8_i32_166 : i32
    %691 = tpu.assume_multiple %690, 8 : i32
    %692 = arith.index_cast %691 : i32 to index
    %c0_167 = arith.constant 0 : index
    %693 = vector.load %arg16[%692, %c0_167] : memref<64x128xf32, #tpu.memory_space<vmem>>, vector<8x128xf32>
    %cst_168 = arith.constant dense<0.000000e+00> : vector<8x128xf32>
    %694 = tpu.matmul %676, %7, %cst_168 {dimension_numbers = #tpu.dot_dimension_numbers<[1], [0], [0], [1], [0, 0, 1, 1], [], []>} : vector<8x32xf32>, vector<32x128xf32>, vector<8x128xf32> -> vector<8x128xf32>
    %695 = arith.addf %693, %694 : vector<8x128xf32>
    %696 = arith.negf %695 : vector<8x128xf32>
    %697 = math.exp %696 : vector<8x128xf32>
    %cst_169 = arith.constant 1.000000e+00 : f32
    %698 = vector.broadcast %cst_169 : f32 to vector<8x128xf32>
    %699 = arith.addf %698, %697 : vector<8x128xf32>
    %700 = arith.divf %698, %699 : vector<8x128xf32>
    %701 = math.tanh %695 : vector<8x128xf32>
    %702 = vector.extract_strided_slice %700 {offsets = [0, 0], sizes = [8, 32], strides = [1, 1]} : vector<8x128xf32> to vector<8x32xf32>
    %703 = vector.extract_strided_slice %700 {offsets = [0, 32], sizes = [8, 32], strides = [1, 1]} : vector<8x128xf32> to vector<8x32xf32>
    %704 = vector.extract_strided_slice %700 {offsets = [0, 96], sizes = [8, 32], strides = [1, 1]} : vector<8x128xf32> to vector<8x32xf32>
    %705 = vector.extract_strided_slice %701 {offsets = [0, 64], sizes = [8, 32], strides = [1, 1]} : vector<8x128xf32> to vector<8x32xf32>
    %706 = arith.mulf %703, %677 : vector<8x32xf32>
    %707 = arith.mulf %702, %705 : vector<8x32xf32>
    %708 = arith.addf %706, %707 : vector<8x32xf32>
    %709 = math.tanh %708 : vector<8x32xf32>
    %710 = arith.mulf %704, %709 : vector<8x32xf32>
    %711 = tpu.concatenate %676, %678 in 1 : vector<8x32xf32>, vector<8x32xf32> -> vector<8x64xf32>
    %cst_170 = arith.constant dense<0.000000e+00> : vector<8x128xf32>
    %712 = tpu.matmul %711, %8, %cst_170 {dimension_numbers = #tpu.dot_dimension_numbers<[1], [0], [0], [1], [0, 0, 1, 1], [], []>} : vector<8x64xf32>, vector<64x128xf32>, vector<8x128xf32> -> vector<8x128xf32>
    %713 = vector.broadcast %10 : vector<1x128xf32> to vector<8x128xf32>
    %714 = arith.addf %712, %713 : vector<8x128xf32>
    %715 = arith.negf %714 : vector<8x128xf32>
    %716 = math.exp %715 : vector<8x128xf32>
    %cst_171 = arith.constant 1.000000e+00 : f32
    %717 = vector.broadcast %cst_171 : f32 to vector<8x128xf32>
    %718 = arith.addf %717, %716 : vector<8x128xf32>
    %719 = arith.divf %717, %718 : vector<8x128xf32>
    %720 = math.tanh %714 : vector<8x128xf32>
    %721 = vector.extract_strided_slice %719 {offsets = [0, 0], sizes = [8, 32], strides = [1, 1]} : vector<8x128xf32> to vector<8x32xf32>
    %722 = vector.extract_strided_slice %719 {offsets = [0, 32], sizes = [8, 32], strides = [1, 1]} : vector<8x128xf32> to vector<8x32xf32>
    %723 = vector.extract_strided_slice %719 {offsets = [0, 96], sizes = [8, 32], strides = [1, 1]} : vector<8x128xf32> to vector<8x32xf32>
    %724 = vector.extract_strided_slice %720 {offsets = [0, 64], sizes = [8, 32], strides = [1, 1]} : vector<8x128xf32> to vector<8x32xf32>
    %725 = arith.mulf %722, %679 : vector<8x32xf32>
    %726 = arith.mulf %721, %724 : vector<8x32xf32>
    %727 = arith.addf %725, %726 : vector<8x32xf32>
    %728 = math.tanh %727 : vector<8x32xf32>
    %729 = arith.mulf %723, %728 : vector<8x32xf32>
    %730 = tpu.concatenate %678, %680 in 1 : vector<8x32xf32>, vector<8x32xf32> -> vector<8x64xf32>
    %cst_172 = arith.constant dense<0.000000e+00> : vector<8x128xf32>
    %731 = tpu.matmul %730, %9, %cst_172 {dimension_numbers = #tpu.dot_dimension_numbers<[1], [0], [0], [1], [0, 0, 1, 1], [], []>} : vector<8x64xf32>, vector<64x128xf32>, vector<8x128xf32> -> vector<8x128xf32>
    %732 = vector.broadcast %11 : vector<1x128xf32> to vector<8x128xf32>
    %733 = arith.addf %731, %732 : vector<8x128xf32>
    %734 = arith.negf %733 : vector<8x128xf32>
    %735 = math.exp %734 : vector<8x128xf32>
    %cst_173 = arith.constant 1.000000e+00 : f32
    %736 = vector.broadcast %cst_173 : f32 to vector<8x128xf32>
    %737 = arith.addf %736, %735 : vector<8x128xf32>
    %738 = arith.divf %736, %737 : vector<8x128xf32>
    %739 = math.tanh %733 : vector<8x128xf32>
    %740 = vector.extract_strided_slice %738 {offsets = [0, 0], sizes = [8, 32], strides = [1, 1]} : vector<8x128xf32> to vector<8x32xf32>
    %741 = vector.extract_strided_slice %738 {offsets = [0, 32], sizes = [8, 32], strides = [1, 1]} : vector<8x128xf32> to vector<8x32xf32>
    %742 = vector.extract_strided_slice %738 {offsets = [0, 96], sizes = [8, 32], strides = [1, 1]} : vector<8x128xf32> to vector<8x32xf32>
    %743 = vector.extract_strided_slice %739 {offsets = [0, 64], sizes = [8, 32], strides = [1, 1]} : vector<8x128xf32> to vector<8x32xf32>
    %744 = arith.mulf %741, %681 : vector<8x32xf32>
    %745 = arith.mulf %740, %743 : vector<8x32xf32>
    %746 = arith.addf %744, %745 : vector<8x32xf32>
    %747 = math.tanh %746 : vector<8x32xf32>
    %748 = arith.mulf %742, %747 : vector<8x32xf32>
    %749 = arith.select %682, %710, %676 : vector<8x32xf32>
    %750 = arith.select %682, %708, %677 : vector<8x32xf32>
    %751 = arith.select %685, %729, %678 : vector<8x32xf32>
    %752 = arith.select %685, %727, %679 : vector<8x32xf32>
    %753 = arith.select %688, %748, %680 : vector<8x32xf32>
    %754 = arith.select %688, %746, %681 : vector<8x32xf32>
    %c10_i32 = arith.constant 10 : i32
    %c0_174 = arith.constant 0 : index
    %c0_175 = arith.constant 0 : index
    %c0_176 = arith.constant 0 : index
    %755 = vector.load %arg14[%c0_174, %c0_175, %c0_176] : memref<3x8x32xf32, #tpu.memory_space<vmem>>, vector<1x8x32xf32>
    %756 = vector.shape_cast %755 : vector<1x8x32xf32> to vector<8x32xf32>
    %757 = vector.shape_cast %749 : vector<8x32xf32> to vector<1x8x32xf32>
    tpu.vector_store %arg14[%c0_174, %c0_175, %c0_176], %757 {strides = array<i32>} : memref<3x8x32xf32, #tpu.memory_space<vmem>>, vector<1x8x32xf32>,
    %c1_177 = arith.constant 1 : index
    %c0_178 = arith.constant 0 : index
    %c0_179 = arith.constant 0 : index
    %758 = vector.load %arg14[%c1_177, %c0_178, %c0_179] : memref<3x8x32xf32, #tpu.memory_space<vmem>>, vector<1x8x32xf32>
    %759 = vector.shape_cast %758 : vector<1x8x32xf32> to vector<8x32xf32>
    %760 = vector.shape_cast %751 : vector<8x32xf32> to vector<1x8x32xf32>
    tpu.vector_store %arg14[%c1_177, %c0_178, %c0_179], %760 {strides = array<i32>} : memref<3x8x32xf32, #tpu.memory_space<vmem>>, vector<1x8x32xf32>,
    %c2_180 = arith.constant 2 : index
    %c0_181 = arith.constant 0 : index
    %c0_182 = arith.constant 0 : index
    %761 = vector.load %arg14[%c2_180, %c0_181, %c0_182] : memref<3x8x32xf32, #tpu.memory_space<vmem>>, vector<1x8x32xf32>
    %762 = vector.shape_cast %761 : vector<1x8x32xf32> to vector<8x32xf32>
    %763 = vector.shape_cast %753 : vector<8x32xf32> to vector<1x8x32xf32>
    tpu.vector_store %arg14[%c2_180, %c0_181, %c0_182], %763 {strides = array<i32>} : memref<3x8x32xf32, #tpu.memory_space<vmem>>, vector<1x8x32xf32>,
    %c0_183 = arith.constant 0 : index
    %c0_184 = arith.constant 0 : index
    %c0_185 = arith.constant 0 : index
    %764 = vector.load %arg15[%c0_183, %c0_184, %c0_185] : memref<3x8x32xf32, #tpu.memory_space<vmem>>, vector<1x8x32xf32>
    %765 = vector.shape_cast %764 : vector<1x8x32xf32> to vector<8x32xf32>
    %766 = vector.shape_cast %750 : vector<8x32xf32> to vector<1x8x32xf32>
    tpu.vector_store %arg15[%c0_183, %c0_184, %c0_185], %766 {strides = array<i32>} : memref<3x8x32xf32, #tpu.memory_space<vmem>>, vector<1x8x32xf32>,
    %c1_186 = arith.constant 1 : index
    %c0_187 = arith.constant 0 : index
    %c0_188 = arith.constant 0 : index
    %767 = vector.load %arg15[%c1_186, %c0_187, %c0_188] : memref<3x8x32xf32, #tpu.memory_space<vmem>>, vector<1x8x32xf32>
    %768 = vector.shape_cast %767 : vector<1x8x32xf32> to vector<8x32xf32>
    %769 = vector.shape_cast %752 : vector<8x32xf32> to vector<1x8x32xf32>
    tpu.vector_store %arg15[%c1_186, %c0_187, %c0_188], %769 {strides = array<i32>} : memref<3x8x32xf32, #tpu.memory_space<vmem>>, vector<1x8x32xf32>,
    %c2_189 = arith.constant 2 : index
    %c0_190 = arith.constant 0 : index
    %c0_191 = arith.constant 0 : index
    %770 = vector.load %arg15[%c2_189, %c0_190, %c0_191] : memref<3x8x32xf32, #tpu.memory_space<vmem>>, vector<1x8x32xf32>
    %771 = vector.shape_cast %770 : vector<1x8x32xf32> to vector<8x32xf32>
    %772 = vector.shape_cast %754 : vector<8x32xf32> to vector<1x8x32xf32>
    tpu.vector_store %arg15[%c2_189, %c0_190, %c0_191], %772 {strides = array<i32>} : memref<3x8x32xf32, #tpu.memory_space<vmem>>, vector<1x8x32xf32>,
    %c0_192 = arith.constant 0 : index
    %c0_193 = arith.constant 0 : index
    %773 = vector.load %arg11[%c0_192, %c0_193] : memref<32x4xf32, #tpu.memory_space<vmem>>, vector<32x4xf32>
    %cst_194 = arith.constant dense<0.000000e+00> : vector<8x4xf32>
    %774 = tpu.matmul %753, %773, %cst_194 {dimension_numbers = #tpu.dot_dimension_numbers<[1], [0], [0], [1], [0, 0, 1, 1], [], []>} : vector<8x32xf32>, vector<32x4xf32>, vector<8x4xf32> -> vector<8x4xf32>
    %c0_195 = arith.constant 0 : index
    %c0_196 = arith.constant 0 : index
    %775 = vector.load %arg12[%c0_195, %c0_196] : memref<1x4xf32, #tpu.memory_space<vmem>>, vector<1x4xf32>
    %776 = vector.broadcast %775 : vector<1x4xf32> to vector<8x4xf32>
    %777 = arith.addf %774, %776 : vector<8x4xf32>
    %c0_197 = arith.constant 0 : index
    %c0_198 = arith.constant 0 : index
    %778 = vector.load %arg13[%c0_197, %c0_198] : memref<8x4xf32, #tpu.memory_space<vmem>>, vector<8x4xf32>
    tpu.vector_store %arg13[%c0_197, %c0_198], %777 {strides = array<i32>} : memref<8x4xf32, #tpu.memory_space<vmem>>, vector<8x4xf32>,
    return
  }
  func.func @transform_0(%arg0: i32) -> (i32, i32) {
    %c0_i32 = arith.constant 0 : i32
    %c0_i32_0 = arith.constant 0 : i32
    %c0_i32_1 = arith.constant 0 : i32
    return %c0_i32, %c0_i32_0 : i32, i32
  }
  func.func @transform_1(%arg0: i32) -> (i32, i32) {
    %c0_i32 = arith.constant 0 : i32
    %c0_i32_0 = arith.constant 0 : i32
    %c0_i32_1 = arith.constant 0 : i32
    return %c0_i32, %c0_i32_0 : i32, i32
  }
  func.func @transform_2(%arg0: i32) -> (i32, i32) {
    %c0_i32 = arith.constant 0 : i32
    %c0_i32_0 = arith.constant 0 : i32
    %c0_i32_1 = arith.constant 0 : i32
    return %c0_i32, %c0_i32_0 : i32, i32
  }
  func.func @transform_3(%arg0: i32) -> (i32, i32) {
    %c0_i32 = arith.constant 0 : i32
    %c0_i32_0 = arith.constant 0 : i32
    %c0_i32_1 = arith.constant 0 : i32
    return %c0_i32, %c0_i32_0 : i32, i32
  }
  func.func @transform_4(%arg0: i32) -> (i32, i32) {
    %c0_i32 = arith.constant 0 : i32
    %c0_i32_0 = arith.constant 0 : i32
    %c0_i32_1 = arith.constant 0 : i32
    return %c0_i32, %c0_i32_0 : i32, i32
  }
  func.func @transform_5(%arg0: i32) -> (i32, i32) {
    %c0_i32 = arith.constant 0 : i32
    %c0_i32_0 = arith.constant 0 : i32
    %c0_i32_1 = arith.constant 0 : i32
    return %c0_i32, %c0_i32_0 : i32, i32
  }
  func.func @transform_6(%arg0: i32) -> (i32, i32) {
    %c0_i32 = arith.constant 0 : i32
    %c0_i32_0 = arith.constant 0 : i32
    %c0_i32_1 = arith.constant 0 : i32
    return %c0_i32, %c0_i32_0 : i32, i32
  }
  func.func @transform_7(%arg0: i32) -> (i32, i32) {
    %c0_i32 = arith.constant 0 : i32
    %c0_i32_0 = arith.constant 0 : i32
    %c0_i32_1 = arith.constant 0 : i32
    return %c0_i32, %c0_i32_0 : i32, i32
  }
  func.func @transform_8(%arg0: i32) -> (i32, i32, i32) {
    %c0_i32 = arith.constant 0 : i32
    %c0_i32_0 = arith.constant 0 : i32
    %c0_i32_1 = arith.constant 0 : i32
    %c0_i32_2 = arith.constant 0 : i32
    return %c0_i32, %c0_i32_0, %c0_i32_1 : i32, i32, i32
  }
  func.func @transform_9(%arg0: i32) -> (i32, i32, i32) {
    %c0_i32 = arith.constant 0 : i32
    %c0_i32_0 = arith.constant 0 : i32
    %c0_i32_1 = arith.constant 0 : i32
    %c0_i32_2 = arith.constant 0 : i32
    return %c0_i32, %c0_i32_0, %c0_i32_1 : i32, i32, i32
  }
  func.func @transform_10(%arg0: i32) -> (i32, i32) {
    %c0_i32 = arith.constant 0 : i32
    %c0_i32_0 = arith.constant 0 : i32
    %c0_i32_1 = arith.constant 0 : i32
    return %c0_i32, %c0_i32_0 : i32, i32
  }
  func.func @transform_11(%arg0: i32) -> (i32, i32) {
    %c0_i32 = arith.constant 0 : i32
    %c0_i32_0 = arith.constant 0 : i32
    %c0_i32_1 = arith.constant 0 : i32
    return %c0_i32, %c0_i32_0 : i32, i32
  }
  func.func @transform_12(%arg0: i32) -> (i32, i32) {
    %c0_i32 = arith.constant 0 : i32
    %c0_i32_0 = arith.constant 0 : i32
    %c0_i32_1 = arith.constant 0 : i32
    return %c0_i32, %c0_i32_0 : i32, i32
  }
  func.func @transform_13(%arg0: i32) -> (i32, i32, i32) {
    %c0_i32 = arith.constant 0 : i32
    %c0_i32_0 = arith.constant 0 : i32
    %c0_i32_1 = arith.constant 0 : i32
    %c0_i32_2 = arith.constant 0 : i32
    return %c0_i32, %c0_i32_0, %c0_i32_1 : i32, i32, i32
  }
  func.func @transform_14(%arg0: i32) -> (i32, i32, i32) {
    %c0_i32 = arith.constant 0 : i32
    %c0_i32_0 = arith.constant 0 : i32
    %c0_i32_1 = arith.constant 0 : i32
    %c0_i32_2 = arith.constant 0 : i32
    return %c0_i32, %c0_i32_0, %c0_i32_1 : i32, i32, i32
  }
}

</mosaic_0001>

<bundles_post_ra>
// kernel: tpu_custom_call.1
= control target key start
LH: loop header
LB: loop body
LE: loop exit
PB: predicated region body
PF: predicated region fallthrough
CT: control target
= control target key end

     0   :  { %20 = vsyncpa [#allocation4], 0  ;;  %s4996_s0 = inlined_call_operand.vmem [shape: f32[64,16], index: 0, kind: input, shape index: {}]   ;;  %s4997_s1 = inlined_call_operand.hbm [shape: f32[16,128], index: 1, kind: input, shape index: {}]   ;;  %s4998_s2 = inlined_call_operand.vmem [shape: f32[32,128], index: 2, kind: input, shape index: {}]   ;;  %s4999_s3 = inlined_call_operand.vmem [shape: f32[1,128], index: 3, kind: input, shape index: {}]   ;;  %s5000_s4 = inlined_call_operand.vmem [shape: f32[64,128], index: 4, kind: input, shape index: {}]   ;;  %s5001_s5 = inlined_call_operand.hbm [shape: f32[1,128], index: 5, kind: input, shape index: {}]   ;;  %s5002_s6 = inlined_call_operand.hbm [shape: f32[64,128], index: 6, kind: input, shape index: {}]   ;;  %s5003_s7 = inlined_call_operand.vmem [shape: f32[1,128], index: 7, kind: input, shape index: {}]   ;;  %s5004_s8 = inlined_call_operand.vmem [shape: f32[3,8,32], index: 8, kind: input, shape index: {}]   ;;  %s5005_s9 = inlined_call_operand.hbm [shape: f32[3,8,32], index: 9, kind: input, shape index: {}]   ;;  %s5006_s10 = inlined_call_operand.vmem [shape: f32[32,4], index: 10, kind: input, shape index: {}]   ;;  %s5007_s11 = inlined_call_operand.vmem [shape: f32[1,4], index: 11, kind: input, shape index: {}]   ;;  %s5008_s12 = inlined_call_operand.vmem [shape: f32[8,4], index: 12, kind: output, shape index: {0}]   ;;  %s5009_s13 = inlined_call_operand.hbm [shape: f32[3,8,32], index: 13, kind: output, shape index: {1}]   ;;  %s5010_s14 = inlined_call_operand.hbm [shape: f32[3,8,32], index: 14, kind: output, shape index: {2}]  }
   0x1   :  { %21 = vsyncpa [#allocation7], 0 }
   0x2   :  { %22 = vsyncpa [#allocation10], 0 }
   0x3   :  { %23 = vsyncpa [#allocation5], 0 }
   0x4   :  { %24 = vsyncpa [#allocation13], 0  ;;  %s3982_s29 = smov [#allocation6]   ;;  %s3983_s15 = smov [#allocation3]  }
   0x5   :  { %s51_s30 = sshll.u32 %s3982_s29, 4  ;;  %s32_s16 = sshll.u32 %s3983_s15, 4  ;;  %s52_s30 = int_to_ptr.vmem [resolvable:$true] %s51_s30  ;;  %s33_s16 = int_to_ptr.vmem [resolvable:$true] %s32_s16 }
   0x6   :  { %s3860_s17 = scalar_lea.vmem %s52_s30, 16  ;;  %s3864_s18 = scalar_lea.vmem %s52_s30, 32 }
   0x7   :  { %p3861_p0 = scmp.ne.s32.totalorder %s52_s30, %s3860_s17  ;;  %p3865_p1 = scmp.lt.s32.totalorder %s52_s30, %s52_s30 }
   0x8   :  { %p3866_p2 = scmp.lt.s32.totalorder %s3864_s18, %s3860_s17 }
   0xa   :  { %p3867_p3 = por %p3866_p2, %p3865_p1 }
   0xc   :  { %p3868_p4 = pnand %p3867_p3, %p3861_p0 }
   0xe   :  { %3871 = shalt.err (!%p3868_p4)
}
   0xf   :  { %54 = dma.hbm_to_vmem [thread:$0]  %s5001_s5, 16, %s52_s30, [#allocation7]  }
  0x10   :  { %s3880_s21 = scalar_lea.vmem %s33_s16, 256  ;;  %p3885_p6 = scmp.lt.s32.totalorder %s33_s16, %s33_s16 }
  0x11   :  { %p3881_p5 = scmp.ne.s32.totalorder %s33_s16, %s3880_s21  ;;  %p3886_p7 = scmp.lt.s32.totalorder %s3880_s21, %s3880_s21 }
  0x13   :  { %p3887_p8 = por %p3886_p7, %p3885_p6 }
  0x15   :  { %p3888_p9 = pnand %p3887_p8, %p3881_p5 }
  0x17   :  { %3891 = shalt.err (!%p3888_p9)
}
  0x18   :  { %s3984_s22 = smov 128   ;;  %s3985_s23 = smov 8  }
  0x19   :  { %38 = dma.hbm_to_vmem [thread:$0]  %s4997_s1, 256, %s33_s16, [#allocation4], %s3984_s22, %s3984_s22, %s3985_s23  }
  0x1a   :  { %s3986_s26 = smov [#allocation8]   ;;  %s3987_s28 = smov [#allocation9]  }
  0x1b   :  { %s60_s27 = sshll.u32 %s3986_s26, 4  ;;  %s76_s5 = sshll.u32 %s3987_s28, 4  ;;  %s61_s27 = int_to_ptr.vmem [resolvable:$true] %s60_s27  ;;  %s77_s5 = int_to_ptr.vmem [resolvable:$true] %s76_s5 }
  0x1c   :  { %s3900_s29 = scalar_lea.vmem %s61_s27, 1024  ;;  %p3905_p11 = scmp.lt.s32.totalorder %s61_s27, %s61_s27 }
  0x1d   :  { %p3901_p10 = scmp.ne.s32.totalorder %s61_s27, %s3900_s29  ;;  %p3906_p12 = scmp.lt.s32.totalorder %s3900_s29, %s3900_s29 }
  0x1f   :  { %p3907_p13 = por %p3906_p12, %p3905_p11 }
  0x21   :  { %p3908_p0 = pnand %p3907_p13, %p3901_p10 }
  0x23   :  { %3911 = shalt.err (!%p3908_p0)
}
  0x24   :  { %66 = dma.hbm_to_vmem [thread:$0]  %s5002_s6, 1024, %s61_s27, [#allocation7], %s3984_s22, %s3984_s22, %s3985_s23  }
  0x25   :  { %s3920_s1 = scalar_lea.vmem %s77_s5, 384  ;;  %p3925_p2 = scmp.lt.s32.totalorder %s77_s5, %s77_s5 }
  0x26   :  { %p3921_p1 = scmp.ne.s32.totalorder %s77_s5, %s3920_s1  ;;  %p3926_p3 = scmp.lt.s32.totalorder %s3920_s1, %s3920_s1 }
  0x28   :  { %p3927_p4 = por %p3926_p3, %p3925_p2 }
  0x2a   :  { %p3928_p5 = pnand %p3927_p4, %p3921_p1 }
  0x2c   :  { %3931 = shalt.err (!%p3928_p5)
}
  0x2d   :  { %82 = dma.hbm_to_vmem [thread:$0]  %s5005_s9, 384, %s77_s5, [#allocation10], %s3984_s22, %s3984_s22, %s3985_s23  }
  0x2e   :  { %3972 = dma.done.wait [#allocation4], 256  }
  0x2f   :  { %3973 = vsyncadd [#allocation4], 4294967040 }
  0x30   :  { %3974 = dma.done.wait [#allocation7], 1040  }
  0x31   :  { %3975 = vsyncadd [#allocation7], 4294966256 }
  0x32   :  { %3976 = dma.done.wait [#allocation10], 384  }
  0x33   :  { %3977 = vsyncadd [#allocation10], 4294966912  ;;  %v3988_v0 = vmov 0.0   ;;  %vm3989_vm0 = vmmov 0   ;;  %v108_v1 = vld [vmem:[#allocation3 + $0x8] sm:$0xff]  ;;  %v4097_v2 = vld [vmem:[%s4998_s2 + $0x18] sm:$0xff] }
  0x34   :  { %3221 = vmatprep.subr.mxu1 %v3988_v0  ;;  %3229 = vmatprep.mubr.msk.f32.mxu1 %vm3989_vm0, %v3988_v0  ;;  %v107_v3 = vld [vmem:[#allocation3] sm:$0xff]  ;;  %v4103_v4 = vld [vmem:[%s4998_s2 + $0x10] sm:$0xff]  ;;  %vm116_vm1 = vcmask 130048   ;;  %v100_v6 = vld [vmem:[%s4996_s0 + $0x8] sm:$0xff]  ;;  %vm287_vm2 = vcmask 261120   ;;  %s3990_s16 = smov 64  }
  0x35   :  { %3205 = vmatprep.subr.mxu0 %v108_v1  ;;  %3222 = vmatpush3.msra.mxu1 %v4097_v2  ;;  %v99_v5 = vld [vmem:[%s4996_s0] sm:$0xff]  ;;  %v4116_v7 = vld [vmem:[%s4998_s2 + $0x8] sm:$0xff]  ;;  %v277_v18 = vld [vmem:[#allocation9] sm:$0xff]  ;;  %s3991_s17 = smov 32   ;;  %vm504_vm3 = vcmask 523264   ;;  %s3992_s29 = smov 96  }
  0x36   :  { %3206 = vmatpush3.msra.mxu0 %v108_v1  ;;  %3223 = vmatprep.subr.mxu1 %v3988_v0  ;;  %v4124_v8 = vld [vmem:[%s4998_s2] sm:$0xff]  ;;  %v4162_v29 = vld [vmem:[%s5000_s4 + $0x38] sm:$0xff]  ;;  %v101_v30 = vld [vmem:[%s4996_s0 + $0x10] sm:$0xff]  ;;  %s3994_s30 = smov [#allocation12]  }
  0x37   :  { %3207 = vmatprep.subr.mxu0 %v107_v3  ;;  %3224 = vmatpush3.msra.mxu1 %v4103_v4  ;;  %v276_v9 = vld [vmem:[%s5004_s8] sm:$0xff]  ;;  %v4170_v31 = vld [vmem:[%s5000_s4 + $0x30] sm:$0xff]  ;;  %v102_v32 = vld [vmem:[%s4996_s0 + $0x18] sm:$0xff]  ;;  %s2923_s15 = sshll.u32 %s3994_s30, 4  ;;  %s2924_s15 = int_to_ptr.vmem [resolvable:$true] %s2923_s15 }
  0x38   :  { %3208 = vmatpush3.msra.mxu0 %v107_v3  ;;  %3209 = vmatprep.mubr.msk.f32.mxu0 %vm116_vm1, %v99_v5  ;;  %v4150_v11 = vld [vmem:[%s4999_s3] ss:$0 sm:$0xff]  ;;  %v4185_v34 = vld [vmem:[%s5000_s4 + $0x28] sm:$0xff]  ;;  %v105_v37 = vld [vmem:[%s4996_s0 + $0x30] sm:$0xff] }
  0x39   :  { %3225 = vmatprep.subr.mxu1 %v3988_v0  ;;  %3210 = vmatmul.mubr.msk.f32.vlgmr.msra.gmra.mxu0 %vm116_vm1, %v100_v6  ;;  %v103_v33 = vld [vmem:[%s4996_s0 + $0x20] sm:$0xff]  ;;  %v104_v35 = vld [vmem:[%s4996_s0 + $0x28] sm:$0xff]  ;;  %v4207_v38 = vld [vmem:[%s5000_s4 + $0x18] sm:$0xff] }
  0x3a   :  { %3226 = vmatpush3.msra.mxu1 %v4116_v7  ;;  %3243 = vmatprep.subr.mxu0 %v3988_v0  ;;  %v4196_v36 = vld [vmem:[%s5000_s4 + $0x20] sm:$0xff]  ;;  %v106_v39 = vld [vmem:[%s4996_s0 + $0x38] sm:$0xff]  ;;  %v4218_v40 = vld [vmem:[%s5000_s4 + $0x10] sm:$0xff] }
  0x3b   :  { %3227 = vmatprep.subr.mxu1 %v3988_v0  ;;  %3244 = vmatpush3.msra.mxu0 %v4162_v29  ;;  %v4226_v42 = vld [vmem:[%s5000_s4 + $0x8] sm:$0xff]  ;;  %v4242_v44 = vld [vmem:[%s5000_s4] sm:$0xff]  ;;  %v4292_v57 = vld [vmem:[#allocation6] ss:$0 sm:$0xff] }
  0x3c   :  { %3228 = vmatpush3.msra.mxu1 %v4124_v8  ;;  %3212 = vmatprep.mubr.msk.f32.mxu0 %vm116_vm1, %v101_v30  ;;  %v2952_v43 = vld [vmem:[%s5004_s8 + $0x8] sm:$0xff]  ;;  %v281_v5 = vld [vmem:[#allocation9 + $0x8] sm:$0xff] }
  0x3d   :  { %3230 = vmatmul.mubr.msk.f32.vlgmr.msra.gmra.mxu1 %vm287_vm2, %v276_v9  ;;  %3232 = vmatprep.subr.mxu1 %v3988_v0 }
  0x3e   :  { %3233 = vmatpush3.msra.mxu1 %v4097_v2  ;;  %3240 = vmatprep.mubr.msk.f32.mxu1 %vm3989_vm0, %v3988_v0 }
  0x3f   :  { %3234 = vmatprep.subr.mxu1 %v3988_v0  ;;  %3245 = vmatprep.subr.mxu0 %v3988_v0 }
  0x40   :  { %3235 = vmatpush3.msra.mxu1 %v4103_v4  ;;  %3213 = vmatmul.mubr.msk.f32.gmra.mxu0 %vm116_vm1, %v102_v32 }
  0x41   :  { %3236 = vmatprep.subr.mxu1 %v3988_v0  ;;  %3246 = vmatpush3.msra.mxu0 %v4170_v31 }
  0x42   :  { %3237 = vmatpush3.msra.mxu1 %v4116_v7  ;;  %3215 = vmatprep.mubr.msk.f32.mxu0 %vm116_vm1, %v103_v33 }
  0x43   :  { %3238 = vmatprep.subr.mxu1 %v3988_v0  ;;  %3247 = vmatprep.subr.mxu0 %v3988_v0 }
  0x44   :  { %3239 = vmatpush3.msra.mxu1 %v4124_v8  ;;  %3248 = vmatpush3.msra.mxu0 %v4185_v34 }
  0x45   :  { %3262 = vmatprep.subr.mxu1 %v3988_v0  ;;  %3249 = vmatprep.subr.mxu0 %v3988_v0 }
  0x46   :  { %3216 = vmatmul.mubr.msk.f32.gmra.mxu0 %vm116_vm1, %v104_v35 }
  0x47   :  { %3250 = vmatpush3.msra.mxu0 %v4196_v36  ;;  %3218 = vmatprep.mubr.msk.f32.mxu0 %vm116_vm1, %v105_v37 }
  0x48   :  { %3251 = vmatprep.subr.mxu0 %v3988_v0 }
  0x49   :  { %3252 = vmatpush3.msra.mxu0 %v4207_v38 }
  0x4a   :  { %3253 = vmatprep.subr.mxu0 %v3988_v0  ;;  %3219 = vmatmul.mubr.msk.f32.gmra.mxu0 %vm116_vm1, %v106_v39  ;;  %v2953_v39 = vld [vmem:[%s5004_s8 + $0x10] sm:$0xff] }
  0x4b   :  { %3254 = vmatpush3.msra.mxu0 %v4218_v40  ;;  %3259 = vmatprep.mubr.msk.f32.mxu0 %vm3989_vm0, %v3988_v0 }
  0x4c   :  { %3255 = vmatprep.subr.mxu0 %v3988_v0 }
  0x4d   :  { %3256 = vmatpush3.msra.mxu0 %v4226_v42 }
  0x4e   :  { %3257 = vmatprep.subr.mxu0 %v3988_v0 }
  0x4f   :  { %3258 = vmatpush3.msra.mxu0 %v4242_v44 }
  0x50   :  { %3273 = vmatprep.subr.mxu0 %v3988_v0 }
  0xf9   :  { %v4145_v10 = vpop.f32.mrf.mxu0 }
  0xfa   :  { %v213_v56 = vadd.f32 %v4145_v10, %v4150_v11 }
  0xfb   :  { %v207_v12 = vpop.f32.mrf.mxu0 }
  0xfc   :  { %v208_v13 = vadd.f32 %v4150_v11, %v207_v12 }
  0xfd   :  { %v357_v14 = vpop.f32.mrf.mxu1 }
  0xfe   :  { %v361_v15 = vadd.f32 %v357_v14, %v208_v13 }
  0xff   :  { %v3231_v16 = vpop.f32.mrf.mxu1 }
 0x100   :  { %3637 = vtanh.f32 %v361_v15  ;;  %v2955_v19 = vmul.f32 -1.442695, %v361_v15  ;;  %v4278_v50 = vpop.f32.mrf.mxu0 }
 0x102   :  { %3639 = vpow2.f32 %v2955_v19  ;;  %v4280_v51 = vpop.f32.mrf.mxu0 }
 0x106   :  { %v4282_v52 = vpop.f32.mrf.mxu0 }
 0x108   :  { %v4284_v53 = vpop.f32.mrf.mxu0 }
 0x10a   :  { %v4286_v54 = vpop.f32.mrf.mxu0 }
 0x10c   :  { %v4288_v55 = vpop.f32.mrf.mxu0 }
 0x10d   :  { %v3638_v17 = vpop.eup %3637 }
 0x10e   :  { %375 = vrot.lane.b32.xlu0 %v3638_v17, %s3990_s16 }
 0x10f   :  { %v3640_v20 = vpop.eup %3639 }
 0x110   :  { %v365_v21 = vadd.f32 1.0, %v3640_v20 }
 0x112   :  { %370 = vrot.lane.b32.xlu0 %v277_v18, %s3991_s17  ;;  %3641 = vrcp.f32 %v365_v21 }
 0x11f   :  { %v3642_v22 = vpop.eup %3641 }
 0x180   :  { %v376_v23 = vpop.permute.xlu0 %375 }
 0x181   :  { %v378_v24 = vmul.f32 %v3642_v22, %v376_v23 }
 0x183   :  { %380 = vrot.lane.b32.xlu1 %v378_v24, %s3991_s17 }
 0x184   :  { %v371_v25 = vpop.permute.xlu0 %370 }
 0x185   :  { %v373_v26 = vmul.f32 %v3642_v22, %v371_v25 }
 0x1f5   :  { %v381_v27 = vpop.permute.xlu1 %380 }
 0x1f6   :  { %v4156_v28 = vadd.f32 %v381_v27, %v373_v26 }
 0x1f8   :  { %3643 = vtanh.f32 %v4156_v28 }
 0x205   :  { %v3644_v41 = vpop.eup %3643 }
 0x206   :  { %386 = vrot.lane.b32.xlu1 %v3644_v41, %s3990_s16  ;;  %v4316_v41 = vld [vmem:[#allocation8 + $0x38] sm:$0xff] }
 0x20a   :  { %494 = vrot.lane.b32.xlu1 %v2952_v43, %s3991_s17 }
 0x278   :  { %v387_v45 = vpop.permute.xlu1 %386 }
 0x279   :  { %v389_v46 = vmul.f32 %v3642_v22, %v387_v45  ;;  %v4319_v45 = vld [vmem:[#allocation8 + $0x30] sm:$0xff] }
 0x27b   :  { %393 = vrot.lane.b32.xlu0 %v389_v46, %s3991_s17  ;;  %v4325_v46 = vld [vmem:[#allocation8 + $0x28] sm:$0xff] }
 0x27c   :  { %v495_v47 = vpop.permute.xlu1 %494 }
 0x2ed   :  { %v394_v48 = vpop.permute.xlu0 %393 }
 0x2ee   :  { %v497_v49 = vsel %vm287_vm2, %v394_v48, %v495_v47  ;;  %3241 = vmatmul.mubr.msk.f32.vlgmr.msra.gmra.mxu1 %vm287_vm2, %v394_v48 }
 0x2ef   :  { %3260 = vmatmul.mubr.msk.f32.vlgmr.msra.gmra.mxu0 %vm504_vm3, %v497_v49  ;;  %3263 = vmatpush3.msra.mxu1 %v4097_v2  ;;  %v4330_v49 = vld [vmem:[#allocation8 + $0x20] sm:$0xff] }
 0x2f0   :  { %3274 = vmatpush3.msra.mxu0 %v4162_v29  ;;  %3264 = vmatprep.subr.mxu1 %v3988_v0 }
 0x2f1   :  { %3275 = vmatprep.subr.mxu0 %v3988_v0  ;;  %3265 = vmatpush3.msra.mxu1 %v4103_v4 }
 0x2f2   :  { %3276 = vmatpush3.msra.mxu0 %v4170_v31  ;;  %3266 = vmatprep.subr.mxu1 %v3988_v0 }
 0x2f3   :  { %3277 = vmatprep.subr.mxu0 %v3988_v0  ;;  %3267 = vmatpush3.msra.mxu1 %v4116_v7 }
 0x2f4   :  { %3278 = vmatpush3.msra.mxu0 %v4185_v34  ;;  %3268 = vmatprep.subr.mxu1 %v3988_v0 }
 0x2f5   :  { %3279 = vmatprep.subr.mxu0 %v3988_v0  ;;  %3269 = vmatpush3.msra.mxu1 %v4124_v8 }
 0x2f6   :  { %3280 = vmatpush3.msra.mxu0 %v4196_v36  ;;  %3270 = vmatprep.mubr.msk.f32.mxu1 %vm3989_vm0, %v3988_v0 }
 0x2f7   :  { %3281 = vmatprep.subr.mxu0 %v3988_v0  ;;  %3292 = vmatprep.subr.mxu1 %v3988_v0 }
 0x2f8   :  { %3282 = vmatpush3.msra.mxu0 %v4207_v38  ;;  %3289 = vmatprep.mubr.msk.f32.mxu0 %vm3989_vm0, %v3988_v0 }
 0x2f9   :  { %3283 = vmatprep.subr.mxu0 %v3988_v0 }
 0x2fa   :  { %3284 = vmatpush3.msra.mxu0 %v4218_v40 }
 0x2fb   :  { %3285 = vmatprep.subr.mxu0 %v3988_v0 }
 0x2fc   :  { %3286 = vmatpush3.msra.mxu0 %v4226_v42 }
 0x2fd   :  { %3287 = vmatprep.subr.mxu0 %v3988_v0 }
 0x2fe   :  { %3288 = vmatpush3.msra.mxu0 %v4242_v44 }
 0x2ff   :  { %3311 = vmatprep.subr.mxu0 %v3988_v0 }
 0x3ae   :  { %v463_v58 = vpop.f32.mrf.mxu1 }
 0x3af   :  { %v467_v59 = vadd.f32 %v463_v58, %v213_v56  ;;  %v574_v60 = vpop.f32.mrf.mxu0  ;;  %v4335_v56 = vld [vmem:[#allocation8 + $0x18] sm:$0xff]  ;;  %v4341_v58 = vld [vmem:[#allocation8 + $0x10] sm:$0xff] }
 0x3b0   :  { %v575_v61 = vadd.f32 %v4292_v57, %v574_v60  ;;  %v3242_v62 = vpop.f32.mrf.mxu1 }
 0x3b1   :  { %3645 = vtanh.f32 %v467_v59  ;;  %v3261_v63 = vpop.f32.mrf.mxu0  ;;  %v2957_v6 = vmul.f32 -1.442695, %v467_v59  ;;  %v4347_v59 = vld [vmem:[#allocation8 + $0x8] sm:$0xff] }
 0x3b2   :  { %3647 = vtanh.f32 %v575_v61  ;;  %v2960_v9 = vmul.f32 -1.442695, %v575_v61  ;;  %v4353_v61 = vld [vmem:[#allocation8] sm:$0xff] }
 0x3b3   :  { %3649 = vpow2.f32 %v2957_v6 }
 0x3b4   :  { %3651 = vpow2.f32 %v2960_v9 }
 0x3be   :  { %v3646_v1 = vpop.eup %3645 }
 0x3bf   :  { %v3648_v3 = vpop.eup %3647  ;;  %477 = vrot.lane.b32.xlu0 %v3646_v1, %s3990_s16  ;;  %v218_v1 = vadd.f32 %v4150_v11, %v4280_v51 }
 0x3c0   :  { %591 = vrot.lane.b32.xlu1 %v3648_v3, %s3990_s16  ;;  %v3650_v10 = vpop.eup %3649 }
 0x3c1   :  { %v471_v12 = vadd.f32 1.0, %v3650_v10  ;;  %v3652_v13 = vpop.eup %3651 }
 0x3c2   :  { %v581_v14 = vadd.f32 1.0, %v3652_v13  ;;  %v4389_v13 = vld [vmem:[%s5003_s7] ss:$0 sm:$0xff] }
 0x3c3   :  { %3653 = vrcp.f32 %v471_v12 }
 0x3c4   :  { %586 = vrot.lane.b32.xlu1 %v281_v5, %s3991_s17  ;;  %3655 = vrcp.f32 %v581_v14 }
 0x3d0   :  { %v3654_v15 = vpop.eup %3653 }
 0x3d1   :  { %v3656_v19 = vpop.eup %3655  ;;  %v475_v21 = vmul.f32 %v3654_v15, %v4156_v28 }
 0x431   :  { %v478_v16 = vpop.permute.xlu0 %477 }
 0x432   :  { %v480_v17 = vmul.f32 %v3654_v15, %v478_v16  ;;  %v592_v18 = vpop.permute.xlu1 %591 }
 0x433   :  { %v594_v20 = vmul.f32 %v3656_v19, %v592_v18 }
 0x434   :  { %482 = vrot.lane.b32.xlu0 %v480_v17, %s3991_s17 }
 0x436   :  { %v587_v22 = vpop.permute.xlu1 %586 }
 0x437   :  { %v589_v25 = vmul.f32 %v3656_v19, %v587_v22 }
 0x438   :  { %596 = vrot.lane.b32.xlu0 %v594_v20, %s3991_s17 }
 0x4a6   :  { %v483_v23 = vpop.permute.xlu0 %482 }
 0x4a7   :  { %v4301_v24 = vadd.f32 %v483_v23, %v475_v21 }
 0x4a9   :  { %3657 = vtanh.f32 %v4301_v24 }
 0x4aa   :  { %v597_v26 = vpop.permute.xlu0 %596 }
 0x4ab   :  { %v4304_v27 = vadd.f32 %v597_v26, %v589_v25 }
 0x4ad   :  { %3659 = vtanh.f32 %v4304_v27 }
 0x4b6   :  { %v3658_v30 = vpop.eup %3657 }
 0x4b7   :  { %488 = vrot.lane.b32.xlu1 %v3658_v30, %s3990_s16 }
 0x4ba   :  { %v3660_v32 = vpop.eup %3659 }
 0x4bb   :  { %602 = vrot.lane.b32.xlu0 %v3660_v32, %s3990_s16 }
 0x529   :  { %v489_v33 = vpop.permute.xlu1 %488 }
 0x52a   :  { %v491_v28 = vmul.f32 %v3654_v15, %v489_v33 }
 0x52c   :  { %609 = vrot.lane.b32.xlu1 %v491_v28, %s3991_s17 }
 0x52d   :  { %v603_v35 = vpop.permute.xlu0 %602 }
 0x52e   :  { %v605_v37 = vmul.f32 %v3656_v19, %v603_v35  ;;  %v285_v19 = vld [vmem:[#allocation9 + $0x10] sm:$0xff] }
 0x530   :  { %811 = vrot.lane.b32.xlu1 %v605_v37, %s3991_s17  ;;  %710 = vrot.lane.b32.xlu0 %v605_v37, %s3990_s16 }
 0x534   :  { %815 = vrot.lane.b32.xlu0 %v2953_v39, %s3991_s17 }
 0x59e   :  { %v610_v43 = vpop.permute.xlu1 %609 }
 0x59f   :  { %3271 = vmatmul.mubr.msk.f32.vlgmr.msra.gmra.mxu1 %vm287_vm2, %v610_v43 }
 0x5a0   :  { %3293 = vmatpush3.msra.mxu1 %v4316_v41  ;;  %3308 = vmatprep.mubr.msk.f32.mxu1 %vm3989_vm0, %v3988_v0 }
 0x5a1   :  { %3294 = vmatprep.subr.mxu1 %v3988_v0 }
 0x5a2   :  { %3295 = vmatpush3.msra.mxu1 %v4319_v45  ;;  %v711_v47 = vpop.permute.xlu0 %710  ;;  %v812_v62 = vpop.permute.xlu1 %811 }
 0x5a3   :  { %3296 = vmatprep.subr.mxu1 %v3988_v0  ;;  %v713_v48 = vsel %vm287_vm2, %v610_v43, %v711_v47 }
 0x5a4   :  { %3297 = vmatpush3.msra.mxu1 %v4325_v46  ;;  %3290 = vmatmul.mubr.msk.f32.vlgmr.msra.gmra.mxu0 %vm504_vm3, %v713_v48 }
 0x5a5   :  { %3298 = vmatprep.subr.mxu1 %v3988_v0  ;;  %3312 = vmatpush3.msra.mxu0 %v4097_v2 }
 0x5a6   :  { %3299 = vmatpush3.msra.mxu1 %v4330_v49  ;;  %3313 = vmatprep.subr.mxu0 %v3988_v0  ;;  %v816_v60 = vpop.permute.xlu0 %815 }
 0x5a7   :  { %3300 = vmatprep.subr.mxu1 %v3988_v0  ;;  %3314 = vmatpush3.msra.mxu0 %v4103_v4  ;;  %v818_v63 = vsel %vm287_vm2, %v812_v62, %v816_v60 }
 0x5a8   :  { %3301 = vmatpush3.msra.mxu1 %v4335_v56  ;;  %3315 = vmatprep.subr.mxu0 %v3988_v0 }
 0x5a9   :  { %3302 = vmatprep.subr.mxu1 %v3988_v0  ;;  %3316 = vmatpush3.msra.mxu0 %v4116_v7 }
 0x5aa   :  { %3303 = vmatpush3.msra.mxu1 %v4341_v58  ;;  %3317 = vmatprep.subr.mxu0 %v3988_v0 }
 0x5ab   :  { %3304 = vmatprep.subr.mxu1 %v3988_v0  ;;  %3318 = vmatpush3.msra.mxu0 %v4124_v8 }
 0x5ac   :  { %3305 = vmatpush3.msra.mxu1 %v4347_v59  ;;  %3319 = vmatprep.mubr.msk.f32.mxu0 %vm3989_vm0, %v3988_v0 }
 0x5ad   :  { %3306 = vmatprep.subr.mxu1 %v3988_v0  ;;  %3341 = vmatprep.subr.mxu0 %v3988_v0 }
 0x5ae   :  { %3307 = vmatpush3.msra.mxu1 %v4353_v61 }
 0x5af   :  { %3309 = vmatmul.mubr.msk.f32.vlgmr.msra.gmra.mxu1 %vm504_vm3, %v818_v63  ;;  %3322 = vmatprep.subr.mxu1 %v3988_v0 }
 0x5b0   :  { %3323 = vmatpush3.msra.mxu1 %v4162_v29  ;;  %3338 = vmatprep.mubr.msk.f32.mxu1 %vm3989_vm0, %v3988_v0 }
 0x5b1   :  { %3324 = vmatprep.subr.mxu1 %v3988_v0 }
 0x5b2   :  { %3325 = vmatpush3.msra.mxu1 %v4170_v31 }
 0x5b3   :  { %3326 = vmatprep.subr.mxu1 %v3988_v0 }
 0x5b4   :  { %3327 = vmatpush3.msra.mxu1 %v4185_v34 }
 0x5b5   :  { %3328 = vmatprep.subr.mxu1 %v3988_v0 }
 0x5b6   :  { %3329 = vmatpush3.msra.mxu1 %v4196_v36 }
 0x5b7   :  { %3330 = vmatprep.subr.mxu1 %v3988_v0 }
 0x5b8   :  { %3331 = vmatpush3.msra.mxu1 %v4207_v38 }
 0x5b9   :  { %3332 = vmatprep.subr.mxu1 %v3988_v0 }
 0x5ba   :  { %3333 = vmatpush3.msra.mxu1 %v4218_v40 }
 0x5bb   :  { %3334 = vmatprep.subr.mxu1 %v3988_v0 }
 0x5bc   :  { %3335 = vmatpush3.msra.mxu1 %v4226_v42 }
 0x5bd   :  { %3336 = vmatprep.subr.mxu1 %v3988_v0 }
 0x5be   :  { %3337 = vmatpush3.msra.mxu1 %v4242_v44 }
 0x5bf   :  { %3360 = vmatprep.subr.mxu1 %v3988_v0 }
 0x65f   :  { %v679_v3 = vpop.f32.mrf.mxu1 }
 0x660   :  { %v683_v5 = vadd.f32 %v679_v3, %v218_v1 }
 0x661   :  { %v3272_v6 = vpop.f32.mrf.mxu1 }
 0x662   :  { %3661 = vtanh.f32 %v683_v5  ;;  %v2962_v20 = vmul.f32 -1.442695, %v683_v5 }
 0x664   :  { %v783_v9 = vpop.f32.mrf.mxu0 }
 0x665   :  { %v784_v10 = vadd.f32 %v4292_v57, %v783_v9 }
 0x666   :  { %v3291_v12 = vpop.f32.mrf.mxu0 }
 0x667   :  { %3663 = vtanh.f32 %v784_v10  ;;  %v2964_v21 = vmul.f32 -1.442695, %v784_v10 }
 0x66f   :  { %v3662_v14 = vpop.eup %3661  ;;  %v894_v15 = vpop.f32.mrf.mxu1 }
 0x670   :  { %v895_v16 = vadd.f32 %v4389_v13, %v894_v15  ;;  %693 = vrot.lane.b32.xlu1 %v3662_v14, %s3990_s16 }
 0x671   :  { %v3310_v51 = vpop.f32.mrf.mxu1 }
 0x672   :  { %3665 = vtanh.f32 %v895_v16  ;;  %v2967_v22 = vmul.f32 -1.442695, %v895_v16 }
 0x673   :  { %3667 = vpow2.f32 %v2962_v20 }
 0x674   :  { %v3664_v17 = vpop.eup %3663  ;;  %3669 = vpow2.f32 %v2964_v21 }
 0x675   :  { %796 = vrot.lane.b32.xlu0 %v3664_v17, %s3990_s16  ;;  %3671 = vpow2.f32 %v2967_v22 }
 0x67f   :  { %v3666_v18 = vpop.eup %3665 }
 0x680   :  { %911 = vrot.lane.b32.xlu1 %v3666_v18, %s3990_s16  ;;  %v3668_v23 = vpop.eup %3667 }
 0x681   :  { %v687_v25 = vadd.f32 1.0, %v3668_v23  ;;  %v3670_v26 = vpop.eup %3669 }
 0x682   :  { %v790_v30 = vadd.f32 1.0, %v3670_v26  ;;  %v3672_v32 = vpop.eup %3671 }
 0x683   :  { %3673 = vrcp.f32 %v687_v25  ;;  %v901_v33 = vadd.f32 1.0, %v3672_v32 }
 0x684   :  { %906 = vrot.lane.b32.xlu1 %v285_v19, %s3991_s17  ;;  %3675 = vrcp.f32 %v790_v30 }
 0x685   :  { %3677 = vrcp.f32 %v901_v33  ;;  %v223_v33 = vadd.f32 %v4278_v50, %v4150_v11 }
 0x690   :  { %v3674_v28 = vpop.eup %3673 }
 0x691   :  { %v3676_v39 = vpop.eup %3675  ;;  %v691_v63 = vmul.f32 %v3674_v28, %v4301_v24 }
 0x692   :  { %v3678_v48 = vpop.eup %3677  ;;  %v794_v5 = vmul.f32 %v3676_v39, %v4304_v27 }
 0x6e2   :  { %v694_v35 = vpop.permute.xlu1 %693 }
 0x6e3   :  { %v696_v37 = vmul.f32 %v3674_v28, %v694_v35 }
 0x6e5   :  { %698 = vrot.lane.b32.xlu0 %v696_v37, %s3991_s17 }
 0x6e7   :  { %v797_v43 = vpop.permute.xlu0 %796 }
 0x6e8   :  { %v799_v47 = vmul.f32 %v3676_v39, %v797_v43 }
 0x6ea   :  { %801 = vrot.lane.b32.xlu0 %v799_v47, %s3991_s17 }
 0x6f2   :  { %v912_v60 = vpop.permute.xlu1 %911 }
 0x6f3   :  { %v914_v62 = vmul.f32 %v3678_v48, %v912_v60 }
 0x6f5   :  { %916 = vrot.lane.b32.xlu1 %v914_v62, %s3991_s17 }
 0x6f6   :  { %v907_v10 = vpop.permute.xlu1 %906 }
 0x6f7   :  { %v909_v12 = vmul.f32 %v3678_v48, %v907_v10 }
 0x757   :  { %v699_v1 = vpop.permute.xlu0 %698 }
 0x758   :  { %v4400_v3 = vadd.f32 %v699_v1, %v691_v63 }
 0x75a   :  { %3679 = vtanh.f32 %v4400_v3 }
 0x75c   :  { %v802_v6 = vpop.permute.xlu0 %801 }
 0x75d   :  { %v4404_v9 = vadd.f32 %v802_v6, %v794_v5 }
 0x75f   :  { %3681 = vtanh.f32 %v4404_v9 }
 0x767   :  { %v3680_v14 = vpop.eup %3679  ;;  %v917_v15 = vpop.permute.xlu1 %916 }
 0x768   :  { %v4407_v16 = vadd.f32 %v917_v15, %v909_v12  ;;  %704 = vrot.lane.b32.xlu0 %v3680_v14, %s3990_s16 }
 0x76a   :  { %3683 = vtanh.f32 %v4407_v16 }
 0x76c   :  { %v3682_v24 = vpop.eup %3681 }
 0x76d   :  { %807 = vrot.lane.b32.xlu1 %v3682_v24, %s3990_s16 }
 0x777   :  { %v3684_v51 = vpop.eup %3683 }
 0x778   :  { %922 = vrot.lane.b32.xlu0 %v3684_v51, %s3990_s16 }
 0x7da   :  { %v705_v27 = vpop.permute.xlu0 %704 }
 0x7db   :  { %v707_v17 = vmul.f32 %v3674_v28, %v705_v27 }
 0x7dd   :  { %929 = vrot.lane.b32.xlu1 %v707_v17, %s3991_s17 }
 0x7df   :  { %v808_v18 = vpop.permute.xlu1 %807 }
 0x7e0   :  { %v810_v19 = vmul.f32 %v3676_v39, %v808_v18 }
 0x7e2   :  { %1131 = vrot.lane.b32.xlu1 %v810_v19, %s3991_s17  ;;  %1030 = vrot.lane.b32.xlu0 %v810_v19, %s3990_s16 }
 0x7ea   :  { %v923_v20 = vpop.permute.xlu0 %922 }
 0x7eb   :  { %v925_v21 = vmul.f32 %v3678_v48, %v923_v20 }
 0x7ed   :  { %1135 = vrot.lane.b32.xlu0 %v925_v21, %s3990_s16 }
 0x84f   :  { %v930_v22 = vpop.permute.xlu1 %929 }
 0x850   :  { %3320 = vmatmul.mubr.msk.f32.vlgmr.msra.gmra.mxu0 %vm287_vm2, %v930_v22 }
 0x851   :  { %3342 = vmatpush3.msra.mxu0 %v4316_v41  ;;  %3357 = vmatprep.mubr.msk.f32.mxu0 %vm3989_vm0, %v3988_v0 }
 0x852   :  { %3343 = vmatprep.subr.mxu0 %v3988_v0 }
 0x853   :  { %3344 = vmatpush3.msra.mxu0 %v4319_v45 }
 0x854   :  { %v1031_v23 = vpop.permute.xlu0 %1030  ;;  %3345 = vmatprep.subr.mxu0 %v3988_v0  ;;  %v1132_v26 = vpop.permute.xlu1 %1131 }
 0x855   :  { %v1033_v25 = vsel %vm287_vm2, %v930_v22, %v1031_v23  ;;  %3346 = vmatpush3.msra.mxu0 %v4325_v46 }
 0x856   :  { %3339 = vmatmul.mubr.msk.f32.vlgmr.msra.gmra.mxu1 %vm504_vm3, %v1033_v25  ;;  %3347 = vmatprep.subr.mxu0 %v3988_v0 }
 0x857   :  { %3348 = vmatpush3.msra.mxu0 %v4330_v49  ;;  %3361 = vmatpush3.msra.mxu1 %v4097_v2 }
 0x858   :  { %3349 = vmatprep.subr.mxu0 %v3988_v0  ;;  %3362 = vmatprep.subr.mxu1 %v3988_v0 }
 0x859   :  { %3350 = vmatpush3.msra.mxu0 %v4335_v56  ;;  %3363 = vmatpush3.msra.mxu1 %v4103_v4 }
 0x85a   :  { %3351 = vmatprep.subr.mxu0 %v3988_v0  ;;  %3364 = vmatprep.subr.mxu1 %v3988_v0 }
 0x85b   :  { %3352 = vmatpush3.msra.mxu0 %v4341_v58  ;;  %3365 = vmatpush3.msra.mxu1 %v4116_v7 }
 0x85c   :  { %3353 = vmatprep.subr.mxu0 %v3988_v0  ;;  %3366 = vmatprep.subr.mxu1 %v3988_v0 }
 0x85d   :  { %3354 = vmatpush3.msra.mxu0 %v4347_v59  ;;  %3367 = vmatpush3.msra.mxu1 %v4124_v8 }
 0x85e   :  { %3355 = vmatprep.subr.mxu0 %v3988_v0  ;;  %3368 = vmatprep.mubr.msk.f32.mxu1 %vm3989_vm0, %v3988_v0 }
 0x85f   :  { %v1136_v30 = vpop.permute.xlu0 %1135  ;;  %3356 = vmatpush3.msra.mxu0 %v4353_v61  ;;  %3390 = vmatprep.subr.mxu1 %v3988_v0 }
 0x860   :  { %v1138_v32 = vsel %vm287_vm2, %v1132_v26, %v1136_v30  ;;  %3371 = vmatprep.subr.mxu0 %v3988_v0 }
 0x861   :  { %3358 = vmatmul.mubr.msk.f32.vlgmr.msra.gmra.mxu0 %vm504_vm3, %v1138_v32 }
 0x862   :  { %3372 = vmatpush3.msra.mxu0 %v4162_v29  ;;  %3387 = vmatprep.mubr.msk.f32.mxu0 %vm3989_vm0, %v3988_v0 }
 0x863   :  { %3373 = vmatprep.subr.mxu0 %v3988_v0 }
 0x864   :  { %3374 = vmatpush3.msra.mxu0 %v4170_v31 }
 0x865   :  { %3375 = vmatprep.subr.mxu0 %v3988_v0 }
 0x866   :  { %3376 = vmatpush3.msra.mxu0 %v4185_v34 }
 0x867   :  { %3377 = vmatprep.subr.mxu0 %v3988_v0 }
 0x868   :  { %3378 = vmatpush3.msra.mxu0 %v4196_v36 }
 0x869   :  { %3379 = vmatprep.subr.mxu0 %v3988_v0 }
 0x86a   :  { %3380 = vmatpush3.msra.mxu0 %v4207_v38 }
 0x86b   :  { %3381 = vmatprep.subr.mxu0 %v3988_v0 }
 0x86c   :  { %3382 = vmatpush3.msra.mxu0 %v4218_v40 }
 0x86d   :  { %3383 = vmatprep.subr.mxu0 %v3988_v0 }
 0x86e   :  { %3384 = vmatpush3.msra.mxu0 %v4226_v42 }
 0x86f   :  { %3385 = vmatprep.subr.mxu0 %v3988_v0 }
 0x870   :  { %3386 = vmatpush3.msra.mxu0 %v4242_v44 }
 0x871   :  { %3409 = vmatprep.subr.mxu0 %v3988_v0 }
 0x910   :  { %v999_v28 = vpop.f32.mrf.mxu0 }
 0x911   :  { %v1003_v35 = vadd.f32 %v999_v28, %v223_v33 }
 0x912   :  { %v3321_v37 = vpop.f32.mrf.mxu0 }
 0x913   :  { %3685 = vtanh.f32 %v1003_v35  ;;  %v2969_v5 = vmul.f32 -1.442695, %v1003_v35 }
 0x916   :  { %v1103_v39 = vpop.f32.mrf.mxu1 }
 0x917   :  { %v1104_v43 = vadd.f32 %v4292_v57, %v1103_v39 }
 0x918   :  { %v3340_v47 = vpop.f32.mrf.mxu1 }
 0x919   :  { %3687 = vtanh.f32 %v1104_v43  ;;  %v2971_v6 = vmul.f32 -1.442695, %v1104_v43 }
 0x920   :  { %v3686_v48 = vpop.eup %3685 }
 0x921   :  { %v1208_v60 = vpop.f32.mrf.mxu0  ;;  %1013 = vrot.lane.b32.xlu1 %v3686_v48, %s3990_s16 }
 0x922   :  { %v1209_v62 = vadd.f32 %v4389_v13, %v1208_v60 }
 0x923   :  { %v3359_v63 = vpop.f32.mrf.mxu0 }
 0x924   :  { %3689 = vtanh.f32 %v1209_v62  ;;  %v2973_v12 = vmul.f32 -1.442695, %v1209_v62 }
 0x925   :  { %3691 = vpow2.f32 %v2969_v5 }
 0x926   :  { %v3688_v1 = vpop.eup %3687  ;;  %3693 = vpow2.f32 %v2971_v6 }
 0x927   :  { %1116 = vrot.lane.b32.xlu0 %v3688_v1, %s3990_s16  ;;  %3695 = vpow2.f32 %v2973_v12 }
 0x931   :  { %v3690_v50 = vpop.eup %3689 }
 0x932   :  { %1221 = vrot.lane.b32.xlu1 %v3690_v50, %s3990_s16  ;;  %v3692_v10 = vpop.eup %3691 }
 0x933   :  { %v1007_v14 = vadd.f32 1.0, %v3692_v10  ;;  %v3694_v15 = vpop.eup %3693 }
 0x934   :  { %v1110_v24 = vadd.f32 1.0, %v3694_v15  ;;  %v3696_v51 = vpop.eup %3695 }
 0x935   :  { %3697 = vrcp.f32 %v1007_v14  ;;  %v1215_v17 = vadd.f32 1.0, %v3696_v51 }
 0x936   :  { %3699 = vrcp.f32 %v1110_v24 }
 0x937   :  { %3701 = vrcp.f32 %v1215_v17 }
 0x942   :  { %v3698_v27 = vpop.eup %3697 }
 0x943   :  { %v3700_v20 = vpop.eup %3699  ;;  %v1011_v30 = vmul.f32 %v3698_v27, %v4400_v3 }
 0x944   :  { %v3702_v23 = vpop.eup %3701  ;;  %v1114_v28 = vmul.f32 %v3700_v20, %v4404_v9 }
 0x945   :  { %v1219_v43 = vmul.f32 %v3702_v23, %v4407_v16 }
 0x993   :  { %v1014_v18 = vpop.permute.xlu1 %1013 }
 0x994   :  { %v1016_v19 = vmul.f32 %v3698_v27, %v1014_v18 }
 0x996   :  { %1018 = vrot.lane.b32.xlu0 %v1016_v19, %s3991_s17 }
 0x999   :  { %v1117_v21 = vpop.permute.xlu0 %1116 }
 0x99a   :  { %v1119_v22 = vmul.f32 %v3700_v20, %v1117_v21 }
 0x99c   :  { %1121 = vrot.lane.b32.xlu1 %v1119_v22, %s3991_s17 }
 0x9a4   :  { %v1222_v25 = vpop.permute.xlu1 %1221 }
 0x9a5   :  { %v1224_v26 = vmul.f32 %v3702_v23, %v1222_v25 }
 0x9a7   :  { %1226 = vrot.lane.b32.xlu0 %v1224_v26, %s3991_s17 }
 0xa08   :  { %v1019_v32 = vpop.permute.xlu0 %1018 }
 0xa09   :  { %v4479_v33 = vadd.f32 %v1019_v32, %v1011_v30 }
 0xa0b   :  { %3703 = vtanh.f32 %v4479_v33 }
 0xa0e   :  { %v1122_v35 = vpop.permute.xlu1 %1121 }
 0xa0f   :  { %v4483_v37 = vadd.f32 %v1122_v35, %v1114_v28 }
 0xa11   :  { %3705 = vtanh.f32 %v4483_v37 }
 0xa18   :  { %v3704_v39 = vpop.eup %3703 }
 0xa19   :  { %v1227_v47 = vpop.permute.xlu0 %1226  ;;  %1024 = vrot.lane.b32.xlu1 %v3704_v39, %s3990_s16 }
 0xa1a   :  { %v4488_v48 = vadd.f32 %v1227_v47, %v1219_v43 }
 0xa1c   :  { %3707 = vtanh.f32 %v4488_v48 }
 0xa1e   :  { %v3706_v3 = vpop.eup %3705 }
 0xa1f   :  { %1127 = vrot.lane.b32.xlu0 %v3706_v3, %s3990_s16 }
 0xa29   :  { %v3708_v60 = vpop.eup %3707 }
 0xa2a   :  { %1232 = vrot.lane.b32.xlu1 %v3708_v60, %s3990_s16 }
 0xa8b   :  { %v1025_v9 = vpop.permute.xlu1 %1024 }
 0xa8c   :  { %v1027_v62 = vmul.f32 %v3698_v27, %v1025_v9 }
 0xa8e   :  { %1239 = vrot.lane.b32.xlu0 %v1027_v62, %s3991_s17 }
 0xa91   :  { %v1128_v63 = vpop.permute.xlu0 %1127 }
 0xa92   :  { %v1130_v1 = vmul.f32 %v3700_v20, %v1128_v63 }
 0xa94   :  { %1441 = vrot.lane.b32.xlu0 %v1130_v1, %s3991_s17  ;;  %1340 = vrot.lane.b32.xlu1 %v1130_v1, %s3990_s16 }
 0xa9c   :  { %v1233_v16 = vpop.permute.xlu1 %1232 }
 0xa9d   :  { %v1235_v50 = vmul.f32 %v3702_v23, %v1233_v16 }
 0xa9f   :  { %1445 = vrot.lane.b32.xlu1 %v1235_v50, %s3990_s16 }
 0xb00   :  { %v1240_v5 = vpop.permute.xlu0 %1239 }
 0xb01   :  { %3369 = vmatmul.mubr.msk.f32.vlgmr.msra.gmra.mxu1 %vm287_vm2, %v1240_v5 }
 0xb02   :  { %3391 = vmatpush3.msra.mxu1 %v4316_v41  ;;  %3406 = vmatprep.mubr.msk.f32.mxu1 %vm3989_vm0, %v3988_v0 }
 0xb03   :  { %3392 = vmatprep.subr.mxu1 %v3988_v0 }
 0xb04   :  { %3393 = vmatpush3.msra.mxu1 %v4319_v45 }
 0xb05   :  { %3394 = vmatprep.subr.mxu1 %v3988_v0 }
 0xb06   :  { %v1341_v6 = vpop.permute.xlu1 %1340  ;;  %3395 = vmatpush3.msra.mxu1 %v4325_v46 }
 0xb07   :  { %v1343_v10 = vsel %vm287_vm2, %v1240_v5, %v1341_v6  ;;  %3396 = vmatprep.subr.mxu1 %v3988_v0 }
 0xb08   :  { %3388 = vmatmul.mubr.msk.f32.vlgmr.msra.gmra.mxu0 %vm504_vm3, %v1343_v10  ;;  %3397 = vmatpush3.msra.mxu1 %v4330_v49 }
 0xb09   :  { %3398 = vmatprep.subr.mxu1 %v3988_v0  ;;  %3410 = vmatpush3.msra.mxu0 %v4097_v2  ;;  %v1442_v2 = vpop.permute.xlu0 %1441 }
 0xb0a   :  { %3399 = vmatpush3.msra.mxu1 %v4335_v56  ;;  %3411 = vmatprep.subr.mxu0 %v3988_v0 }
 0xb0b   :  { %3400 = vmatprep.subr.mxu1 %v3988_v0  ;;  %3412 = vmatpush3.msra.mxu0 %v4103_v4 }
 0xb0c   :  { %3401 = vmatpush3.msra.mxu1 %v4341_v58  ;;  %3413 = vmatprep.subr.mxu0 %v3988_v0 }
 0xb0d   :  { %3402 = vmatprep.subr.mxu1 %v3988_v0  ;;  %3414 = vmatpush3.msra.mxu0 %v4116_v7 }
 0xb0e   :  { %3403 = vmatpush3.msra.mxu1 %v4347_v59  ;;  %3415 = vmatprep.subr.mxu0 %v3988_v0 }
 0xb0f   :  { %3404 = vmatprep.subr.mxu1 %v3988_v0  ;;  %3416 = vmatpush3.msra.mxu0 %v4124_v8  ;;  %v228_v8 = vadd.f32 %v4150_v11, %v4284_v53 }
 0xb10   :  { %3405 = vmatpush3.msra.mxu1 %v4353_v61  ;;  %3417 = vmatprep.mubr.msk.f32.mxu0 %vm3989_vm0, %v3988_v0 }
 0xb11   :  { %v1446_v4 = vpop.permute.xlu1 %1445  ;;  %3420 = vmatprep.subr.mxu1 %v3988_v0  ;;  %3439 = vmatprep.subr.mxu0 %v3988_v0 }
 0xb12   :  { %v1448_v7 = vsel %vm287_vm2, %v1442_v2, %v1446_v4 }
 0xb13   :  { %3407 = vmatmul.mubr.msk.f32.vlgmr.msra.gmra.mxu1 %vm504_vm3, %v1448_v7 }
 0xb14   :  { %3421 = vmatpush3.msra.mxu1 %v4162_v29  ;;  %3436 = vmatprep.mubr.msk.f32.mxu1 %vm3989_vm0, %v3988_v0 }
 0xb15   :  { %3422 = vmatprep.subr.mxu1 %v3988_v0 }
 0xb16   :  { %3423 = vmatpush3.msra.mxu1 %v4170_v31 }
 0xb17   :  { %3424 = vmatprep.subr.mxu1 %v3988_v0 }
 0xb18   :  { %3425 = vmatpush3.msra.mxu1 %v4185_v34 }
 0xb19   :  { %3426 = vmatprep.subr.mxu1 %v3988_v0 }
 0xb1a   :  { %3427 = vmatpush3.msra.mxu1 %v4196_v36 }
 0xb1b   :  { %3428 = vmatprep.subr.mxu1 %v3988_v0 }
 0xb1c   :  { %3429 = vmatpush3.msra.mxu1 %v4207_v38 }
 0xb1d   :  { %3430 = vmatprep.subr.mxu1 %v3988_v0 }
 0xb1e   :  { %3431 = vmatpush3.msra.mxu1 %v4218_v40 }
 0xb1f   :  { %3432 = vmatprep.subr.mxu1 %v3988_v0 }
 0xb20   :  { %3433 = vmatpush3.msra.mxu1 %v4226_v42 }
 0xb21   :  { %3434 = vmatprep.subr.mxu1 %v3988_v0 }
 0xb22   :  { %3435 = vmatpush3.msra.mxu1 %v4242_v44 }
 0xb23   :  { %3458 = vmatprep.subr.mxu1 %v3988_v0 }
 0xbc1   :  { %v1309_v29 = vpop.f32.mrf.mxu1 }
 0xbc2   :  { %v1313_v31 = vadd.f32 %v1309_v29, %v228_v8 }
 0xbc3   :  { %v3370_v34 = vpop.f32.mrf.mxu1 }
 0xbc4   :  { %3709 = vtanh.f32 %v1313_v31  ;;  %v2975_v53 = vmul.f32 -1.442695, %v1313_v31  ;;  %v4633_v34 = vld [vmem:[%s5000_s4 + $0x38] sm:$0xff] }
 0xbc8   :  { %v1413_v36 = vpop.f32.mrf.mxu0 }
 0xbc9   :  { %v1414_v38 = vadd.f32 %v4292_v57, %v1413_v36  ;;  %v4642_v36 = vld [vmem:[%s5000_s4 + $0x30] sm:$0xff] }
 0xbca   :  { %v3389_v40 = vpop.f32.mrf.mxu0 }
 0xbcb   :  { %3711 = vtanh.f32 %v1414_v38  ;;  %v2977_v24 = vmul.f32 -1.442695, %v1414_v38  ;;  %v4649_v38 = vld [vmem:[%s5000_s4 + $0x28] sm:$0xff]  ;;  %v4656_v40 = vld [vmem:[%s5000_s4 + $0x20] sm:$0xff] }
 0xbd1   :  { %v3710_v12 = vpop.eup %3709 }
 0xbd2   :  { %1323 = vrot.lane.b32.xlu0 %v3710_v12, %s3990_s16  ;;  %v4663_v12 = vld [vmem:[%s5000_s4 + $0x18] sm:$0xff] }
 0xbd3   :  { %v1518_v42 = vpop.f32.mrf.mxu1 }
 0xbd4   :  { %v1519_v44 = vadd.f32 %v4389_v13, %v1518_v42  ;;  %v4670_v42 = vld [vmem:[%s5000_s4 + $0x10] sm:$0xff] }
 0xbd5   :  { %v3408_v14 = vpop.f32.mrf.mxu1 }
 0xbd6   :  { %3713 = vtanh.f32 %v1519_v44  ;;  %v2979_v27 = vmul.f32 -1.442695, %v1519_v44  ;;  %v4677_v44 = vld [vmem:[%s5000_s4 + $0x8] sm:$0xff]  ;;  %v4684_v14 = vld [vmem:[%s5000_s4] sm:$0xff] }
 0xbd7   :  { %3715 = vpow2.f32 %v2975_v53 }
 0xbd8   :  { %v3712_v15 = vpop.eup %3711  ;;  %3717 = vpow2.f32 %v2977_v24 }
 0xbd9   :  { %1426 = vrot.lane.b32.xlu1 %v3712_v15, %s3990_s16  ;;  %3719 = vpow2.f32 %v2979_v27  ;;  %v4691_v15 = vld [vmem:[%s4999_s3] ss:$0 sm:$0xff] }
 0xbe3   :  { %v3714_v11 = vpop.eup %3713 }
 0xbe4   :  { %1531 = vrot.lane.b32.xlu0 %v3714_v11, %s3990_s16  ;;  %v3716_v51 = vpop.eup %3715  ;;  %v233_v11 = vadd.f32 %v4691_v15, %v4282_v52 }
 0xbe5   :  { %v1317_v17 = vadd.f32 1.0, %v3716_v51  ;;  %v3718_v18 = vpop.eup %3717 }
 0xbe6   :  { %v1420_v19 = vadd.f32 1.0, %v3718_v18  ;;  %v3720_v20 = vpop.eup %3719 }
 0xbe7   :  { %3721 = vrcp.f32 %v1317_v17  ;;  %v1525_v25 = vadd.f32 1.0, %v3720_v20 }
 0xbe8   :  { %3723 = vrcp.f32 %v1420_v19 }
 0xbe9   :  { %3725 = vrcp.f32 %v1525_v25 }
 0xbf4   :  { %v3722_v21 = vpop.eup %3721 }
 0xbf5   :  { %v3724_v26 = vpop.eup %3723  ;;  %v1321_v43 = vmul.f32 %v3722_v21, %v4479_v33 }
 0xbf6   :  { %v3726_v28 = vpop.eup %3725  ;;  %v1424_v60 = vmul.f32 %v3724_v26, %v4483_v37 }
 0xbf7   :  { %v1529_v1 = vmul.f32 %v3726_v28, %v4488_v48 }
 0xc44   :  { %v1324_v22 = vpop.permute.xlu0 %1323 }
 0xc45   :  { %v1326_v23 = vmul.f32 %v3722_v21, %v1324_v22 }
 0xc47   :  { %1328 = vrot.lane.b32.xlu1 %v1326_v23, %s3991_s17 }
 0xc4b   :  { %v1427_v30 = vpop.permute.xlu1 %1426 }
 0xc4c   :  { %v1429_v32 = vmul.f32 %v3724_v26, %v1427_v30 }
 0xc4e   :  { %1431 = vrot.lane.b32.xlu0 %v1429_v32, %s3991_s17 }
 0xc56   :  { %v1532_v35 = vpop.permute.xlu0 %1531 }
 0xc57   :  { %v1534_v39 = vmul.f32 %v3726_v28, %v1532_v35 }
 0xc59   :  { %1536 = vrot.lane.b32.xlu1 %v1534_v39, %s3991_s17 }
 0xcb9   :  { %v1329_v47 = vpop.permute.xlu1 %1328 }
 0xcba   :  { %v4559_v3 = vadd.f32 %v1329_v47, %v1321_v43 }
 0xcbc   :  { %3727 = vtanh.f32 %v4559_v3 }
 0xcc0   :  { %v1432_v9 = vpop.permute.xlu0 %1431 }
 0xcc1   :  { %v4563_v62 = vadd.f32 %v1432_v9, %v1424_v60 }
 0xcc3   :  { %3729 = vtanh.f32 %v4563_v62 }
 0xcc9   :  { %v3728_v63 = vpop.eup %3727 }
 0xcca   :  { %1334 = vrot.lane.b32.xlu0 %v3728_v63, %s3990_s16 }
 0xccb   :  { %v1537_v16 = vpop.permute.xlu1 %1536 }
 0xccc   :  { %v4568_v50 = vadd.f32 %v1537_v16, %v1529_v1 }
 0xcce   :  { %3731 = vtanh.f32 %v4568_v50 }
 0xcd0   :  { %v3730_v33 = vpop.eup %3729 }
 0xcd1   :  { %1437 = vrot.lane.b32.xlu1 %v3730_v33, %s3990_s16 }
 0xcdb   :  { %v3732_v5 = vpop.eup %3731 }
 0xcdc   :  { %1542 = vrot.lane.b32.xlu0 %v3732_v5, %s3990_s16 }
 0xd3c   :  { %v1335_v37 = vpop.permute.xlu0 %1334 }
 0xd3d   :  { %v1337_v6 = vmul.f32 %v3722_v21, %v1335_v37 }
 0xd3f   :  { %1549 = vrot.lane.b32.xlu1 %v1337_v6, %s3991_s17 }
 0xd43   :  { %v1438_v10 = vpop.permute.xlu1 %1437 }
 0xd44   :  { %v1440_v2 = vmul.f32 %v3724_v26, %v1438_v10 }
 0xd46   :  { %1751 = vrot.lane.b32.xlu1 %v1440_v2, %s3991_s17  ;;  %1650 = vrot.lane.b32.xlu0 %v1440_v2, %s3990_s16 }
 0xd4e   :  { %v1543_v48 = vpop.permute.xlu0 %1542 }
 0xd4f   :  { %v1545_v4 = vmul.f32 %v3726_v28, %v1543_v48 }
 0xd51   :  { %1755 = vrot.lane.b32.xlu0 %v1545_v4, %s3990_s16 }
 0xdb1   :  { %v1550_v7 = vpop.permute.xlu1 %1549 }
 0xdb2   :  { %3418 = vmatmul.mubr.msk.f32.vlgmr.msra.gmra.mxu0 %vm287_vm2, %v1550_v7 }
 0xdb3   :  { %3440 = vmatpush3.msra.mxu0 %v4316_v41  ;;  %3455 = vmatprep.mubr.msk.f32.mxu0 %vm3989_vm0, %v3988_v0  ;;  %v4594_v41 = vld [vmem:[%s4998_s2 + $0x18] sm:$0xff] }
 0xdb4   :  { %3441 = vmatprep.subr.mxu0 %v3988_v0 }
 0xdb5   :  { %3442 = vmatpush3.msra.mxu0 %v4319_v45  ;;  %v4603_v45 = vld [vmem:[%s4998_s2 + $0x10] sm:$0xff] }
 0xdb6   :  { %3443 = vmatprep.subr.mxu0 %v3988_v0 }
 0xdb7   :  { %3444 = vmatpush3.msra.mxu0 %v4325_v46  ;;  %v4612_v46 = vld [vmem:[%s4998_s2 + $0x8] sm:$0xff] }
 0xdb8   :  { %v1651_v8 = vpop.permute.xlu0 %1650  ;;  %3445 = vmatprep.subr.mxu0 %v3988_v0 }
 0xdb9   :  { %v1653_v29 = vsel %vm287_vm2, %v1550_v7, %v1651_v8  ;;  %3446 = vmatpush3.msra.mxu0 %v4330_v49  ;;  %v4621_v49 = vld [vmem:[%s4998_s2] sm:$0xff] }
 0xdba   :  { %3437 = vmatmul.mubr.msk.f32.vlgmr.msra.gmra.mxu1 %vm504_vm3, %v1653_v29  ;;  %3447 = vmatprep.subr.mxu0 %v3988_v0 }
 0xdbb   :  { %3448 = vmatpush3.msra.mxu0 %v4335_v56  ;;  %3459 = vmatpush3.msra.mxu1 %v4594_v41  ;;  %v1752_v56 = vpop.permute.xlu1 %1751 }
 0xdbc   :  { %3449 = vmatprep.subr.mxu0 %v3988_v0  ;;  %3460 = vmatprep.subr.mxu1 %v3988_v0 }
 0xdbd   :  { %3450 = vmatpush3.msra.mxu0 %v4341_v58  ;;  %3461 = vmatpush3.msra.mxu1 %v4603_v45 }
 0xdbe   :  { %3451 = vmatprep.subr.mxu0 %v3988_v0  ;;  %3462 = vmatprep.subr.mxu1 %v3988_v0 }
 0xdbf   :  { %3452 = vmatpush3.msra.mxu0 %v4347_v59  ;;  %3463 = vmatpush3.msra.mxu1 %v4612_v46 }
 0xdc0   :  { %3453 = vmatprep.subr.mxu0 %v3988_v0  ;;  %3464 = vmatprep.subr.mxu1 %v3988_v0 }
 0xdc1   :  { %3454 = vmatpush3.msra.mxu0 %v4353_v61  ;;  %3465 = vmatpush3.msra.mxu1 %v4621_v49 }
 0xdc2   :  { %3469 = vmatprep.subr.mxu0 %v3988_v0  ;;  %3466 = vmatprep.mubr.msk.f32.mxu1 %vm3989_vm0, %v3988_v0 }
 0xdc3   :  { %3488 = vmatprep.subr.mxu1 %v3988_v0  ;;  %v1756_v58 = vpop.permute.xlu0 %1755 }
 0xdc4   :  { %v1758_v31 = vsel %vm287_vm2, %v1752_v56, %v1756_v58 }
 0xdc5   :  { %3456 = vmatmul.mubr.msk.f32.vlgmr.msra.gmra.mxu0 %vm504_vm3, %v1758_v31 }
 0xdc6   :  { %3470 = vmatpush3.msra.mxu0 %v4633_v34  ;;  %3485 = vmatprep.mubr.msk.f32.mxu0 %vm3989_vm0, %v3988_v0 }
 0xdc7   :  { %3471 = vmatprep.subr.mxu0 %v3988_v0 }
 0xdc8   :  { %3472 = vmatpush3.msra.mxu0 %v4642_v36 }
 0xdc9   :  { %3473 = vmatprep.subr.mxu0 %v3988_v0 }
 0xdca   :  { %3474 = vmatpush3.msra.mxu0 %v4649_v38 }
 0xdcb   :  { %3475 = vmatprep.subr.mxu0 %v3988_v0 }
 0xdcc   :  { %3476 = vmatpush3.msra.mxu0 %v4656_v40 }
 0xdcd   :  { %3477 = vmatprep.subr.mxu0 %v3988_v0 }
 0xdce   :  { %3478 = vmatpush3.msra.mxu0 %v4663_v12 }
 0xdcf   :  { %3479 = vmatprep.subr.mxu0 %v3988_v0 }
 0xdd0   :  { %3480 = vmatpush3.msra.mxu0 %v4670_v42 }
 0xdd1   :  { %3481 = vmatprep.subr.mxu0 %v3988_v0 }
 0xdd2   :  { %3482 = vmatpush3.msra.mxu0 %v4677_v44 }
 0xdd3   :  { %3483 = vmatprep.subr.mxu0 %v3988_v0 }
 0xdd4   :  { %3484 = vmatpush3.msra.mxu0 %v4684_v14 }
 0xdd5   :  { %3507 = vmatprep.subr.mxu0 %v3988_v0 }
 0xe72   :  { %v1619_v53 = vpop.f32.mrf.mxu0 }
 0xe73   :  { %v1623_v24 = vadd.f32 %v1619_v53, %v233_v11 }
 0xe74   :  { %v3419_v51 = vpop.f32.mrf.mxu0 }
 0xe75   :  { %3733 = vtanh.f32 %v1623_v24  ;;  %v2981_v25 = vmul.f32 -1.442695, %v1623_v24 }
 0xe7a   :  { %v1723_v27 = vpop.f32.mrf.mxu1 }
 0xe7b   :  { %v1724_v17 = vadd.f32 %v4292_v57, %v1723_v27 }
 0xe7c   :  { %v3438_v18 = vpop.f32.mrf.mxu1 }
 0xe7d   :  { %3735 = vtanh.f32 %v1724_v17  ;;  %v2983_v26 = vmul.f32 -1.442695, %v1724_v17  ;;  %v4723_v17 = vld [vmem:[#allocation8 + $0x38] sm:$0xff]  ;;  %v4729_v18 = vld [vmem:[#allocation8 + $0x30] sm:$0xff] }
 0xe82   :  { %v3734_v19 = vpop.eup %3733 }
 0xe83   :  { %1633 = vrot.lane.b32.xlu1 %v3734_v19, %s3990_s16  ;;  %v4733_v19 = vld [vmem:[#allocation8 + $0x28] sm:$0xff] }
 0xe85   :  { %v1828_v20 = vpop.f32.mrf.mxu0 }
 0xe86   :  { %v1829_v21 = vadd.f32 %v4389_v13, %v1828_v20 }
 0xe87   :  { %v3457_v22 = vpop.f32.mrf.mxu0 }
 0xe88   :  { %3737 = vtanh.f32 %v1829_v21  ;;  %v2985_v32 = vmul.f32 -1.442695, %v1829_v21  ;;  %v4737_v21 = vld [vmem:[#allocation8 + $0x20] sm:$0xff] }
 0xe89   :  { %3739 = vpow2.f32 %v2981_v25 }
 0xe8a   :  { %v3736_v23 = vpop.eup %3735  ;;  %3741 = vpow2.f32 %v2983_v26 }
 0xe8b   :  { %1736 = vrot.lane.b32.xlu0 %v3736_v23, %s3990_s16  ;;  %v4743_v23 = vld [vmem:[#allocation8 + $0x18] sm:$0xff] }
 0xe95   :  { %v3738_v52 = vpop.eup %3737 }
 0xe96   :  { %1841 = vrot.lane.b32.xlu1 %v3738_v52, %s3990_s16  ;;  %v3740_v57 = vpop.eup %3739  ;;  %v4748_v52 = vld [vmem:[#allocation8 + $0x10] sm:$0xff] }
 0xe97   :  { %v1627_v30 = vadd.f32 1.0, %v3740_v57  ;;  %v3742_v28 = vpop.eup %3741  ;;  %v4787_v57 = vld [vmem:[#allocation6] ss:$0 sm:$0xff] }
 0xe98   :  { %v1730_v35 = vadd.f32 1.0, %v3742_v28 }
 0xe99   :  { %3743 = vrcp.f32 %v1627_v30 }
 0xe9a   :  { %3745 = vpow2.f32 %v2985_v32 }
 0xe9b   :  { %3747 = vrcp.f32 %v1730_v35 }
 0xea6   :  { %v3744_v39 = vpop.eup %3743 }
 0xea7   :  { %v3746_v43 = vpop.eup %3745  ;;  %v1631_v6 = vmul.f32 %v3744_v39, %v4559_v3 }
 0xea8   :  { %v1835_v9 = vadd.f32 1.0, %v3746_v43  ;;  %v3748_v63 = vpop.eup %3747 }
 0xea9   :  { %v1734_v48 = vmul.f32 %v3748_v63, %v4563_v62 }
 0xeaa   :  { %3749 = vrcp.f32 %v1835_v9 }
 0xeb7   :  { %v3750_v33 = vpop.eup %3749 }
 0xeb8   :  { %v1839_v29 = vmul.f32 %v3750_v33, %v4568_v50 }
 0xef5   :  { %v1634_v47 = vpop.permute.xlu1 %1633 }
 0xef6   :  { %v1636_v60 = vmul.f32 %v3744_v39, %v1634_v47 }
 0xef8   :  { %1638 = vrot.lane.b32.xlu0 %v1636_v60, %s3991_s17 }
 0xefd   :  { %v1737_v1 = vpop.permute.xlu0 %1736 }
 0xefe   :  { %v1739_v16 = vmul.f32 %v3748_v63, %v1737_v1 }
 0xf00   :  { %1741 = vrot.lane.b32.xlu1 %v1739_v16, %s3991_s17 }
 0xf08   :  { %v1842_v5 = vpop.permute.xlu1 %1841 }
 0xf09   :  { %v1844_v37 = vmul.f32 %v3750_v33, %v1842_v5 }
 0xf0b   :  { %1846 = vrot.lane.b32.xlu0 %v1844_v37, %s3991_s17 }
 0xf6a   :  { %v1639_v10 = vpop.permute.xlu0 %1638 }
 0xf6b   :  { %v4704_v2 = vadd.f32 %v1639_v10, %v1631_v6 }
 0xf6d   :  { %3751 = vtanh.f32 %v4704_v2 }
 0xf72   :  { %v1742_v4 = vpop.permute.xlu1 %1741 }
 0xf73   :  { %v4708_v7 = vadd.f32 %v1742_v4, %v1734_v48 }
 0xf75   :  { %3753 = vtanh.f32 %v4708_v7 }
 0xf7a   :  { %v3752_v8 = vpop.eup %3751 }
 0xf7b   :  { %1644 = vrot.lane.b32.xlu1 %v3752_v8, %s3990_s16 }
 0xf7d   :  { %v1847_v56 = vpop.permute.xlu0 %1846 }
 0xf7e   :  { %v4713_v58 = vadd.f32 %v1847_v56, %v1839_v29 }
 0xf80   :  { %3755 = vtanh.f32 %v4713_v58 }
 0xf82   :  { %v3754_v3 = vpop.eup %3753 }
 0xf83   :  { %1747 = vrot.lane.b32.xlu0 %v3754_v3, %s3990_s16 }
 0xf8d   :  { %v3756_v31 = vpop.eup %3755 }
 0xf8e   :  { %1852 = vrot.lane.b32.xlu1 %v3756_v31, %s3990_s16 }
 0xfed   :  { %v1645_v62 = vpop.permute.xlu1 %1644 }
 0xfee   :  { %v1647_v11 = vmul.f32 %v3744_v39, %v1645_v62 }
 0xff0   :  { %1859 = vrot.lane.b32.xlu0 %v1647_v11, %s3991_s17 }
 0xff5   :  { %v1748_v53 = vpop.permute.xlu0 %1747 }
 0xff6   :  { %v1750_v24 = vmul.f32 %v3748_v63, %v1748_v53 }
 0xff8   :  { %2061 = vrot.lane.b32.xlu0 %v1750_v24, %s3991_s17  ;;  %1960 = vrot.lane.b32.xlu1 %v1750_v24, %s3990_s16 }
0x1000   :  { %v1853_v50 = vpop.permute.xlu1 %1852 }
0x1001   :  { %v1855_v51 = vmul.f32 %v3750_v33, %v1853_v50 }
0x1003   :  { %2065 = vrot.lane.b32.xlu1 %v1855_v51, %s3990_s16 }
0x1062   :  { %v1860_v27 = vpop.permute.xlu0 %1859 }
0x1063   :  { %3467 = vmatmul.mubr.msk.f32.vlgmr.msra.gmra.mxu1 %vm287_vm2, %v1860_v27 }
0x1064   :  { %3489 = vmatpush3.msra.mxu1 %v4723_v17  ;;  %3504 = vmatprep.mubr.msk.f32.mxu1 %vm3989_vm0, %v3988_v0 }
0x1065   :  { %3490 = vmatprep.subr.mxu1 %v3988_v0 }
0x1066   :  { %3491 = vmatpush3.msra.mxu1 %v4729_v18 }
0x1067   :  { %3492 = vmatprep.subr.mxu1 %v3988_v0 }
0x1068   :  { %3493 = vmatpush3.msra.mxu1 %v4733_v19 }
0x1069   :  { %3494 = vmatprep.subr.mxu1 %v3988_v0 }
0x106a   :  { %v1961_v20 = vpop.permute.xlu1 %1960  ;;  %3495 = vmatpush3.msra.mxu1 %v4737_v21 }
0x106b   :  { %v1963_v22 = vsel %vm287_vm2, %v1860_v27, %v1961_v20  ;;  %3496 = vmatprep.subr.mxu1 %v3988_v0 }
0x106c   :  { %3486 = vmatmul.mubr.msk.f32.vlgmr.msra.gmra.mxu0 %vm504_vm3, %v1963_v22  ;;  %3497 = vmatpush3.msra.mxu1 %v4743_v23 }
0x106d   :  { %3498 = vmatprep.subr.mxu1 %v3988_v0  ;;  %3508 = vmatpush3.msra.mxu0 %v4594_v41 }
0x106e   :  { %3499 = vmatpush3.msra.mxu1 %v4748_v52  ;;  %3509 = vmatprep.subr.mxu0 %v3988_v0 }
0x106f   :  { %3500 = vmatprep.subr.mxu1 %v3988_v0  ;;  %3510 = vmatpush3.msra.mxu0 %v4603_v45 }
0x1070   :  { %3501 = vmatpush3.msra.mxu1 %v4347_v59  ;;  %3511 = vmatprep.subr.mxu0 %v3988_v0  ;;  %v2062_v59 = vpop.permute.xlu0 %2061 }
0x1071   :  { %3502 = vmatprep.subr.mxu1 %v3988_v0  ;;  %3512 = vmatpush3.msra.mxu0 %v4612_v46 }
0x1072   :  { %3503 = vmatpush3.msra.mxu1 %v4353_v61  ;;  %3513 = vmatprep.subr.mxu0 %v3988_v0  ;;  %v238_v61 = vadd.f32 %v4691_v15, %v4288_v55 }
0x1073   :  { %3518 = vmatprep.subr.mxu1 %v3988_v0  ;;  %3514 = vmatpush3.msra.mxu0 %v4621_v49 }
0x1074   :  { %3515 = vmatprep.mubr.msk.f32.mxu0 %vm3989_vm0, %v3988_v0  ;;  %3537 = vmatprep.subr.mxu0 %v3988_v0 }
0x1075   :  { %v2066_v41 = vpop.permute.xlu1 %2065 }
0x1076   :  { %v2068_v45 = vsel %vm287_vm2, %v2062_v59, %v2066_v41 }
0x1077   :  { %3505 = vmatmul.mubr.msk.f32.vlgmr.msra.gmra.mxu1 %vm504_vm3, %v2068_v45 }
0x1078   :  { %3519 = vmatpush3.msra.mxu1 %v4633_v34  ;;  %3534 = vmatprep.mubr.msk.f32.mxu1 %vm3989_vm0, %v3988_v0 }
0x1079   :  { %3520 = vmatprep.subr.mxu1 %v3988_v0 }
0x107a   :  { %3521 = vmatpush3.msra.mxu1 %v4642_v36 }
0x107b   :  { %3522 = vmatprep.subr.mxu1 %v3988_v0 }
0x107c   :  { %3523 = vmatpush3.msra.mxu1 %v4649_v38 }
0x107d   :  { %3524 = vmatprep.subr.mxu1 %v3988_v0 }
0x107e   :  { %3525 = vmatpush3.msra.mxu1 %v4656_v40 }
0x107f   :  { %3526 = vmatprep.subr.mxu1 %v3988_v0 }
0x1080   :  { %3527 = vmatpush3.msra.mxu1 %v4663_v12 }
0x1081   :  { %3528 = vmatprep.subr.mxu1 %v3988_v0 }
0x1082   :  { %3529 = vmatpush3.msra.mxu1 %v4670_v42 }
0x1083   :  { %3530 = vmatprep.subr.mxu1 %v3988_v0 }
0x1084   :  { %3531 = vmatpush3.msra.mxu1 %v4677_v44 }
0x1085   :  { %3532 = vmatprep.subr.mxu1 %v3988_v0 }
0x1086   :  { %3533 = vmatpush3.msra.mxu1 %v4684_v14 }
0x1087   :  { %3556 = vmatprep.subr.mxu1 %v3988_v0 }
0x1123   :  { %v1929_v46 = vpop.f32.mrf.mxu1 }
0x1124   :  { %v1933_v49 = vadd.f32 %v1929_v46, %v238_v61 }
0x1125   :  { %v3468_v25 = vpop.f32.mrf.mxu1 }
0x1126   :  { %3757 = vtanh.f32 %v1933_v49  ;;  %v2987_v60 = vmul.f32 -1.442695, %v1933_v49 }
0x112c   :  { %v2033_v26 = vpop.f32.mrf.mxu0 }
0x112d   :  { %v2034_v30 = vadd.f32 %v4787_v57, %v2033_v26 }
0x112e   :  { %v3487_v32 = vpop.f32.mrf.mxu0 }
0x112f   :  { %3759 = vtanh.f32 %v2034_v30  ;;  %v2989_v9 = vmul.f32 -1.442695, %v2034_v30  ;;  %v4835_v32 = vld [vmem:[#allocation8 + $0x8] sm:$0xff] }
0x1133   :  { %v3758_v28 = vpop.eup %3757 }
0x1134   :  { %1943 = vrot.lane.b32.xlu0 %v3758_v28, %s3990_s16  ;;  %v4841_v28 = vld [vmem:[#allocation8] sm:$0xff] }
0x1137   :  { %v2138_v35 = vpop.f32.mrf.mxu1 }
0x1138   :  { %v2139_v39 = vadd.f32 %v4389_v13, %v2138_v35 }
0x1139   :  { %v3506_v43 = vpop.f32.mrf.mxu1 }
0x113a   :  { %3761 = vtanh.f32 %v2139_v39  ;;  %v2991_v16 = vmul.f32 -1.442695, %v2139_v39 }
0x113b   :  { %3763 = vpow2.f32 %v2987_v60 }
0x113c   :  { %v3760_v55 = vpop.eup %3759  ;;  %3765 = vpow2.f32 %v2989_v9 }
0x113d   :  { %2046 = vrot.lane.b32.xlu1 %v3760_v55, %s3990_s16 }
0x1147   :  { %v3762_v47 = vpop.eup %3761 }
0x1148   :  { %2151 = vrot.lane.b32.xlu0 %v3762_v47, %s3990_s16  ;;  %v3764_v63 = vpop.eup %3763  ;;  %v4886_v47 = vld [vmem:[%s5003_s7] ss:$0 sm:$0xff] }
0x1149   :  { %v1937_v1 = vadd.f32 1.0, %v3764_v63  ;;  %v3766_v33 = vpop.eup %3765 }
0x114a   :  { %v2040_v5 = vadd.f32 1.0, %v3766_v33 }
0x114b   :  { %3767 = vrcp.f32 %v1937_v1 }
0x114c   :  { %3769 = vpow2.f32 %v2991_v16 }
0x114d   :  { %3771 = vrcp.f32 %v2040_v5 }
0x1158   :  { %v3768_v13 = vpop.eup %3767 }
0x1159   :  { %v3770_v6 = vpop.eup %3769  ;;  %v1941_v62 = vmul.f32 %v3768_v13, %v4704_v2 }
0x115a   :  { %v2145_v48 = vadd.f32 1.0, %v3770_v6  ;;  %v3772_v4 = vpop.eup %3771 }
0x115b   :  { %v2044_v24 = vmul.f32 %v3772_v4, %v4708_v7 }
0x115c   :  { %3773 = vrcp.f32 %v2145_v48 }
0x1169   :  { %v3774_v56 = vpop.eup %3773 }
0x116a   :  { %v2149_v20 = vmul.f32 %v3774_v56, %v4713_v58 }
0x11a6   :  { %v1944_v37 = vpop.permute.xlu0 %1943 }
0x11a7   :  { %v1946_v10 = vmul.f32 %v3768_v13, %v1944_v37 }
0x11a9   :  { %1948 = vrot.lane.b32.xlu1 %v1946_v10, %s3991_s17 }
0x11af   :  { %v2047_v8 = vpop.permute.xlu1 %2046 }
0x11b0   :  { %v2049_v29 = vmul.f32 %v3772_v4, %v2047_v8 }
0x11b2   :  { %2051 = vrot.lane.b32.xlu0 %v2049_v29, %s3991_s17 }
0x11ba   :  { %v2152_v3 = vpop.permute.xlu0 %2151 }
0x11bb   :  { %v2154_v31 = vmul.f32 %v3774_v56, %v2152_v3 }
0x11bd   :  { %2156 = vrot.lane.b32.xlu1 %v2154_v31, %s3991_s17 }
0x121b   :  { %v1949_v11 = vpop.permute.xlu1 %1948 }
0x121c   :  { %v4798_v53 = vadd.f32 %v1949_v11, %v1941_v62 }
0x121e   :  { %3775 = vtanh.f32 %v4798_v53 }
0x1224   :  { %v2052_v50 = vpop.permute.xlu0 %2051 }
0x1225   :  { %v4802_v51 = vadd.f32 %v2052_v50, %v2044_v24 }
0x1227   :  { %3777 = vtanh.f32 %v4802_v51 }
0x122b   :  { %v3776_v27 = vpop.eup %3775 }
0x122c   :  { %1954 = vrot.lane.b32.xlu0 %v3776_v27, %s3990_s16 }
0x122f   :  { %v2157_v22 = vpop.permute.xlu1 %2156 }
0x1230   :  { %v4807_v59 = vadd.f32 %v2157_v22, %v2149_v20 }
0x1232   :  { %3779 = vtanh.f32 %v4807_v59 }
0x1234   :  { %v3778_v2 = vpop.eup %3777 }
0x1235   :  { %2057 = vrot.lane.b32.xlu1 %v3778_v2, %s3990_s16 }
0x123f   :  { %v3780_v41 = vpop.eup %3779 }
0x1240   :  { %2162 = vrot.lane.b32.xlu0 %v3780_v41, %s3990_s16 }
0x129e   :  { %v1955_v7 = vpop.permute.xlu0 %1954 }
0x129f   :  { %v1957_v45 = vmul.f32 %v3768_v13, %v1955_v7 }
0x12a1   :  { %2169 = vrot.lane.b32.xlu1 %v1957_v45, %s3991_s17 }
0x12a7   :  { %v2058_v61 = vpop.permute.xlu1 %2057 }
0x12a8   :  { %v2060_v46 = vmul.f32 %v3772_v4, %v2058_v61 }
0x12aa   :  { %2371 = vrot.lane.b32.xlu1 %v2060_v46, %s3991_s17  ;;  %2270 = vrot.lane.b32.xlu0 %v2060_v46, %s3990_s16 }
0x12b2   :  { %v2163_v58 = vpop.permute.xlu0 %2162 }
0x12b3   :  { %v2165_v49 = vmul.f32 %v3774_v56, %v2163_v58 }
0x12b5   :  { %2375 = vrot.lane.b32.xlu0 %v2165_v49, %s3990_s16 }
0x1313   :  { %v2170_v25 = vpop.permute.xlu1 %2169 }
0x1314   :  { %3516 = vmatmul.mubr.msk.f32.vlgmr.msra.gmra.mxu0 %vm287_vm2, %v2170_v25 }
0x1315   :  { %3538 = vmatpush3.msra.mxu0 %v4723_v17  ;;  %3553 = vmatprep.mubr.msk.f32.mxu0 %vm3989_vm0, %v3988_v0 }
0x1316   :  { %3539 = vmatprep.subr.mxu0 %v3988_v0 }
0x1317   :  { %3540 = vmatpush3.msra.mxu0 %v4729_v18 }
0x1318   :  { %3541 = vmatprep.subr.mxu0 %v3988_v0 }
0x1319   :  { %3542 = vmatpush3.msra.mxu0 %v4733_v19 }
0x131a   :  { %3543 = vmatprep.subr.mxu0 %v3988_v0 }
0x131b   :  { %3544 = vmatpush3.msra.mxu0 %v4737_v21 }
0x131c   :  { %v2271_v26 = vpop.permute.xlu0 %2270  ;;  %3545 = vmatprep.subr.mxu0 %v3988_v0 }
0x131d   :  { %v2273_v30 = vsel %vm287_vm2, %v2170_v25, %v2271_v26  ;;  %3546 = vmatpush3.msra.mxu0 %v4743_v23 }
0x131e   :  { %3535 = vmatmul.mubr.msk.f32.vlgmr.msra.gmra.mxu1 %vm504_vm3, %v2273_v30  ;;  %3547 = vmatprep.subr.mxu0 %v3988_v0 }
0x131f   :  { %3548 = vmatpush3.msra.mxu0 %v4748_v52  ;;  %3557 = vmatpush3.msra.mxu1 %v4633_v34  ;;  %v2372_v34 = vpop.permute.xlu1 %2371 }
0x1320   :  { %3549 = vmatprep.subr.mxu0 %v3988_v0  ;;  %3558 = vmatprep.subr.mxu1 %v3988_v0 }
0x1321   :  { %3550 = vmatpush3.msra.mxu0 %v4835_v32  ;;  %3559 = vmatpush3.msra.mxu1 %v4642_v36 }
0x1322   :  { %3551 = vmatprep.subr.mxu0 %v3988_v0  ;;  %3560 = vmatprep.subr.mxu1 %v3988_v0 }
0x1323   :  { %3552 = vmatpush3.msra.mxu0 %v4841_v28  ;;  %3561 = vmatpush3.msra.mxu1 %v4649_v38  ;;  %v243_v38 = vadd.f32 %v4691_v15, %v4286_v54 }
0x1324   :  { %3562 = vmatprep.subr.mxu1 %v3988_v0  ;;  %3575 = vmatprep.subr.mxu0 %v3988_v0 }
0x1325   :  { %3563 = vmatpush3.msra.mxu1 %v4656_v40  ;;  %3572 = vmatprep.mubr.msk.f32.mxu1 %vm3989_vm0, %v3988_v0 }
0x1326   :  { %3564 = vmatprep.subr.mxu1 %v3988_v0 }
0x1327   :  { %3565 = vmatpush3.msra.mxu1 %v4663_v12  ;;  %v2376_v36 = vpop.permute.xlu0 %2375 }
0x1328   :  { %3566 = vmatprep.subr.mxu1 %v3988_v0  ;;  %v2378_v35 = vsel %vm287_vm2, %v2372_v34, %v2376_v36 }
0x1329   :  { %3567 = vmatpush3.msra.mxu1 %v4670_v42  ;;  %3554 = vmatmul.mubr.msk.f32.vlgmr.msra.gmra.mxu0 %vm504_vm3, %v2378_v35 }
0x132a   :  { %3568 = vmatprep.subr.mxu1 %v3988_v0  ;;  %3576 = vmatpush3.msra.mxu0 %v4723_v17 }
0x132b   :  { %3569 = vmatpush3.msra.mxu1 %v4677_v44  ;;  %3577 = vmatprep.subr.mxu0 %v3988_v0 }
0x132c   :  { %3570 = vmatprep.subr.mxu1 %v3988_v0  ;;  %3578 = vmatpush3.msra.mxu0 %v4729_v18 }
0x132d   :  { %3571 = vmatpush3.msra.mxu1 %v4684_v14  ;;  %3579 = vmatprep.subr.mxu0 %v3988_v0 }
0x132e   :  { %3591 = vmatprep.mubr.msk.f32.mxu0 %vm3989_vm0, %v3988_v0  ;;  %3580 = vmatpush3.msra.mxu0 %v4733_v19 }
0x132f   :  { %3594 = vmatprep.subr.mxu1 %v3988_v0  ;;  %3581 = vmatprep.subr.mxu0 %v3988_v0 }
0x1330   :  { %3582 = vmatpush3.msra.mxu0 %v4737_v21 }
0x1331   :  { %3583 = vmatprep.subr.mxu0 %v3988_v0 }
0x1332   :  { %3584 = vmatpush3.msra.mxu0 %v4743_v23 }
0x1333   :  { %3585 = vmatprep.subr.mxu0 %v3988_v0 }
0x1334   :  { %3586 = vmatpush3.msra.mxu0 %v4748_v52 }
0x1335   :  { %3587 = vmatprep.subr.mxu0 %v3988_v0 }
0x1336   :  { %3588 = vmatpush3.msra.mxu0 %v4835_v32 }
0x1337   :  { %3589 = vmatprep.subr.mxu0 %v3988_v0 }
0x1338   :  { %3590 = vmatpush3.msra.mxu0 %v4841_v28 }
0x1339   :  { %3613 = vmatprep.subr.mxu0 %v3988_v0 }
0x13d4   :  { %v2239_v40 = vpop.f32.mrf.mxu0 }
0x13d5   :  { %v2243_v12 = vadd.f32 %v2239_v40, %v243_v38 }
0x13d6   :  { %v3517_v42 = vpop.f32.mrf.mxu0 }
0x13d7   :  { %3781 = vtanh.f32 %v2243_v12  ;;  %v2993_v63 = vmul.f32 -1.442695, %v2243_v12 }
0x13de   :  { %v2343_v44 = vpop.f32.mrf.mxu1 }
0x13df   :  { %v2344_v14 = vadd.f32 %v4787_v57, %v2343_v44 }
0x13e0   :  { %v3536_v39 = vpop.f32.mrf.mxu1 }
0x13e1   :  { %3783 = vtanh.f32 %v2344_v14  ;;  %v2995_v1 = vmul.f32 -1.442695, %v2344_v14 }
0x13e4   :  { %v3782_v43 = vpop.eup %3781 }
0x13e5   :  { %2253 = vrot.lane.b32.xlu1 %v3782_v43, %s3990_s16 }
0x13e9   :  { %v2448_v55 = vpop.f32.mrf.mxu0 }
0x13ea   :  { %v2449_v54 = vadd.f32 %v4886_v47, %v2448_v55 }
0x13eb   :  { %v3555_v15 = vpop.f32.mrf.mxu0 }
0x13ec   :  { %3785 = vtanh.f32 %v2449_v54  ;;  %v2997_v5 = vmul.f32 -1.442695, %v2449_v54 }
0x13ed   :  { %3787 = vpow2.f32 %v2993_v63 }
0x13ee   :  { %v3784_v60 = vpop.eup %3783  ;;  %3789 = vpow2.f32 %v2995_v1 }
0x13ef   :  { %2356 = vrot.lane.b32.xlu0 %v3784_v60, %s3990_s16 }
0x13f9   :  { %v3786_v9 = vpop.eup %3785 }
0x13fa   :  { %2461 = vrot.lane.b32.xlu1 %v3786_v9, %s3990_s16  ;;  %v3788_v16 = vpop.eup %3787 }
0x13fb   :  { %v2247_v33 = vadd.f32 1.0, %v3788_v16  ;;  %v3790_v13 = vpop.eup %3789 }
0x13fc   :  { %v2350_v37 = vadd.f32 1.0, %v3790_v13 }
0x13fd   :  { %3791 = vrcp.f32 %v2247_v33 }
0x13fe   :  { %3793 = vpow2.f32 %v2997_v5 }
0x13ff   :  { %3795 = vrcp.f32 %v2350_v37 }
0x140a   :  { %v3792_v6 = vpop.eup %3791 }
0x140b   :  { %v3794_v4 = vpop.eup %3793  ;;  %v2251_v24 = vmul.f32 %v3792_v6, %v4798_v53 }
0x140c   :  { %v2455_v8 = vadd.f32 1.0, %v3794_v4  ;;  %v3796_v29 = vpop.eup %3795 }
0x140d   :  { %v2354_v20 = vmul.f32 %v3796_v29, %v4802_v51 }
0x140e   :  { %3797 = vrcp.f32 %v2455_v8 }
0x141b   :  { %v3798_v31 = vpop.eup %3797 }
0x141c   :  { %v2459_v7 = vmul.f32 %v3798_v31, %v4807_v59 }
0x1457   :  { %v2254_v10 = vpop.permute.xlu1 %2253 }
0x1458   :  { %v2256_v48 = vmul.f32 %v3792_v6, %v2254_v10 }
0x145a   :  { %2258 = vrot.lane.b32.xlu0 %v2256_v48, %s3991_s17 }
0x1461   :  { %v2357_v56 = vpop.permute.xlu0 %2356 }
0x1462   :  { %v2359_v3 = vmul.f32 %v3796_v29, %v2357_v56 }
0x1464   :  { %2361 = vrot.lane.b32.xlu1 %v2359_v3, %s3991_s17 }
0x146c   :  { %v2462_v62 = vpop.permute.xlu1 %2461 }
0x146d   :  { %v2464_v11 = vmul.f32 %v3798_v31, %v2462_v62 }
0x146f   :  { %2466 = vrot.lane.b32.xlu0 %v2464_v11, %s3991_s17 }
0x14cc   :  { %v2259_v50 = vpop.permute.xlu0 %2258 }
0x14cd   :  { %v4895_v27 = vadd.f32 %v2259_v50, %v2251_v24 }
0x14cf   :  { %3799 = vtanh.f32 %v4895_v27 }
0x14d6   :  { %v2362_v22 = vpop.permute.xlu1 %2361 }
0x14d7   :  { %v4899_v2 = vadd.f32 %v2362_v22, %v2354_v20 }
0x14d9   :  { %3801 = vtanh.f32 %v4899_v2 }
0x14dc   :  { %v3800_v41 = vpop.eup %3799 }
0x14dd   :  { %2264 = vrot.lane.b32.xlu1 %v3800_v41, %s3990_s16 }
0x14e1   :  { %v2467_v45 = vpop.permute.xlu0 %2466 }
0x14e2   :  { %v4904_v61 = vadd.f32 %v2467_v45, %v2459_v7 }
0x14e4   :  { %3803 = vtanh.f32 %v4904_v61 }
0x14e6   :  { %v3802_v53 = vpop.eup %3801 }
0x14e7   :  { %2367 = vrot.lane.b32.xlu0 %v3802_v53, %s3990_s16 }
0x14f1   :  { %v3804_v46 = vpop.eup %3803 }
0x14f2   :  { %2472 = vrot.lane.b32.xlu1 %v3804_v46, %s3990_s16  ;;  %v2821_v46 = vld [vmem:[%s5006_s10 + $0x10] sm:$0xff] }
0x154f   :  { %v2265_v51 = vpop.permute.xlu1 %2264 }
0x1550   :  { %v2267_v58 = vmul.f32 %v3792_v6, %v2265_v51  ;;  %v2820_v51 = vld [vmem:[%s5006_s10 + $0x8] sm:$0xff] }
0x1552   :  { %2477 = vrot.lane.b32.xlu0 %v2267_v58, %s3991_s17 }
0x1559   :  { %v2368_v49 = vpop.permute.xlu0 %2367 }
0x155a   :  { %v2370_v25 = vmul.f32 %v3796_v29, %v2368_v49  ;;  %v2819_v49 = vld [vmem:[%s5006_s10] sm:$0xff] }
0x155c   :  { %2582 = vrot.lane.b32.xlu0 %v2370_v25, %s3991_s17  ;;  %2481 = vrot.lane.b32.xlu1 %v2370_v25, %s3990_s16 }
0x1564   :  { %v2473_v59 = vpop.permute.xlu1 %2472 }
0x1565   :  { %v2475_v26 = vmul.f32 %v3798_v31, %v2473_v59 }
0x1567   :  { %2586 = vrot.lane.b32.xlu1 %v2475_v26, %s3990_s16 }
0x15c4   :  { %v2478_v30 = vpop.permute.xlu0 %2477 }
0x15c5   :  { %2793 = vst.msk [vmem:[#allocation11] sm:$0xff] %vm287_vm2, %v2478_v30 }
0x15ce   :  { %v2482_v34 = vpop.permute.xlu1 %2481 }
0x15cf   :  { %v2484_v36 = vsel %vm287_vm2, %v2478_v30, %v2482_v34 }
0x15d0   :  { %3573 = vmatmul.mubr.msk.f32.vlgmr.msra.gmra.mxu1 %vm504_vm3, %v2484_v36 }
0x15d1   :  { %3595 = vmatpush3.msra.mxu1 %v4723_v17  ;;  %3610 = vmatprep.mubr.msk.f32.mxu1 %vm3989_vm0, %v3988_v0  ;;  %v2583_v17 = vpop.permute.xlu0 %2582 }
0x15d2   :  { %3596 = vmatprep.subr.mxu1 %v3988_v0 }
0x15d3   :  { %3597 = vmatpush3.msra.mxu1 %v4729_v18 }
0x15d4   :  { %3598 = vmatprep.subr.mxu1 %v3988_v0 }
0x15d5   :  { %3599 = vmatpush3.msra.mxu1 %v4733_v19 }
0x15d6   :  { %3600 = vmatprep.subr.mxu1 %v3988_v0 }
0x15d7   :  { %3601 = vmatpush3.msra.mxu1 %v4737_v21 }
0x15d8   :  { %3602 = vmatprep.subr.mxu1 %v3988_v0 }
0x15d9   :  { %3603 = vmatpush3.msra.mxu1 %v4743_v23  ;;  %v2587_v35 = vpop.permute.xlu1 %2586 }
0x15da   :  { %3604 = vmatprep.subr.mxu1 %v3988_v0  ;;  %v2589_v38 = vsel %vm287_vm2, %v2583_v17, %v2587_v35 }
0x15db   :  { %3605 = vmatpush3.msra.mxu1 %v4748_v52  ;;  %3592 = vmatmul.mubr.msk.f32.vlgmr.msra.gmra.mxu0 %vm504_vm3, %v2589_v38 }
0x15dc   :  { %3606 = vmatprep.subr.mxu1 %v3988_v0  ;;  %3621 = vmatprep.mubr.msk.f32.mxu0 %vm3989_vm0, %v3988_v0 }
0x15dd   :  { %3607 = vmatpush3.msra.mxu1 %v4835_v32 }
0x15de   :  { %3608 = vmatprep.subr.mxu1 %v3988_v0 }
0x15df   :  { %3609 = vmatpush3.msra.mxu1 %v4841_v28 }
0x1690   :  { %v2554_v18 = vpop.f32.mrf.mxu1 }
0x1691   :  { %v2555_v19 = vadd.f32 %v4787_v57, %v2554_v18 }
0x1692   :  { %v3574_v21 = vpop.f32.mrf.mxu1 }
0x1693   :  { %3805 = vtanh.f32 %v2555_v19  ;;  %v2999_v42 = vmul.f32 -1.442695, %v2555_v19 }
0x169b   :  { %v2659_v23 = vpop.f32.mrf.mxu0 }
0x169c   :  { %v2660_v52 = vadd.f32 %v4886_v47, %v2659_v23 }
0x169d   :  { %v3593_v40 = vpop.f32.mrf.mxu0 }
0x169e   :  { %3807 = vtanh.f32 %v2660_v52  ;;  %v3001_v44 = vmul.f32 -1.442695, %v2660_v52 }
0x169f   :  { %3809 = vpow2.f32 %v2999_v42 }
0x16a0   :  { %v3806_v12 = vpop.eup %3805  ;;  %3811 = vpow2.f32 %v3001_v44 }
0x16a1   :  { %2567 = vrot.lane.b32.xlu0 %v3806_v12, %s3990_s16 }
0x16ab   :  { %v3808_v32 = vpop.eup %3807 }
0x16ac   :  { %2672 = vrot.lane.b32.xlu1 %v3808_v32, %s3990_s16  ;;  %v3810_v28 = vpop.eup %3809 }
0x16ad   :  { %v2561_v14 = vadd.f32 1.0, %v3810_v28  ;;  %v3812_v57 = vpop.eup %3811 }
0x16ae   :  { %v2666_v39 = vadd.f32 1.0, %v3812_v57 }
0x16af   :  { %3813 = vrcp.f32 %v2561_v14 }
0x16b0   :  { %3815 = vrcp.f32 %v2666_v39 }
0x16bc   :  { %v3814_v43 = vpop.eup %3813 }
0x16bd   :  { %v3816_v15 = vpop.eup %3815  ;;  %v2565_v63 = vmul.f32 %v3814_v43, %v4899_v2 }
0x16be   :  { %v2670_v33 = vmul.f32 %v3816_v15, %v4904_v61 }
0x1713   :  { %v2568_v55 = vpop.permute.xlu0 %2567 }
0x1714   :  { %v2570_v54 = vmul.f32 %v3814_v43, %v2568_v55 }
0x1716   :  { %2572 = vrot.lane.b32.xlu0 %v2570_v54, %s3991_s17 }
0x171e   :  { %v2673_v60 = vpop.permute.xlu1 %2672 }
0x171f   :  { %v2675_v9 = vmul.f32 %v3816_v15, %v2673_v60 }
0x1721   :  { %2677 = vrot.lane.b32.xlu1 %v2675_v9, %s3991_s17 }
0x1788   :  { %v2573_v1 = vpop.permute.xlu0 %2572 }
0x1789   :  { %v2575_v16 = vadd.f32 %v2573_v1, %v2565_v63 }
0x178b   :  { %3817 = vtanh.f32 %v2575_v16 }
0x1793   :  { %v2678_v5 = vpop.permute.xlu1 %2677 }
0x1794   :  { %v2680_v13 = vadd.f32 %v2678_v5, %v2670_v33 }
0x1796   :  { %3819 = vtanh.f32 %v2680_v13 }
0x1798   :  { %v3818_v37 = vpop.eup %3817 }
0x1799   :  { %2578 = vrot.lane.b32.xlu0 %v3818_v37, %s3990_s16 }
0x17a3   :  { %v3820_v6 = vpop.eup %3819 }
0x17a4   :  { %2683 = vrot.lane.b32.xlu1 %v3820_v6, %s3990_s16 }
0x180b   :  { %v2579_v10 = vpop.permute.xlu0 %2578 }
0x180c   :  { %v2581_v48 = vmul.f32 %v3814_v43, %v2579_v10 }
0x180e   :  { %2688 = vrot.lane.b32.xlu0 %v2581_v48, %s3991_s17 }
0x1816   :  { %v2684_v4 = vpop.permute.xlu1 %2683 }
0x1817   :  { %v2686_v8 = vmul.f32 %v3816_v15, %v2684_v4 }
0x1819   :  { %2692 = vrot.lane.b32.xlu1 %v2686_v8, %s3990_s16 }
0x1880   :  { %v2689_v29 = vpop.permute.xlu0 %2688 }
0x1881   :  { %2795 = vst.msk [vmem:[#allocation11 + $0x8] sm:$0xff] %vm287_vm2, %v2689_v29 }
0x188b   :  { %v2693_v56 = vpop.permute.xlu1 %2692 }
0x188c   :  { %v2695_v3 = vsel %vm287_vm2, %v2689_v29, %v2693_v56 }
0x188d   :  { %3611 = vmatmul.mubr.msk.f32.vlgmr.msra.gmra.mxu1 %vm504_vm3, %v2695_v3 }
0x194d   :  { %v2765_v31 = vpop.f32.mrf.mxu1 }
0x194e   :  { %v2766_v62 = vadd.f32 %v4886_v47, %v2765_v31  ;;  %v2822_v47 = vld [vmem:[%s5006_s10 + $0x18] sm:$0xff]  ;;  %s3993_s10 = smov [#allocation11]  }
0x194f   :  { %v3612_v11 = vpop.f32.mrf.mxu1  ;;  %3614 = vmatpush3.msra.mxu0 %v2822_v47 }
0x1950   :  { %3821 = vtanh.f32 %v2766_v62  ;;  %v3003_v50 = vmul.f32 -1.442695, %v2766_v62  ;;  %3615 = vmatprep.subr.mxu0 %v3988_v0 }
0x1951   :  { %3616 = vmatpush3.msra.mxu0 %v2821_v46 }
0x1952   :  { %3823 = vpow2.f32 %v3003_v50  ;;  %3617 = vmatprep.subr.mxu0 %v3988_v0 }
0x1953   :  { %3618 = vmatpush3.msra.mxu0 %v2820_v51 }
0x1954   :  { %3619 = vmatprep.subr.mxu0 %v3988_v0 }
0x1955   :  { %3620 = vmatpush3.msra.mxu0 %v2819_v49 }
0x195d   :  { %v3822_v24 = vpop.eup %3821 }
0x195e   :  { %2778 = vrot.lane.b32.xlu0 %v3822_v24, %s3990_s16 }
0x195f   :  { %v3824_v20 = vpop.eup %3823 }
0x1960   :  { %v2772_v22 = vadd.f32 1.0, %v3824_v20 }
0x1962   :  { %3825 = vrcp.f32 %v2772_v22 }
0x196f   :  { %v3826_v2 = vpop.eup %3825 }
0x1970   :  { %v2776_v45 = vmul.f32 %v3826_v2, %v2680_v13 }
0x19d0   :  { %v2779_v41 = vpop.permute.xlu0 %2778 }
0x19d1   :  { %v2781_v7 = vmul.f32 %v3826_v2, %v2779_v41 }
0x19d3   :  { %2783 = vrot.lane.b32.xlu1 %v2781_v7, %s3991_s17 }
0x1a45   :  { %v2784_v61 = vpop.permute.xlu1 %2783 }
0x1a46   :  { %v2786_v53 = vadd.f32 %v2784_v61, %v2776_v45 }
0x1a48   :  { %3827 = vtanh.f32 %v2786_v53 }
0x1a55   :  { %v3828_v58 = vpop.eup %3827 }
0x1a56   :  { %2789 = vrot.lane.b32.xlu0 %v3828_v58, %s3990_s16  ;;  %s2911_s16 = sshll.u32 %s3993_s10, 4  ;;  %s2912_s16 = int_to_ptr.vmem [resolvable:$true] %s2911_s16 }
0x1a57   :  { %p3937_p7 = scmp.lt.s32.totalorder %s2912_s16, %s2912_s16 }
0x1a5a   :  { %2803 = vrot.lane.b32.xlu0 %v4895_v27, %s3992_s29 }
0x1a5e   :  { %2814 = vrot.lane.b32.xlu0 %v2786_v53, %s3992_s29 }
0x1ac8   :  { %v2790_v25 = vpop.permute.xlu0 %2789 }
0x1ac9   :  { %v2792_v59 = vmul.f32 %v3826_v2, %v2790_v25 }
0x1acb   :  { %2797 = vrot.lane.b32.xlu1 %v2792_v59, %s3991_s17  ;;  %s3932_s17 = scalar_lea.vmem %s2912_s16, 384 }
0x1acc   :  { %v2804_v26 = vpop.permute.xlu0 %2803  ;;  %p3933_p6 = scmp.ne.s32.totalorder %s2912_s16, %s3932_s17  ;;  %p3938_p8 = scmp.lt.s32.totalorder %s3932_s17, %s3932_s17 }
0x1acd   :  { %2806 = vst.msk [vmem:[#allocation12] sm:$0xff] %vm287_vm2, %v2804_v26 }
0x1ace   :  { %p3939_p9 = por %p3938_p8, %p3937_p7 }
0x1acf   :  { %2808 = vrot.lane.b32.xlu1 %v2575_v16, %s3992_s29 }
0x1ad0   :  { %v2815_v30 = vpop.permute.xlu0 %2814  ;;  %p3940_p10 = pnand %p3939_p9, %p3933_p6 }
0x1ad1   :  { %2818 = vst.msk [vmem:[#allocation12 + $0x10] sm:$0xff] %vm287_vm2, %v2815_v30 }
0x1b3d   :  { %v2798_v34 = vpop.permute.xlu1 %2797 }
0x1b3e   :  { %2801 = vst.msk [vmem:[#allocation11 + $0x10] sm:$0xff] %vm287_vm2, %v2798_v34  ;;  %3622 = vmatmul.mubr.msk.f32.vlgmr.msra.gmra.mxu0 %vm287_vm2, %v2798_v34 }
0x1b41   :  { %v2809_v0 = vpop.permute.xlu1 %2808 }
0x1b42   :  { %2812 = vst.msk [vmem:[#allocation12 + $0x8] sm:$0xff] %vm287_vm2, %v2809_v0 }
0x1b43   :  { %3943 = shalt.err (!%p3940_p10)
}
0x1b44   :  { %2917 = dma.vmem_to_hbm [thread:$0]  %s2912_s16, 384, %s5009_s13, [#allocation5], %s3984_s22, %s3984_s22, %s3985_s23  }
0x1b45   :  { %s3952_s6 = scalar_lea.vmem %s2924_s15, 384  ;;  %p3957_p12 = scmp.lt.s32.totalorder %s2924_s15, %s2924_s15 }
0x1b46   :  { %p3953_p11 = scmp.ne.s32.totalorder %s2924_s15, %s3952_s6  ;;  %p3958_p13 = scmp.lt.s32.totalorder %s3952_s6, %s3952_s6 }
0x1b48   :  { %p3959_p0 = por %p3958_p13, %p3957_p12 }
0x1b4a   :  { %p3960_p1 = pnand %p3959_p0, %p3953_p11 }
0x1b4c   :  { %3963 = shalt.err (!%p3960_p1)
}
0x1b4d   :  { %2929 = dma.vmem_to_hbm [thread:$0]  %s2924_s15, 384, %s5010_s14, [#allocation13], %s3984_s22, %s3984_s22, %s3985_s23   ;;  %vm2902_vm4 = vcmask 31744  }
0x1b4e   :  { %v3004_v27 = vld [vmem:[%s5007_s11] ss:$0 sm:$0xff] }
0x1bfe   :  { %v2898_v36 = vpop.f32.mrf.mxu0 }
0x1bff   :  { %v2899_v17 = vadd.f32 %v3004_v27, %v2898_v36 }
0x1c00   :  { %v3623_v35 = vpop.f32.mrf.mxu0 }
0x1c01   :  { %2903 = vst.msk [vmem:[%s5008_s12] sm:$0xff] %vm2902_vm4, %v2899_v17 }
0x1c02   :  { %3978 = dma.done.wait [#allocation5], 384  }
0x1c03   :  { %3979 = vsyncadd [#allocation5], 4294966912 }
0x1c04   :  { %3980 = dma.done.wait [#allocation13], 384  }
0x1c05   :  { %3981 = vsyncadd [#allocation13], 4294966912 }
0x1c06   :  { %2938 = vsyncpa [#allocation4], 1 }
0x1c07   :  { %2939 = vsyncpa [#allocation7], 1 }
0x1c08   :  { %2940 = vsyncpa [#allocation10], 1 }
0x1c09   :  { %2941 = vsyncpa [#allocation5], 1 }
0x1c0a   :  { %2942 = vsyncpa [#allocation13], 1 }

</bundles_post_ra>
